<compile_context>
chip_gen: v7x
topology: tpu7x:2x2x1
jax: 0.10.0
libtpu: 0.0.40
codegen_flags: <defaults>
</compile_context>

<pallas_src>
import math

import numpy as np
import jax
import jax.numpy as jnp
from jax.experimental import pallas as pl
from jax.experimental.pallas import tpu as pltpu

_GELU_C = math.sqrt(2.0 / math.pi)


# ----------------------------------------------------------------------------
# Whole-network kernel: stem -> n_blocks residual blocks -> head
#   grid = (B, n_blocks); batch "parallel", block "arbitrary".
# ----------------------------------------------------------------------------
def _make_network_kernel(H, W, K, C):
    pad = K // 2
    WC = W * C

    def kernel(x_ref, wi1, bi1, wi2, bi2,
               wt1, bt1, wt2, bt2,
               wo1, bo1, wo2, bo2,
               sel_sq, sel_sc, bc_plane, bc_mean,
               o_ref, act_ref, pad_ref):
        j = pl.program_id(1)

        # ---- multivector epilogue helpers (lane-dense [H, W*C] layout) -----
        def mvgelu(h):
            # gate from the scalar blade of each (pixel, plane), then
            # broadcast back to the plane's 4 blades via a selection matmul
            g = jnp.dot(h, sel_sc[...], preferred_element_type=jnp.float32)
            gate = jax.nn.sigmoid(_GELU_C * 2.0 * (g + 0.044715 * g * g * g))
            return h * jnp.dot(gate, bc_plane[...],
                               preferred_element_type=jnp.float32)

        def mvnorm(h):
            # per-(pixel, plane) multivector norm, mean over planes broadcast
            # back to all Cm lanes of the pixel; EUP approx reciprocal.
            sq = jnp.dot(h * h, sel_sq[...], preferred_element_type=jnp.float32)
            mean = jnp.dot(jnp.sqrt(sq), bc_mean[...],
                           preferred_element_type=jnp.float32)
            return h * pl.reciprocal(mean, approx=True)

        def conv(w_ref, b_ref):
            # KxK "same" conv as ONE bf16 MXU dot with f32 accumulation:
            # concat the K row-shifted padded slabs along the contraction axis.
            lhs = jnp.concatenate([pad_ref[kh:kh + H, :] for kh in range(K)],
                                  axis=1)
            return jnp.dot(lhs.astype(jnp.bfloat16), w_ref[0],
                           preferred_element_type=jnp.float32) + b_ref[0]

        # ---- stem: two fused 1x1 steerable convs, once per batch element ---
        @pl.when(j == 0)
        def _stem():
            pad_ref[...] = jnp.zeros_like(pad_ref)   # halo zeroed once per b
            h = jnp.dot(x_ref[0], wi1[...],
                        preferred_element_type=jnp.float32) + bi1[...]
            h = mvgelu(h)
            h = jnp.dot(h, wi2[...],
                        preferred_element_type=jnp.float32) + bi2[...]
            act_ref[...] = mvgelu(h)

        # ---- residual block j (activation never leaves VMEM) ---------------
        x = act_ref[...]                                  # block input / shortcut
        pad_ref[pad:pad + H, pad * C:pad * C + WC] = x
        h = mvgelu(mvnorm(conv(wt1, bt1)))
        pad_ref[pad:pad + H, pad * C:pad * C + WC] = h
        out = mvnorm(conv(wt2, bt2)) + x                  # identity shortcut
        act_ref[...] = mvgelu(out)

        # ---- head: two fused 1x1 convs, lane-padded dense output -----------
        @pl.when(j == pl.num_programs(1) - 1)
        def _head():
            h = jnp.dot(act_ref[...], wo1[...],
                        preferred_element_type=jnp.float32) + bo1[...]
            h = mvgelu(h)
            o_ref[0] = jnp.dot(h, wo2[...],
                               preferred_element_type=jnp.float32) + bo2[...]

    return kernel


def steerable_resnet_pallas_forward(x, pk, *, W, K, C):
    """x: [B, H, W*Ct*4] f32; pk: packed params. Returns [B, H, out_pad] f32."""
    B, H, _ = x.shape
    pad = K // 2
    n_blocks = pk["wt1"].shape[0]
    out_pad = pk["wo2"].shape[1]

    def const(a):
        return pl.BlockSpec(a.shape, lambda b, j, _nd=a.ndim: (0,) * _nd)

    def stacked(a):                              # indexed by the block axis
        return pl.BlockSpec((1,) + a.shape[1:], lambda b, j: (j, 0, 0))

    in_specs = [pl.BlockSpec((1, H, x.shape[2]), lambda b, j: (b, 0, 0)),
                const(pk["wi1"]), const(pk["bi1"]),
                const(pk["wi2"]), const(pk["bi2"]),
                stacked(pk["wt1"]), stacked(pk["bt1"]),
                stacked(pk["wt2"]), stacked(pk["bt2"]),
                const(pk["wo1"]), const(pk["bo1"]),
                const(pk["wo2"]), const(pk["bo2"]),
                const(pk["sel_sq"]), const(pk["sel_sc"]),
                const(pk["bc_plane"]), const(pk["bc_mean"])]

    return pl.pallas_call(
        _make_network_kernel(H, W, K, C),
        out_shape=jax.ShapeDtypeStruct((B, H, out_pad), jnp.float32),
        grid=(B, n_blocks),
        in_specs=in_specs,
        out_specs=pl.BlockSpec((1, H, out_pad), lambda b, j: (b, 0, 0)),
        scratch_shapes=[pltpu.VMEM((H, W * C), jnp.float32),              # act
                        pltpu.VMEM((H + 2 * pad, (W + 2 * pad) * C),      # halo
                                   jnp.float32)],
        compiler_params=pltpu.CompilerParams(
            dimension_semantics=("parallel", "arbitrary")),
    )(x, pk["wi1"], pk["bi1"], pk["wi2"], pk["bi2"],
      pk["wt1"], pk["bt1"], pk["wt2"], pk["bt2"],
      pk["wo1"], pk["bo1"], pk["wo2"], pk["bo2"],
      pk["sel_sq"], pk["sel_sc"], pk["bc_plane"], pk["bc_mean"])


# ----------------------------------------------------------------------------
# Host-side parameter packing (lane-dense layout)
# ----------------------------------------------------------------------------
def _toeplitz_conv_weights(w, W):
    """w: [K, K, Cin, Cout] -> [K, (W+2p)*Cin, W*Cout] width-Toeplitz matrices."""
    w_np = np.asarray(w, np.float32)
    K, _, Cin, Cout = w_np.shape
    pad = K // 2
    Wp = W + 2 * pad
    wt = np.zeros((K, Wp * Cin, W * Cout), np.float32)
    for kh in range(K):
        for kw in range(K):
            for wo in range(W):
                wi = wo + kw
                wt[kh, wi * Cin:(wi + 1) * Cin,
                   wo * Cout:(wo + 1) * Cout] = w_np[kh, kw]
    return wt


def _sel_matrices(W, P):
    """Selection / broadcast matrices for the blade-wise ops, lane-dense layout."""
    Cm = 4 * P
    sel_sq = np.zeros((W * Cm, W * P), np.float32)    # sum-of-squares per plane
    sel_sc = np.zeros((W * Cm, W * P), np.float32)    # scalar-blade pick
    bc_plane = np.zeros((W * P, W * Cm), np.float32)  # plane value -> its 4 blades
    bc_mean = np.zeros((W * P, W * Cm), np.float32)   # mean over planes -> all lanes
    for w in range(W):
        for p in range(P):
            col = w * P + p
            rows = w * Cm + p * 4 + np.arange(4)
            sel_sq[rows, col] = 1.0
            sel_sc[rows[0], col] = 1.0
            bc_plane[col, rows] = 1.0
            bc_mean[col, w * Cm:(w + 1) * Cm] = 1.0 / P
    return (jnp.asarray(sel_sq), jnp.asarray(sel_sc),
            jnp.asarray(bc_plane), jnp.asarray(bc_mean))


def _init_conv(key, k, in_planes, out_planes, round_bf16=False):
    # TODO(synk): escnn's generalized_he_init constrains weights to the O(2)-steerable
    # basis of R2Conv; here we use deterministic unconstrained stand-in weights
    # (the forward math is an identical conv2d).
    Cin, Cout = in_planes * 4, out_planes * 4
    kw_key, kb_key = jax.random.split(key)
    fan_in = k * k * Cin
    w = jax.random.normal(kw_key, (k, k, Cin, Cout), jnp.float32) * math.sqrt(2.0 / fan_in)
    # escnn bias only attaches to trivial (scalar) irreps
    scalar_mask = (jnp.arange(Cout) % 4 == 0).astype(jnp.float32)
    b = jax.random.normal(kb_key, (Cout,), jnp.float32) * 0.01 * scalar_mask
    if round_bf16:
        # store block-conv weights at bf16-representable values so the bf16 MXU
        # path and the f32 reference share identical parameters
        w = w.astype(jnp.bfloat16).astype(jnp.float32)
    return w, b


# ----------------------------------------------------------------------------
# Model
# ----------------------------------------------------------------------------
class SteerableResNetPallas:
    def __init__(self, metric, time_history, time_future, hidden_channels,
                 kernel_size=7, norm=True, blocks=(2, 2, 2, 2), seed=0):
        assert len(metric) == 2, "2D (R2Conv) variant implemented"
        self.k = kernel_size
        self.hidden = hidden_channels
        self.time_history = time_history
        self.time_future = time_future
        n_blocks = sum(blocks)
        keys = jax.random.split(jax.random.PRNGKey(seed), 4 + 2 * n_blocks)
        self.conv_in1 = _init_conv(keys[0], 1, time_history, hidden_channels)
        self.conv_in2 = _init_conv(keys[1], 1, hidden_channels, hidden_channels)
        self.conv_out1 = _init_conv(keys[2], 1, hidden_channels, hidden_channels)
        self.conv_out2 = _init_conv(keys[3], 1, hidden_channels, time_future)
        self.blocks = []
        for i in range(n_blocks):
            c1 = _init_conv(keys[4 + 2 * i], kernel_size, hidden_channels,
                            hidden_channels, round_bf16=True)
            c2 = _init_conv(keys[5 + 2 * i], kernel_size, hidden_channels,
                            hidden_channels, round_bf16=True)
            self.blocks.append((c1, c2))
        # note: `norm` only affects the shortcut branch when in_planes != planes,
        # which never happens here (all blocks are hidden->hidden, identity shortcut).
        self._packed = {}
        self._jit_forward = jax.jit(self._forward_impl)

    # -- host-side packing into lane-dense / Toeplitz layouts -----------------
    def _pack(self, W):
        if W in self._packed:
            return self._packed[W]
        P = self.hidden
        out_lanes = W * self.time_future * 4
        out_pad = max(128, -(-out_lanes // 128) * 128)   # lane-dense head output

        def pack_1x1(wc, pad_cols=None):
            w, b = wc
            wm = _toeplitz_conv_weights(w, W)[0]            # [W*Cin, W*Cout]
            bm = np.tile(np.asarray(b, np.float32), W)[None, :]
            if pad_cols is not None and pad_cols > wm.shape[1]:
                wm = np.pad(wm, ((0, 0), (0, pad_cols - wm.shape[1])))
                bm = np.pad(bm, ((0, 0), (0, pad_cols - bm.shape[1])))
            return jnp.asarray(wm, jnp.float32), jnp.asarray(bm, jnp.float32)

        def pack_kxk(wc):
            w, b = wc
            wt = _toeplitz_conv_weights(w, W)               # [K, Wp*Cin, W*Cout]
            K_, WpC, WCo = wt.shape
            wt = wt.reshape(K_ * WpC, WCo)                  # collapsed single-dot weight
            bm = np.tile(np.asarray(b, np.float32), W)[None, :]
            return wt, bm

        pk = {}
        pk["wi1"], pk["bi1"] = pack_1x1(self.conv_in1)
        pk["wi2"], pk["bi2"] = pack_1x1(self.conv_in2)
        pk["wo1"], pk["bo1"] = pack_1x1(self.conv_out1)
        pk["wo2"], pk["bo2"] = pack_1x1(self.conv_out2, pad_cols=out_pad)
        w1s, b1s, w2s, b2s = [], [], [], []
        for c1, c2 in self.blocks:
            w1, b1 = pack_kxk(c1)
            w2, b2 = pack_kxk(c2)
            w1s.append(w1); b1s.append(b1); w2s.append(w2); b2s.append(b2)
        pk["wt1"] = jnp.asarray(np.stack(w1s), jnp.bfloat16)
        pk["bt1"] = jnp.asarray(np.stack(b1s), jnp.float32)
        pk["wt2"] = jnp.asarray(np.stack(w2s), jnp.bfloat16)
        pk["bt2"] = jnp.asarray(np.stack(b2s), jnp.float32)
        (pk["sel_sq"], pk["sel_sc"],
         pk["bc_plane"], pk["bc_mean"]) = _sel_matrices(W, P)
        self._packed[W] = pk
        return pk

    def _forward_impl(self, x_mv, pk):
        # x_mv: [B, time_history, H, W, 4] multivector input (PyTorch layout)
        B, Ct, H, W, _ = x_mv.shape
        C = 4 * self.hidden
        # mv_to_gt, lane-dense flavour: [B,C,H,W,4] -> [B, H, W*C*4]
        x = jnp.transpose(x_mv, (0, 2, 3, 1, 4)).reshape(B, H, W * Ct * 4)
        y = steerable_resnet_pallas_forward(x, pk, W=W, K=self.k, C=C)
        out_lanes = W * self.time_future * 4
        y = y[:, :, :out_lanes]                          # drop lane padding
        # gt_to_mv: [B, H, W*Cf*4] -> [B, Cf, H, W, 4]
        return y.reshape(B, H, W, self.time_future, 4).transpose(0, 3, 1, 2, 4)

    def __call__(self, x_mv):
        W = x_mv.shape[3]
        return self._jit_forward(x_mv, self._pack(W))


# ----------------------------------------------------------------------------
# Pure-JAX reference (for correctness check only)
# ----------------------------------------------------------------------------
def _ref_conv(x, w, b, k):
    out = jax.lax.conv_general_dilated(
        x, w, (1, 1), ((k // 2, k // 2), (k // 2, k // 2)),
        dimension_numbers=("NHWC", "HWIO", "NHWC"),
        precision=jax.lax.Precision.HIGHEST)
    return out + b.reshape(1, 1, 1, -1)


def _unflat(x):
    return x.reshape(*x.shape[:3], -1, 4)


def _flat(x):
    return x.reshape(*x.shape[:3], -1)


def _ref_mvgelu(x):
    g = x[..., 0:1]
    w = jax.nn.sigmoid(_GELU_C * (2.0 * (g + 0.044715 * g ** 3)))
    return w * x


def _ref_mvnorm(x):
    norms = jnp.sqrt(jnp.sum(x * x, axis=-1, keepdims=True))
    mean = jnp.mean(norms, axis=3, keepdims=True)
    return x / mean


def reference_forward(model, x_mv):
    B, C, H, W, _ = x_mv.shape
    x = jnp.transpose(x_mv, (0, 2, 3, 1, 4)).reshape(B, H, W, C * 4)
    w, b = model.conv_in1
    x = _flat(_ref_mvgelu(_unflat(_ref_conv(x, w, b, 1))))
    w, b = model.conv_in2
    x = _flat(_ref_mvgelu(_unflat(_ref_conv(x, w, b, 1))))
    for (w1, b1), (w2, b2) in model.blocks:
        h = _ref_mvgelu(_ref_mvnorm(_unflat(_ref_conv(x, w1, b1, model.k))))
        out = _ref_mvnorm(_unflat(_ref_conv(_flat(h), w2, b2, model.k)))
        out = out + _unflat(x)
        x = _flat(_ref_mvgelu(out))
    w, b = model.conv_out1
    x = _flat(_ref_mvgelu(_unflat(_ref_conv(x, w, b, 1))))
    w, b = model.conv_out2
    x = _ref_conv(x, w, b, 1)
    Cf = model.time_future
    return x.reshape(B, H, W, Cf, 4).transpose(0, 3, 1, 2, 4)


# ----------------------------------------------------------------------------
if __name__ == "__main__":
    B, T_hist, T_fut, hidden, H, W = 2, 2, 1, 4, 16, 16
    model = SteerableResNetPallas(metric=(1, 1), time_history=T_hist,
                                  time_future=T_fut, hidden_channels=hidden,
                                  kernel_size=3, norm=True, blocks=(1, 1), seed=0)

    x = jax.random.normal(jax.random.PRNGKey(0), (B, T_hist, H, W, 4), jnp.float32)

    y = jax.block_until_ready(model(x))
    y_ref = jax.block_until_ready(reference_forward(model, x))

    assert y.shape == (B, T_fut, H, W, 4), y.shape
    assert bool(jnp.all(jnp.isfinite(y)))
    scale = float(jnp.max(jnp.abs(y_ref)))
    err = float(jnp.max(jnp.abs(y - y_ref)))
    # Error budget (intentional): bf16 KxK conv matmuls + approx reciprocal in
    # MVLayerNorm + default MXU precision on the f32 1x1/selection dots,
    # compared against a HIGHEST-precision f32 reference: 3% relative.
    assert err < 3e-2 * max(scale, 1.0), f"mismatch vs reference: {err} (scale={scale})"
    print("KERNEL_OK")
</pallas_src>

<mosaic_0001>
module attributes {stable_mosaic.version = 11 : i64} {
  func.func @kernel(%arg0: i32, %arg1: i32, %arg2: memref<1x16x128xf32, #tpu.memory_space<vmem>>, %arg3: memref<128x256xf32, #tpu.memory_space<vmem>>, %arg4: memref<1x256xf32, #tpu.memory_space<vmem>>, %arg5: memref<256x256xf32, #tpu.memory_space<vmem>>, %arg6: memref<1x256xf32, #tpu.memory_space<vmem>>, %arg7: memref<1x864x256xbf16, #tpu.memory_space<vmem>>, %arg8: memref<1x1x256xf32, #tpu.memory_space<vmem>>, %arg9: memref<1x864x256xbf16, #tpu.memory_space<vmem>>, %arg10: memref<1x1x256xf32, #tpu.memory_space<vmem>>, %arg11: memref<256x256xf32, #tpu.memory_space<vmem>>, %arg12: memref<1x256xf32, #tpu.memory_space<vmem>>, %arg13: memref<256x128xf32, #tpu.memory_space<vmem>>, %arg14: memref<1x128xf32, #tpu.memory_space<vmem>>, %arg15: memref<256x64xf32, #tpu.memory_space<vmem>>, %arg16: memref<256x64xf32, #tpu.memory_space<vmem>>, %arg17: memref<64x256xf32, #tpu.memory_space<vmem>>, %arg18: memref<64x256xf32, #tpu.memory_space<vmem>>, %arg19: memref<1x16x128xf32, #tpu.memory_space<vmem>>, %arg20: memref<16x256xf32, #tpu.memory_space<vmem>>, %arg21: memref<18x288xf32, #tpu.memory_space<vmem>>) attributes {dimension_semantics = [#tpu.dimension_semantics<parallel>, #tpu.dimension_semantics<arbitrary>], iteration_bounds = array<i64: 2, 2>, scalar_prefetch = 0 : i64, scratch_operands = 2 : i64, tpu.core_type = #tpu.core_type<tc>, window_params = [{transform_indices = @transform_0, window_bounds = array<i64: 1, 16, 128>}, {pipeline_mode = #tpu.pipeline_mode<synchronous>, transform_indices = @transform_1, window_bounds = array<i64: 128, 256>}, {pipeline_mode = #tpu.pipeline_mode<synchronous>, transform_indices = @transform_2, window_bounds = array<i64: 1, 256>}, {pipeline_mode = #tpu.pipeline_mode<synchronous>, transform_indices = @transform_3, window_bounds = array<i64: 256, 256>}, {pipeline_mode = #tpu.pipeline_mode<synchronous>, transform_indices = @transform_4, window_bounds = array<i64: 1, 256>}, {transform_indices = @transform_5, window_bounds = array<i64: 1, 864, 256>}, {transform_indices = @transform_6, window_bounds = array<i64: 1, 1, 256>}, {transform_indices = @transform_7, window_bounds = array<i64: 1, 864, 256>}, {transform_indices = @transform_8, window_bounds = array<i64: 1, 1, 256>}, {pipeline_mode = #tpu.pipeline_mode<synchronous>, transform_indices = @transform_9, window_bounds = array<i64: 256, 256>}, {pipeline_mode = #tpu.pipeline_mode<synchronous>, transform_indices = @transform_10, window_bounds = array<i64: 1, 256>}, {pipeline_mode = #tpu.pipeline_mode<synchronous>, transform_indices = @transform_11, window_bounds = array<i64: 256, 128>}, {pipeline_mode = #tpu.pipeline_mode<synchronous>, transform_indices = @transform_12, window_bounds = array<i64: 1, 128>}, {pipeline_mode = #tpu.pipeline_mode<synchronous>, transform_indices = @transform_13, window_bounds = array<i64: 256, 64>}, {pipeline_mode = #tpu.pipeline_mode<synchronous>, transform_indices = @transform_14, window_bounds = array<i64: 256, 64>}, {pipeline_mode = #tpu.pipeline_mode<synchronous>, transform_indices = @transform_15, window_bounds = array<i64: 64, 256>}, {pipeline_mode = #tpu.pipeline_mode<synchronous>, transform_indices = @transform_16, window_bounds = array<i64: 64, 256>}, {transform_indices = @transform_17, window_bounds = array<i64: 1, 16, 128>}]} {
    %c0_i32 = arith.constant 0 : i32
    %0 = arith.cmpi eq, %arg1, %c0_i32 : i32
    %1 = arith.extui %0 : i1 to i32
    %c0_i32_0 = arith.constant 0 : i32
    %2 = arith.cmpi ne, %1, %c0_i32_0 : i32
    scf.if %2 {
      %cst_61 = arith.constant 0.000000e+00 : f32
      %85 = vector.broadcast %cst_61 : f32 to vector<18x288xf32>
      %c0_62 = arith.constant 0 : index
      %c0_63 = arith.constant 0 : index
      %86 = vector.load %arg21[%c0_62, %c0_63] : memref<18x288xf32, #tpu.memory_space<vmem>>, vector<18x288xf32>
      tpu.vector_store %arg21[%c0_62, %c0_63], %85 {strides = array<i32>} : memref<18x288xf32, #tpu.memory_space<vmem>>, vector<18x288xf32>,
      %c0_64 = arith.constant 0 : index
      %c0_65 = arith.constant 0 : index
      %c0_66 = arith.constant 0 : index
      %87 = vector.load %arg2[%c0_64, %c0_65, %c0_66] : memref<1x16x128xf32, #tpu.memory_space<vmem>>, vector<1x16x128xf32>
      %88 = vector.shape_cast %87 : vector<1x16x128xf32> to vector<16x128xf32>
      %c0_67 = arith.constant 0 : index
      %c0_68 = arith.constant 0 : index
      %89 = vector.load %arg3[%c0_67, %c0_68] : memref<128x256xf32, #tpu.memory_space<vmem>>, vector<128x256xf32>
      %cst_69 = arith.constant dense<0.000000e+00> : vector<16x256xf32>
      %90 = tpu.matmul %88, %89, %cst_69 {dimension_numbers = #tpu.dot_dimension_numbers<[1], [0], [0], [1], [0, 0, 1, 1], [], []>} : vector<16x128xf32>, vector<128x256xf32>, vector<16x256xf32> -> vector<16x256xf32>
      %c0_70 = arith.constant 0 : index
      %c0_71 = arith.constant 0 : index
      %91 = vector.load %arg4[%c0_70, %c0_71] : memref<1x256xf32, #tpu.memory_space<vmem>>, vector<1x256xf32>
      %92 = vector.broadcast %91 : vector<1x256xf32> to vector<16x256xf32>
      %93 = arith.addf %90, %92 : vector<16x256xf32>
      %c0_72 = arith.constant 0 : index
      %c0_73 = arith.constant 0 : index
      %94 = vector.load %arg16[%c0_72, %c0_73] : memref<256x64xf32, #tpu.memory_space<vmem>>, vector<256x64xf32>
      %cst_74 = arith.constant dense<0.000000e+00> : vector<16x64xf32>
      %95 = tpu.matmul %93, %94, %cst_74 {dimension_numbers = #tpu.dot_dimension_numbers<[1], [0], [0], [1], [0, 0, 1, 1], [], []>} : vector<16x256xf32>, vector<256x64xf32>, vector<16x64xf32> -> vector<16x64xf32>
      %cst_75 = arith.constant 4.471500e-02 : f32
      %96 = vector.broadcast %cst_75 : f32 to vector<16x64xf32>
      %97 = arith.mulf %96, %95 : vector<16x64xf32>
      %98 = arith.mulf %97, %95 : vector<16x64xf32>
      %99 = arith.mulf %98, %95 : vector<16x64xf32>
      %100 = arith.addf %95, %99 : vector<16x64xf32>
      %cst_76 = arith.constant 1.59576917 : f32
      %101 = vector.broadcast %cst_76 : f32 to vector<16x64xf32>
      %102 = arith.mulf %101, %100 : vector<16x64xf32>
      %103 = arith.negf %102 : vector<16x64xf32>
      %104 = math.exp %103 : vector<16x64xf32>
      %cst_77 = arith.constant 1.000000e+00 : f32
      %105 = vector.broadcast %cst_77 : f32 to vector<16x64xf32>
      %106 = arith.addf %105, %104 : vector<16x64xf32>
      %107 = arith.divf %105, %106 : vector<16x64xf32>
      %c0_78 = arith.constant 0 : index
      %c0_79 = arith.constant 0 : index
      %108 = vector.load %arg17[%c0_78, %c0_79] : memref<64x256xf32, #tpu.memory_space<vmem>>, vector<64x256xf32>
      %cst_80 = arith.constant dense<0.000000e+00> : vector<16x256xf32>
      %109 = tpu.matmul %107, %108, %cst_80 {dimension_numbers = #tpu.dot_dimension_numbers<[1], [0], [0], [1], [0, 0, 1, 1], [], []>} : vector<16x64xf32>, vector<64x256xf32>, vector<16x256xf32> -> vector<16x256xf32>
      %110 = arith.mulf %93, %109 : vector<16x256xf32>
      %c0_81 = arith.constant 0 : index
      %c0_82 = arith.constant 0 : index
      %111 = vector.load %arg5[%c0_81, %c0_82] : memref<256x256xf32, #tpu.memory_space<vmem>>, vector<256x256xf32>
      %cst_83 = arith.constant dense<0.000000e+00> : vector<16x256xf32>
      %112 = tpu.matmul %110, %111, %cst_83 {dimension_numbers = #tpu.dot_dimension_numbers<[1], [0], [0], [1], [0, 0, 1, 1], [], []>} : vector<16x256xf32>, vector<256x256xf32>, vector<16x256xf32> -> vector<16x256xf32>
      %c0_84 = arith.constant 0 : index
      %c0_85 = arith.constant 0 : index
      %113 = vector.load %arg6[%c0_84, %c0_85] : memref<1x256xf32, #tpu.memory_space<vmem>>, vector<1x256xf32>
      %114 = vector.broadcast %113 : vector<1x256xf32> to vector<16x256xf32>
      %115 = arith.addf %112, %114 : vector<16x256xf32>
      %c0_86 = arith.constant 0 : index
      %c0_87 = arith.constant 0 : index
      %116 = vector.load %arg16[%c0_86, %c0_87] : memref<256x64xf32, #tpu.memory_space<vmem>>, vector<256x64xf32>
      %cst_88 = arith.constant dense<0.000000e+00> : vector<16x64xf32>
      %117 = tpu.matmul %115, %116, %cst_88 {dimension_numbers = #tpu.dot_dimension_numbers<[1], [0], [0], [1], [0, 0, 1, 1], [], []>} : vector<16x256xf32>, vector<256x64xf32>, vector<16x64xf32> -> vector<16x64xf32>
      %cst_89 = arith.constant 4.471500e-02 : f32
      %118 = vector.broadcast %cst_89 : f32 to vector<16x64xf32>
      %119 = arith.mulf %118, %117 : vector<16x64xf32>
      %120 = arith.mulf %119, %117 : vector<16x64xf32>
      %121 = arith.mulf %120, %117 : vector<16x64xf32>
      %122 = arith.addf %117, %121 : vector<16x64xf32>
      %cst_90 = arith.constant 1.59576917 : f32
      %123 = vector.broadcast %cst_90 : f32 to vector<16x64xf32>
      %124 = arith.mulf %123, %122 : vector<16x64xf32>
      %125 = arith.negf %124 : vector<16x64xf32>
      %126 = math.exp %125 : vector<16x64xf32>
      %cst_91 = arith.constant 1.000000e+00 : f32
      %127 = vector.broadcast %cst_91 : f32 to vector<16x64xf32>
      %128 = arith.addf %127, %126 : vector<16x64xf32>
      %129 = arith.divf %127, %128 : vector<16x64xf32>
      %c0_92 = arith.constant 0 : index
      %c0_93 = arith.constant 0 : index
      %130 = vector.load %arg17[%c0_92, %c0_93] : memref<64x256xf32, #tpu.memory_space<vmem>>, vector<64x256xf32>
      %cst_94 = arith.constant dense<0.000000e+00> : vector<16x256xf32>
      %131 = tpu.matmul %129, %130, %cst_94 {dimension_numbers = #tpu.dot_dimension_numbers<[1], [0], [0], [1], [0, 0, 1, 1], [], []>} : vector<16x64xf32>, vector<64x256xf32>, vector<16x256xf32> -> vector<16x256xf32>
      %132 = arith.mulf %115, %131 : vector<16x256xf32>
      %c0_95 = arith.constant 0 : index
      %c0_96 = arith.constant 0 : index
      %133 = vector.load %arg20[%c0_95, %c0_96] : memref<16x256xf32, #tpu.memory_space<vmem>>, vector<16x256xf32>
      tpu.vector_store %arg20[%c0_95, %c0_96], %132 {strides = array<i32>} : memref<16x256xf32, #tpu.memory_space<vmem>>, vector<16x256xf32>,
    } else {
    }
    %c0 = arith.constant 0 : index
    %c0_1 = arith.constant 0 : index
    %3 = vector.load %arg20[%c0, %c0_1] : memref<16x256xf32, #tpu.memory_space<vmem>>, vector<16x256xf32>
    %c1 = arith.constant 1 : index
    %c16 = arith.constant 16 : index
    %4 = vector.load %arg21[%c1, %c16] : memref<18x288xf32, #tpu.memory_space<vmem>>, vector<16x256xf32>
    tpu.vector_store %arg21[%c1, %c16], %3 {strides = array<i32>} : memref<18x288xf32, #tpu.memory_space<vmem>>, vector<16x256xf32>,
    %c0_2 = arith.constant 0 : index
    %c0_3 = arith.constant 0 : index
    %5 = vector.load %arg21[%c0_2, %c0_3] : memref<18x288xf32, #tpu.memory_space<vmem>>, vector<16x288xf32>
    %c1_4 = arith.constant 1 : index
    %c0_5 = arith.constant 0 : index
    %6 = vector.load %arg21[%c1_4, %c0_5] : memref<18x288xf32, #tpu.memory_space<vmem>>, vector<16x288xf32>
    %c2 = arith.constant 2 : index
    %c0_6 = arith.constant 0 : index
    %7 = vector.load %arg21[%c2, %c0_6] : memref<18x288xf32, #tpu.memory_space<vmem>>, vector<16x288xf32>
    %8 = tpu.concatenate %5, %6, %7 in 1 : vector<16x288xf32>, vector<16x288xf32>, vector<16x288xf32> -> vector<16x864xf32>
    %9 = arith.truncf %8 : vector<16x864xf32> to vector<16x864xbf16>
    %c0_7 = arith.constant 0 : index
    %c0_8 = arith.constant 0 : index
    %c0_9 = arith.constant 0 : index
    %10 = vector.load %arg7[%c0_7, %c0_8, %c0_9] : memref<1x864x256xbf16, #tpu.memory_space<vmem>>, vector<1x864x256xbf16>
    %11 = vector.shape_cast %10 : vector<1x864x256xbf16> to vector<864x256xbf16>
    %cst = arith.constant dense<0.000000e+00> : vector<16x256xf32>
    %12 = tpu.matmul %9, %11, %cst {dimension_numbers = #tpu.dot_dimension_numbers<[1], [0], [0], [1], [0, 0, 1, 1], [], []>} : vector<16x864xbf16>, vector<864x256xbf16>, vector<16x256xf32> -> vector<16x256xf32>
    %c0_10 = arith.constant 0 : index
    %c0_11 = arith.constant 0 : index
    %c0_12 = arith.constant 0 : index
    %13 = vector.load %arg8[%c0_10, %c0_11, %c0_12] : memref<1x1x256xf32, #tpu.memory_space<vmem>>, vector<1x1x256xf32>
    %14 = vector.shape_cast %13 : vector<1x1x256xf32> to vector<1x256xf32>
    %15 = vector.broadcast %14 : vector<1x256xf32> to vector<16x256xf32>
    %16 = arith.addf %12, %15 : vector<16x256xf32>
    %17 = arith.mulf %16, %16 : vector<16x256xf32>
    %c0_13 = arith.constant 0 : index
    %c0_14 = arith.constant 0 : index
    %18 = vector.load %arg15[%c0_13, %c0_14] : memref<256x64xf32, #tpu.memory_space<vmem>>, vector<256x64xf32>
    %cst_15 = arith.constant dense<0.000000e+00> : vector<16x64xf32>
    %19 = tpu.matmul %17, %18, %cst_15 {dimension_numbers = #tpu.dot_dimension_numbers<[1], [0], [0], [1], [0, 0, 1, 1], [], []>} : vector<16x256xf32>, vector<256x64xf32>, vector<16x64xf32> -> vector<16x64xf32>
    %20 = math.sqrt %19 : vector<16x64xf32>
    %c0_16 = arith.constant 0 : index
    %c0_17 = arith.constant 0 : index
    %21 = vector.load %arg18[%c0_16, %c0_17] : memref<64x256xf32, #tpu.memory_space<vmem>>, vector<64x256xf32>
    %cst_18 = arith.constant dense<0.000000e+00> : vector<16x256xf32>
    %22 = tpu.matmul %20, %21, %cst_18 {dimension_numbers = #tpu.dot_dimension_numbers<[1], [0], [0], [1], [0, 0, 1, 1], [], []>} : vector<16x64xf32>, vector<64x256xf32>, vector<16x256xf32> -> vector<16x256xf32>
    %23 = tpu.reciprocal %22 {approx = true} : vector<16x256xf32> -> vector<16x256xf32>
    %24 = arith.mulf %16, %23 : vector<16x256xf32>
    %c0_19 = arith.constant 0 : index
    %c0_20 = arith.constant 0 : index
    %25 = vector.load %arg16[%c0_19, %c0_20] : memref<256x64xf32, #tpu.memory_space<vmem>>, vector<256x64xf32>
    %cst_21 = arith.constant dense<0.000000e+00> : vector<16x64xf32>
    %26 = tpu.matmul %24, %25, %cst_21 {dimension_numbers = #tpu.dot_dimension_numbers<[1], [0], [0], [1], [0, 0, 1, 1], [], []>} : vector<16x256xf32>, vector<256x64xf32>, vector<16x64xf32> -> vector<16x64xf32>
    %cst_22 = arith.constant 4.471500e-02 : f32
    %27 = vector.broadcast %cst_22 : f32 to vector<16x64xf32>
    %28 = arith.mulf %27, %26 : vector<16x64xf32>
    %29 = arith.mulf %28, %26 : vector<16x64xf32>
    %30 = arith.mulf %29, %26 : vector<16x64xf32>
    %31 = arith.addf %26, %30 : vector<16x64xf32>
    %cst_23 = arith.constant 1.59576917 : f32
    %32 = vector.broadcast %cst_23 : f32 to vector<16x64xf32>
    %33 = arith.mulf %32, %31 : vector<16x64xf32>
    %34 = arith.negf %33 : vector<16x64xf32>
    %35 = math.exp %34 : vector<16x64xf32>
    %cst_24 = arith.constant 1.000000e+00 : f32
    %36 = vector.broadcast %cst_24 : f32 to vector<16x64xf32>
    %37 = arith.addf %36, %35 : vector<16x64xf32>
    %38 = arith.divf %36, %37 : vector<16x64xf32>
    %c0_25 = arith.constant 0 : index
    %c0_26 = arith.constant 0 : index
    %39 = vector.load %arg17[%c0_25, %c0_26] : memref<64x256xf32, #tpu.memory_space<vmem>>, vector<64x256xf32>
    %cst_27 = arith.constant dense<0.000000e+00> : vector<16x256xf32>
    %40 = tpu.matmul %38, %39, %cst_27 {dimension_numbers = #tpu.dot_dimension_numbers<[1], [0], [0], [1], [0, 0, 1, 1], [], []>} : vector<16x64xf32>, vector<64x256xf32>, vector<16x256xf32> -> vector<16x256xf32>
    %41 = arith.mulf %24, %40 : vector<16x256xf32>
    %c1_28 = arith.constant 1 : index
    %c16_29 = arith.constant 16 : index
    %42 = vector.load %arg21[%c1_28, %c16_29] : memref<18x288xf32, #tpu.memory_space<vmem>>, vector<16x256xf32>
    tpu.vector_store %arg21[%c1_28, %c16_29], %41 {strides = array<i32>} : memref<18x288xf32, #tpu.memory_space<vmem>>, vector<16x256xf32>,
    %c0_30 = arith.constant 0 : index
    %c0_31 = arith.constant 0 : index
    %43 = vector.load %arg21[%c0_30, %c0_31] : memref<18x288xf32, #tpu.memory_space<vmem>>, vector<16x288xf32>
    %c1_32 = arith.constant 1 : index
    %c0_33 = arith.constant 0 : index
    %44 = vector.load %arg21[%c1_32, %c0_33] : memref<18x288xf32, #tpu.memory_space<vmem>>, vector<16x288xf32>
    %c2_34 = arith.constant 2 : index
    %c0_35 = arith.constant 0 : index
    %45 = vector.load %arg21[%c2_34, %c0_35] : memref<18x288xf32, #tpu.memory_space<vmem>>, vector<16x288xf32>
    %46 = tpu.concatenate %43, %44, %45 in 1 : vector<16x288xf32>, vector<16x288xf32>, vector<16x288xf32> -> vector<16x864xf32>
    %47 = arith.truncf %46 : vector<16x864xf32> to vector<16x864xbf16>
    %c0_36 = arith.constant 0 : index
    %c0_37 = arith.constant 0 : index
    %c0_38 = arith.constant 0 : index
    %48 = vector.load %arg9[%c0_36, %c0_37, %c0_38] : memref<1x864x256xbf16, #tpu.memory_space<vmem>>, vector<1x864x256xbf16>
    %49 = vector.shape_cast %48 : vector<1x864x256xbf16> to vector<864x256xbf16>
    %cst_39 = arith.constant dense<0.000000e+00> : vector<16x256xf32>
    %50 = tpu.matmul %47, %49, %cst_39 {dimension_numbers = #tpu.dot_dimension_numbers<[1], [0], [0], [1], [0, 0, 1, 1], [], []>} : vector<16x864xbf16>, vector<864x256xbf16>, vector<16x256xf32> -> vector<16x256xf32>
    %c0_40 = arith.constant 0 : index
    %c0_41 = arith.constant 0 : index
    %c0_42 = arith.constant 0 : index
    %51 = vector.load %arg10[%c0_40, %c0_41, %c0_42] : memref<1x1x256xf32, #tpu.memory_space<vmem>>, vector<1x1x256xf32>
    %52 = vector.shape_cast %51 : vector<1x1x256xf32> to vector<1x256xf32>
    %53 = vector.broadcast %52 : vector<1x256xf32> to vector<16x256xf32>
    %54 = arith.addf %50, %53 : vector<16x256xf32>
    %55 = arith.mulf %54, %54 : vector<16x256xf32>
    %c0_43 = arith.constant 0 : index
    %c0_44 = arith.constant 0 : index
    %56 = vector.load %arg15[%c0_43, %c0_44] : memref<256x64xf32, #tpu.memory_space<vmem>>, vector<256x64xf32>
    %cst_45 = arith.constant dense<0.000000e+00> : vector<16x64xf32>
    %57 = tpu.matmul %55, %56, %cst_45 {dimension_numbers = #tpu.dot_dimension_numbers<[1], [0], [0], [1], [0, 0, 1, 1], [], []>} : vector<16x256xf32>, vector<256x64xf32>, vector<16x64xf32> -> vector<16x64xf32>
    %58 = math.sqrt %57 : vector<16x64xf32>
    %c0_46 = arith.constant 0 : index
    %c0_47 = arith.constant 0 : index
    %59 = vector.load %arg18[%c0_46, %c0_47] : memref<64x256xf32, #tpu.memory_space<vmem>>, vector<64x256xf32>
    %cst_48 = arith.constant dense<0.000000e+00> : vector<16x256xf32>
    %60 = tpu.matmul %58, %59, %cst_48 {dimension_numbers = #tpu.dot_dimension_numbers<[1], [0], [0], [1], [0, 0, 1, 1], [], []>} : vector<16x64xf32>, vector<64x256xf32>, vector<16x256xf32> -> vector<16x256xf32>
    %61 = tpu.reciprocal %60 {approx = true} : vector<16x256xf32> -> vector<16x256xf32>
    %62 = arith.mulf %54, %61 : vector<16x256xf32>
    %63 = arith.addf %62, %3 : vector<16x256xf32>
    %c0_49 = arith.constant 0 : index
    %c0_50 = arith.constant 0 : index
    %64 = vector.load %arg16[%c0_49, %c0_50] : memref<256x64xf32, #tpu.memory_space<vmem>>, vector<256x64xf32>
    %cst_51 = arith.constant dense<0.000000e+00> : vector<16x64xf32>
    %65 = tpu.matmul %63, %64, %cst_51 {dimension_numbers = #tpu.dot_dimension_numbers<[1], [0], [0], [1], [0, 0, 1, 1], [], []>} : vector<16x256xf32>, vector<256x64xf32>, vector<16x64xf32> -> vector<16x64xf32>
    %cst_52 = arith.constant 4.471500e-02 : f32
    %66 = vector.broadcast %cst_52 : f32 to vector<16x64xf32>
    %67 = arith.mulf %66, %65 : vector<16x64xf32>
    %68 = arith.mulf %67, %65 : vector<16x64xf32>
    %69 = arith.mulf %68, %65 : vector<16x64xf32>
    %70 = arith.addf %65, %69 : vector<16x64xf32>
    %cst_53 = arith.constant 1.59576917 : f32
    %71 = vector.broadcast %cst_53 : f32 to vector<16x64xf32>
    %72 = arith.mulf %71, %70 : vector<16x64xf32>
    %73 = arith.negf %72 : vector<16x64xf32>
    %74 = math.exp %73 : vector<16x64xf32>
    %cst_54 = arith.constant 1.000000e+00 : f32
    %75 = vector.broadcast %cst_54 : f32 to vector<16x64xf32>
    %76 = arith.addf %75, %74 : vector<16x64xf32>
    %77 = arith.divf %75, %76 : vector<16x64xf32>
    %c0_55 = arith.constant 0 : index
    %c0_56 = arith.constant 0 : index
    %78 = vector.load %arg17[%c0_55, %c0_56] : memref<64x256xf32, #tpu.memory_space<vmem>>, vector<64x256xf32>
    %cst_57 = arith.constant dense<0.000000e+00> : vector<16x256xf32>
    %79 = tpu.matmul %77, %78, %cst_57 {dimension_numbers = #tpu.dot_dimension_numbers<[1], [0], [0], [1], [0, 0, 1, 1], [], []>} : vector<16x64xf32>, vector<64x256xf32>, vector<16x256xf32> -> vector<16x256xf32>
    %80 = arith.mulf %63, %79 : vector<16x256xf32>
    %c0_58 = arith.constant 0 : index
    %c0_59 = arith.constant 0 : index
    %81 = vector.load %arg20[%c0_58, %c0_59] : memref<16x256xf32, #tpu.memory_space<vmem>>, vector<16x256xf32>
    tpu.vector_store %arg20[%c0_58, %c0_59], %80 {strides = array<i32>} : memref<16x256xf32, #tpu.memory_space<vmem>>, vector<16x256xf32>,
    %c1_i32 = arith.constant 1 : i32
    %82 = arith.cmpi eq, %arg1, %c1_i32 : i32
    %83 = arith.extui %82 : i1 to i32
    %c0_i32_60 = arith.constant 0 : i32
    %84 = arith.cmpi ne, %83, %c0_i32_60 : i32
    scf.if %84 {
      %c0_61 = arith.constant 0 : index
      %c0_62 = arith.constant 0 : index
      %85 = vector.load %arg20[%c0_61, %c0_62] : memref<16x256xf32, #tpu.memory_space<vmem>>, vector<16x256xf32>
      %c0_63 = arith.constant 0 : index
      %c0_64 = arith.constant 0 : index
      %86 = vector.load %arg11[%c0_63, %c0_64] : memref<256x256xf32, #tpu.memory_space<vmem>>, vector<256x256xf32>
      %cst_65 = arith.constant dense<0.000000e+00> : vector<16x256xf32>
      %87 = tpu.matmul %85, %86, %cst_65 {dimension_numbers = #tpu.dot_dimension_numbers<[1], [0], [0], [1], [0, 0, 1, 1], [], []>} : vector<16x256xf32>, vector<256x256xf32>, vector<16x256xf32> -> vector<16x256xf32>
      %c0_66 = arith.constant 0 : index
      %c0_67 = arith.constant 0 : index
      %88 = vector.load %arg12[%c0_66, %c0_67] : memref<1x256xf32, #tpu.memory_space<vmem>>, vector<1x256xf32>
      %89 = vector.broadcast %88 : vector<1x256xf32> to vector<16x256xf32>
      %90 = arith.addf %87, %89 : vector<16x256xf32>
      %c0_68 = arith.constant 0 : index
      %c0_69 = arith.constant 0 : index
      %91 = vector.load %arg16[%c0_68, %c0_69] : memref<256x64xf32, #tpu.memory_space<vmem>>, vector<256x64xf32>
      %cst_70 = arith.constant dense<0.000000e+00> : vector<16x64xf32>
      %92 = tpu.matmul %90, %91, %cst_70 {dimension_numbers = #tpu.dot_dimension_numbers<[1], [0], [0], [1], [0, 0, 1, 1], [], []>} : vector<16x256xf32>, vector<256x64xf32>, vector<16x64xf32> -> vector<16x64xf32>
      %cst_71 = arith.constant 4.471500e-02 : f32
      %93 = vector.broadcast %cst_71 : f32 to vector<16x64xf32>
      %94 = arith.mulf %93, %92 : vector<16x64xf32>
      %95 = arith.mulf %94, %92 : vector<16x64xf32>
      %96 = arith.mulf %95, %92 : vector<16x64xf32>
      %97 = arith.addf %92, %96 : vector<16x64xf32>
      %cst_72 = arith.constant 1.59576917 : f32
      %98 = vector.broadcast %cst_72 : f32 to vector<16x64xf32>
      %99 = arith.mulf %98, %97 : vector<16x64xf32>
      %100 = arith.negf %99 : vector<16x64xf32>
      %101 = math.exp %100 : vector<16x64xf32>
      %cst_73 = arith.constant 1.000000e+00 : f32
      %102 = vector.broadcast %cst_73 : f32 to vector<16x64xf32>
      %103 = arith.addf %102, %101 : vector<16x64xf32>
      %104 = arith.divf %102, %103 : vector<16x64xf32>
      %c0_74 = arith.constant 0 : index
      %c0_75 = arith.constant 0 : index
      %105 = vector.load %arg17[%c0_74, %c0_75] : memref<64x256xf32, #tpu.memory_space<vmem>>, vector<64x256xf32>
      %cst_76 = arith.constant dense<0.000000e+00> : vector<16x256xf32>
      %106 = tpu.matmul %104, %105, %cst_76 {dimension_numbers = #tpu.dot_dimension_numbers<[1], [0], [0], [1], [0, 0, 1, 1], [], []>} : vector<16x64xf32>, vector<64x256xf32>, vector<16x256xf32> -> vector<16x256xf32>
      %107 = arith.mulf %90, %106 : vector<16x256xf32>
      %c0_77 = arith.constant 0 : index
      %c0_78 = arith.constant 0 : index
      %108 = vector.load %arg13[%c0_77, %c0_78] : memref<256x128xf32, #tpu.memory_space<vmem>>, vector<256x128xf32>
      %cst_79 = arith.constant dense<0.000000e+00> : vector<16x128xf32>
      %109 = tpu.matmul %107, %108, %cst_79 {dimension_numbers = #tpu.dot_dimension_numbers<[1], [0], [0], [1], [0, 0, 1, 1], [], []>} : vector<16x256xf32>, vector<256x128xf32>, vector<16x128xf32> -> vector<16x128xf32>
      %c0_80 = arith.constant 0 : index
      %c0_81 = arith.constant 0 : index
      %110 = vector.load %arg14[%c0_80, %c0_81] : memref<1x128xf32, #tpu.memory_space<vmem>>, vector<1x128xf32>
      %111 = vector.broadcast %110 : vector<1x128xf32> to vector<16x128xf32>
      %112 = arith.addf %109, %111 : vector<16x128xf32>
      %c0_82 = arith.constant 0 : index
      %c0_83 = arith.constant 0 : index
      %c0_84 = arith.constant 0 : index
      %113 = vector.load %arg19[%c0_82, %c0_83, %c0_84] : memref<1x16x128xf32, #tpu.memory_space<vmem>>, vector<1x16x128xf32>
      %114 = vector.shape_cast %113 : vector<1x16x128xf32> to vector<16x128xf32>
      %115 = vector.shape_cast %112 : vector<16x128xf32> to vector<1x16x128xf32>
      tpu.vector_store %arg19[%c0_82, %c0_83, %c0_84], %115 {strides = array<i32>} : memref<1x16x128xf32, #tpu.memory_space<vmem>>, vector<1x16x128xf32>,
    } else {
    }
    return
  }
  func.func @transform_0(%arg0: i32, %arg1: i32) -> (i32, i32, i32) {
    %c0_i32 = arith.constant 0 : i32
    %c0_i32_0 = arith.constant 0 : i32
    %c0_i32_1 = arith.constant 0 : i32
    return %arg0, %c0_i32, %c0_i32_0 : i32, i32, i32
  }
  func.func @transform_1(%arg0: i32, %arg1: i32) -> (i32, i32) {
    %c0_i32 = arith.constant 0 : i32
    %c0_i32_0 = arith.constant 0 : i32
    %c0_i32_1 = arith.constant 0 : i32
    return %c0_i32, %c0_i32_0 : i32, i32
  }
  func.func @transform_2(%arg0: i32, %arg1: i32) -> (i32, i32) {
    %c0_i32 = arith.constant 0 : i32
    %c0_i32_0 = arith.constant 0 : i32
    %c0_i32_1 = arith.constant 0 : i32
    return %c0_i32, %c0_i32_0 : i32, i32
  }
  func.func @transform_3(%arg0: i32, %arg1: i32) -> (i32, i32) {
    %c0_i32 = arith.constant 0 : i32
    %c0_i32_0 = arith.constant 0 : i32
    %c0_i32_1 = arith.constant 0 : i32
    return %c0_i32, %c0_i32_0 : i32, i32
  }
  func.func @transform_4(%arg0: i32, %arg1: i32) -> (i32, i32) {
    %c0_i32 = arith.constant 0 : i32
    %c0_i32_0 = arith.constant 0 : i32
    %c0_i32_1 = arith.constant 0 : i32
    return %c0_i32, %c0_i32_0 : i32, i32
  }
  func.func @transform_5(%arg0: i32, %arg1: i32) -> (i32, i32, i32) {
    %c0_i32 = arith.constant 0 : i32
    %c0_i32_0 = arith.constant 0 : i32
    %c0_i32_1 = arith.constant 0 : i32
    return %arg1, %c0_i32, %c0_i32_0 : i32, i32, i32
  }
  func.func @transform_6(%arg0: i32, %arg1: i32) -> (i32, i32, i32) {
    %c0_i32 = arith.constant 0 : i32
    %c0_i32_0 = arith.constant 0 : i32
    %c0_i32_1 = arith.constant 0 : i32
    return %arg1, %c0_i32, %c0_i32_0 : i32, i32, i32
  }
  func.func @transform_7(%arg0: i32, %arg1: i32) -> (i32, i32, i32) {
    %c0_i32 = arith.constant 0 : i32
    %c0_i32_0 = arith.constant 0 : i32
    %c0_i32_1 = arith.constant 0 : i32
    return %arg1, %c0_i32, %c0_i32_0 : i32, i32, i32
  }
  func.func @transform_8(%arg0: i32, %arg1: i32) -> (i32, i32, i32) {
    %c0_i32 = arith.constant 0 : i32
    %c0_i32_0 = arith.constant 0 : i32
    %c0_i32_1 = arith.constant 0 : i32
    return %arg1, %c0_i32, %c0_i32_0 : i32, i32, i32
  }
  func.func @transform_9(%arg0: i32, %arg1: i32) -> (i32, i32) {
    %c0_i32 = arith.constant 0 : i32
    %c0_i32_0 = arith.constant 0 : i32
    %c0_i32_1 = arith.constant 0 : i32
    return %c0_i32, %c0_i32_0 : i32, i32
  }
  func.func @transform_10(%arg0: i32, %arg1: i32) -> (i32, i32) {
    %c0_i32 = arith.constant 0 : i32
    %c0_i32_0 = arith.constant 0 : i32
    %c0_i32_1 = arith.constant 0 : i32
    return %c0_i32, %c0_i32_0 : i32, i32
  }
  func.func @transform_11(%arg0: i32, %arg1: i32) -> (i32, i32) {
    %c0_i32 = arith.constant 0 : i32
    %c0_i32_0 = arith.constant 0 : i32
    %c0_i32_1 = arith.constant 0 : i32
    return %c0_i32, %c0_i32_0 : i32, i32
  }
  func.func @transform_12(%arg0: i32, %arg1: i32) -> (i32, i32) {
    %c0_i32 = arith.constant 0 : i32
    %c0_i32_0 = arith.constant 0 : i32
    %c0_i32_1 = arith.constant 0 : i32
    return %c0_i32, %c0_i32_0 : i32, i32
  }
  func.func @transform_13(%arg0: i32, %arg1: i32) -> (i32, i32) {
    %c0_i32 = arith.constant 0 : i32
    %c0_i32_0 = arith.constant 0 : i32
    %c0_i32_1 = arith.constant 0 : i32
    return %c0_i32, %c0_i32_0 : i32, i32
  }
  func.func @transform_14(%arg0: i32, %arg1: i32) -> (i32, i32) {
    %c0_i32 = arith.constant 0 : i32
    %c0_i32_0 = arith.constant 0 : i32
    %c0_i32_1 = arith.constant 0 : i32
    return %c0_i32, %c0_i32_0 : i32, i32
  }
  func.func @transform_15(%arg0: i32, %arg1: i32) -> (i32, i32) {
    %c0_i32 = arith.constant 0 : i32
    %c0_i32_0 = arith.constant 0 : i32
    %c0_i32_1 = arith.constant 0 : i32
    return %c0_i32, %c0_i32_0 : i32, i32
  }
  func.func @transform_16(%arg0: i32, %arg1: i32) -> (i32, i32) {
    %c0_i32 = arith.constant 0 : i32
    %c0_i32_0 = arith.constant 0 : i32
    %c0_i32_1 = arith.constant 0 : i32
    return %c0_i32, %c0_i32_0 : i32, i32
  }
  func.func @transform_17(%arg0: i32, %arg1: i32) -> (i32, i32, i32) {
    %c0_i32 = arith.constant 0 : i32
    %c0_i32_0 = arith.constant 0 : i32
    %c0_i32_1 = arith.constant 0 : i32
    return %arg0, %c0_i32, %c0_i32_0 : i32, i32, i32
  }
}

</mosaic_0001>

<bundles_post_ra>
// kernel: _forward_impl.1
= control target key start
LH: loop header
LB: loop body
LE: loop exit
PB: predicated region body
PF: predicated region fallthrough
CT: control target
= control target key end

     0   :  { %s9118_s0 = inlined_call_operand.vmem [shape: f32[2,16,128], index: 0, kind: input, shape index: {}]   ;;  %s9119_s1 = inlined_call_operand.vmem [shape: f32[128,256], index: 1, kind: input, shape index: {}]   ;;  %s9120_s2 = inlined_call_operand.vmem [shape: f32[1,256], index: 2, kind: input, shape index: {}]   ;;  %s9121_s3 = inlined_call_operand.vmem [shape: f32[256,256], index: 3, kind: input, shape index: {}]   ;;  %s9122_s4 = inlined_call_operand.vmem [shape: f32[1,256], index: 4, kind: input, shape index: {}]   ;;  %s9123_s5 = inlined_call_operand.hbm [shape: bf16[2,864,256], index: 5, kind: input, shape index: {}]   ;;  %s9124_s6 = inlined_call_operand.vmem [shape: f32[2,1,256], index: 6, kind: input, shape index: {}]   ;;  %s9125_s7 = inlined_call_operand.hbm [shape: bf16[2,864,256], index: 7, kind: input, shape index: {}]   ;;  %s9126_s8 = inlined_call_operand.vmem [shape: f32[2,1,256], index: 8, kind: input, shape index: {}]   ;;  %s9127_s9 = inlined_call_operand.vmem [shape: f32[256,256], index: 9, kind: input, shape index: {}]   ;;  %s9128_s10 = inlined_call_operand.vmem [shape: f32[1,256], index: 10, kind: input, shape index: {}]   ;;  %s9129_s11 = inlined_call_operand.vmem [shape: f32[256,128], index: 11, kind: input, shape index: {}]   ;;  %s9130_s12 = inlined_call_operand.vmem [shape: f32[1,128], index: 12, kind: input, shape index: {}]   ;;  %s9131_s13 = inlined_call_operand.vmem [shape: f32[256,64], index: 13, kind: input, shape index: {}]   ;;  %s9132_s14 = inlined_call_operand.vmem [shape: f32[256,64], index: 14, kind: input, shape index: {}]   ;;  %s9133_s15 = inlined_call_operand.hbm [shape: f32[64,256], index: 15, kind: input, shape index: {}]   ;;  %s9134_s16 = inlined_call_operand.hbm [shape: f32[64,256], index: 16, kind: input, shape index: {}]   ;;  %s9135_s17 = inlined_call_operand.vmem [shape: f32[2,16,128], index: 17, kind: output, shape index: {}]  }
   0x1   :  { %9155 = sst [smem:[#allocation17_spill]] %s9118_s0 }
   0x2   :  { %9156 = sst [smem:[#allocation18_spill]] %s9119_s1 }
   0x3   :  { %9157 = sst [smem:[#allocation19_spill]] %s9120_s2 }
   0x4   :  { %9158 = sst [smem:[#allocation20_spill]] %s9121_s3 }
   0x5   :  { %9159 = sst [smem:[#allocation21_spill]] %s9122_s4 }
   0x6   :  { %9160 = sst [smem:[#allocation22_spill]] %s9123_s5 }
   0x7   :  { %9161 = sst [smem:[#allocation23_spill]] %s9127_s9 }
   0x8   :  { %9162 = sst [smem:[#allocation24_spill]] %s9128_s10 }
   0x9   :  { %9163 = sst [smem:[#allocation25_spill]] %s9129_s11 }
   0xa   :  { %9164 = sst [smem:[#allocation26_spill]] %s9130_s12 }
   0xb   :  { %9165 = sst [smem:[#allocation27_spill]] %s9131_s13 }
   0xc   :  { %9166 = sst [smem:[#allocation28_spill]] %s9132_s14 }
   0xd   :  { %9167 = sst [smem:[#allocation29_spill]] %s9133_s15 }
   0xe   :  { %9168 = sst [smem:[#allocation30_spill]] %s9134_s16 }
   0xf   :  { %22 = vsyncpa [#allocation5], 0 }
  0x10   :  { %24 = vsyncpa [#allocation5 + $0x1], 0 }
  0x11   :  { %25 = vsyncpa [#allocation7], 0 }
  0x12   :  { %27 = vsyncpa [#allocation7 + $0x1], 0 }
  0x13   :  { %28 = vsyncpa [#allocation10], 0  ;;  %s7022_s24 = smov 0   ;;  %s7024_s25 = smov 0  }
  0x14   :  { %s7026_s26 = smov 0   ;;  %s7028_s27 = smov 0  }
  0x15   :  { %s7030_s28 = smov 0   ;;  %s7032_s29 = smov 0  }
  0x16   :  { %s7034_s0 = smov 0   ;;  %s7036_s30 = smov 0  }
  0x17 LB: > { %s9137_s18 = sadd.s32 4294967295, %s6915_s30   ;;  %p176_p0 = scmp.ne.s32.totalorder %s6891_s25, %s6887_s24  ;;  %s6915_s30 = sphi %s7036_s30, %s34_s30   ;;  %s6911_s0 = sphi %s7034_s0, %s9208_s0   ;;  %s6907_s29 = sphi %s7032_s29, %s9207_s29   ;;  %s6903_s28 = sphi %s7030_s28, %s9206_s28   ;;  %s6899_s27 = sphi %s7028_s27, %s9205_s27   ;;  %s6895_s26 = sphi %s7026_s26, %s9204_s26   ;;  %s6891_s25 = sphi %s7024_s25, %s9203_s25   ;;  %s6887_s24 = sphi %s7022_s24, %s9202_s24  }
  0x18   : > { %p7064_p1 = scmp.eq.s32.totalorder %s9137_s18, 0  ;;  %p5028_p2 = scmp.ge.s32.totalorder %s6915_s30, 1 }
  0x19   : > { %p459_p3 = scmp.lt.s32.totalorder %s6915_s30, 5  ;;  %s6917_s21 = smov [#allocation8]  }
  0x1a   : > { %s9169_s19 = scalar_select %p7064_p1, 1, 0 }
  0x1b   : > { %p7072_p4 = por %p7064_p1, %p176_p0  ;;  %p7076_p5 = pnand %p5028_p2, %p459_p3 }
  0x1c   : > { %s501_s22 = sshll.u32 %s6917_s21, 4  ;;  %s6918_s24 = smov [#allocation9]   ;;  %s502_s22 = int_to_ptr.vmem [resolvable:$true] %s501_s22 }
  0x1d   : > { %s9170_s1 = scalar_select %p7072_p4, 1, 0 }
  0x1e   : > { %s9171_s20 = scalar_select %p7076_p5, 1, 0 }
  0x1f   : > { %p6173_p6 = pneg %p7076_p5  ;;  %s514_s18 = sshll.u32 %s6918_s24, 4  ;;  %s7088_s18 = int_to_ptr.vmem [resolvable:$true] %s514_s18 }
  0x20   : > { %s9173_s15 = sld [smem:[#allocation29_spill]] }
  0x21   : > { %p7084_p7 = pnand %p6173_p6, %p7064_p1 }
  0x23   : > { %p6723_p9 = pneg %p7084_p7 }
  0x26   : > { %s6721_s10 = scalar_lea.hbm %s9173_s15, 2048 }
  0x27   : > { %p6722_p8 = scmp.ne.s32.totalorder %s9173_s15, %s6721_s10  ;;  %p6728_p12 = scmp.lt.u32.totalorder %s6721_s10, %s9173_s15 }
  0x29   : > { %p6724_p10 = pnand %p6723_p9, %p6722_p8 }
  0x2b   : > { %p6725_p11 = pneg %p6724_p10 }
  0x2d   : > { %p6730_p13 = pnand %p6728_p12, %p6725_p11 }
  0x2f   : > { %6733 = shalt.err (!%p6730_p13)
}
  0x30   : > { %s6734_s24 = scalar_lea.vmem %s502_s22, 2048  ;;  %p6742_p6 = scmp.lt.s32.totalorder %s502_s22, %s502_s22 }
  0x31   : > { %p6735_p0 = scmp.ne.s32.totalorder %s502_s22, %s6734_s24  ;;  %p6743_p1 = scmp.lt.s32.totalorder %s6734_s24, %s6734_s24 }
  0x33   : > { %p6737_p2 = pnand %p6735_p0, %p6723_p9  ;;  %p6744_p4 = por %p6743_p1, %p6742_p6 }
  0x35   : > { %p6738_p3 = pneg %p6737_p2 }
  0x37   : > { %p6745_p5 = pnand %p6744_p4, %p6738_p3 }
  0x39   : > { %6748 = shalt.err (!%p6745_p5)
}
  0x3a   : > { %s6919_s9 = smov 256   ;;  %s6920_s11 = smov 16  }
  0x3b   : > { %6176 = dma.hbm_to_vmem [thread:$0]  (!%p7084_p7), %s9173_s15, 2048, %s502_s22, [#allocation7], %s6919_s9, %s6919_s9, %s6920_s11  }
  0x3c   : > { %s9174_s16 = sld [smem:[#allocation30_spill]] }
  0x42   : > { %s6749_s21 = scalar_lea.hbm %s9174_s16, 2048 }
  0x43   : > { %p6750_p8 = scmp.ne.s32.totalorder %s9174_s16, %s6749_s21  ;;  %p6756_p5 = scmp.lt.u32.totalorder %s6749_s21, %s9174_s16 }
  0x45   : > { %p6752_p1 = pnand %p6750_p8, %p6723_p9 }
  0x47   : > { %p6753_p4 = pneg %p6752_p1 }
  0x49   : > { %p6758_p10 = pnand %p6756_p5, %p6753_p4 }
  0x4b   : > { %6761 = shalt.err (!%p6758_p10)
}
  0x4c   : > { %s6762_s22 = scalar_lea.vmem %s7088_s18, 2048  ;;  %p6770_p0 = scmp.lt.s32.totalorder %s7088_s18, %s7088_s18 }
  0x4d   : > { %p6763_p11 = scmp.ne.s32.totalorder %s7088_s18, %s6762_s22  ;;  %p6771_p2 = scmp.lt.s32.totalorder %s6762_s22, %s6762_s22 }
  0x4f   : > { %p6765_p12 = pnand %p6763_p11, %p6723_p9  ;;  %p6772_p3 = por %p6771_p2, %p6770_p0 }
  0x51   : > { %p6766_p13 = pneg %p6765_p12 }
  0x53   : > { %p6773_p6 = pnand %p6772_p3, %p6766_p13 }
  0x55   : > { %6776 = shalt.err (!%p6773_p6)
}
  0x56   : > { %6179 = dma.hbm_to_vmem [thread:$0]  (!%p7084_p7), %s9174_s16, 2048, %s7088_s18, [#allocation10], %s6919_s9, %s6919_s9, %s6920_s11  }
  0x57   : > { %s43_s14 = sadd.s32 1, %s6907_s29  ;;  %s46_s4 = sadd.s32 1, %s6911_s0 }
  0x58   : > { %p44_p9 = scmp.ge.s32.totalorder %s43_s14, 2  ;;  %s163_s23 = sadd.s32 1, %s6895_s26 }
  0x59   : > { %p170_p8 = scmp.ne.s32.totalorder %s6895_s26, %s6891_s25  ;;  %p171_p1 = scmp.eq.s32.totalorder %s6915_s30, 0 }
  0x5a   : > { %s9210_s14 = smov (%p44_p9, %s43_s14), 0  ;;  %s9212_s4 = smov (!%p44_p9, %s46_s4), %s6911_s0 }
  0x5b   : > { %9175 = sst [smem:[#allocation15_spill]] %s9210_s14  ;;  %s160_s10 = ssub.s32 %s6907_s29, %s9210_s14 }
  0x5c   : > { %p172_p4 = por %p171_p1, %p170_p8  ;;  %p48_p5 = scmp.ge.s32.totalorder %s9212_s4, 2 }
  0x5d   : > { %p161_p10 = scmp.eq.s32.totalorder %s160_s10, 0  ;;  %p6189_p11 = scmp.lt.s32.totalorder %s6915_s30, 4 }
  0x5e   : > { %s536_s18 = sand.u32 1, %s6895_s26   ;;  %s9214_s4 = smov (%p48_p5, %s9212_s4), 0 }
  0x5f   : > { %9176 = sst [smem:[#allocation16_spill]] %s9214_s4  ;;  %s7155_s11 = smul.u32 864, %s536_s18 }
  0x60   : > { %s7153_s9 = scalar_select %p161_p10, %s6895_s26, %s163_s23  }
  0x61   : > { %s9149_s12 = smul.u32 13824, %s6907_s29  ;;  %p7158_p7 = pnand %p6189_p11, %p172_p4 }
  0x62   : > { %s9178_s5 = sld [smem:[#allocation22_spill]]  ;;  %s540_s2 = scalar_lea.vmem [#allocation4], %s7155_s11 }
  0x63   : > { %s547_s3 = sshll.u32 %s540_s2, 4  ;;  %s564_s23 = sand.u32 1, %s6915_s30   ;;  %s7170_s3 = int_to_ptr.vmem [resolvable:$true] %s547_s3 }
  0x64   : > { %s7173_s10 = scalar_lea.sflag [#allocation5], %s536_s18  ;;  %p6779_p13 = pneg %p7158_p7 }
  0x68   : > { %s7167_s22 = scalar_lea.hbm %s9178_s5, %s9149_s12  ;;  %s6782_s12 = scalar_lea.hbm %s9178_s5, 27648 }
  0x69   : > { %s6777_s15 = scalar_lea.hbm %s7167_s22, 13824  ;;  %p6783_p3 = scmp.lt.u32.totalorder %s7167_s22, %s9178_s5 }
  0x6a   : > { %p6778_p12 = scmp.ne.s32.totalorder %s7167_s22, %s6777_s15  ;;  %p6784_p6 = scmp.lt.u32.totalorder %s6782_s12, %s6777_s15 }
  0x6b   : > { %p6786_p8 = scmp.lt.u32.totalorder %s6777_s15, %s7167_s22 }
  0x6c   : > { %p6780_p0 = pnand %p6779_p13, %p6778_p12  ;;  %p6785_p9 = por %p6784_p6, %p6783_p3 }
  0x6e   : > { %p6781_p2 = pneg %p6780_p0  ;;  %p6787_p1 = por %p6786_p8, %p6785_p9 }
  0x70   : > { %p6788_p4 = pnand %p6787_p1, %p6781_p2 }
  0x72   : > { %6791 = shalt.err (!%p6788_p4)
}
  0x73   : > { %s6792_s18 = scalar_lea.vmem %s7170_s3, 13824  ;;  %s6921_s2 = smov [#allocation4]  }
  0x74   : > { %p6793_p5 = scmp.ne.s32.totalorder %s7170_s3, %s6792_s18  ;;  %s6797_s21 = sshll.u32 %s6921_s2, 4  ;;  %s6798_s21 = int_to_ptr.vmem [resolvable:$false] %s6797_s21 }
  0x75   : > { %s6799_s16 = scalar_lea.vmem %s6798_s21, 27648  ;;  %p6800_p12 = scmp.lt.s32.totalorder %s7170_s3, %s6798_s21 }
  0x76   : > { %p6795_p10 = pnand %p6793_p5, %p6779_p13  ;;  %p6801_p0 = scmp.lt.s32.totalorder %s6799_s16, %s6792_s18 }
  0x78   : > { %p6796_p11 = pneg %p6795_p10  ;;  %p6802_p3 = por %p6801_p0, %p6800_p12 }
  0x7a   : > { %p6803_p6 = pnand %p6802_p3, %p6796_p11 }
  0x7c   : > { %6806 = shalt.err (!%p6803_p6)
}
  0x7d   : > { %s6922_s15 = smov 128   ;;  %s6923_s4 = smov 8  }
  0x7e   : > { %6183 = dma.hbm_to_vmem [thread:$0]  (!%p7158_p7), %s7167_s22, 13824, %s7170_s3, %s7173_s10, %s6922_s15, %s6922_s15, %s6923_s4  }
  0x7f   : > { %s9179_s12 = smul.u32 13824, %s6907_s29  ;;  %s568_s21 = scalar_lea.vmem [#allocation6], %s7155_s11 }
  0x80   : > { %s575_s16 = sshll.u32 %s568_s21, 4  ;;  %s7216_s5 = scalar_lea.sflag [#allocation7], %s564_s23  ;;  %s7212_s16 = int_to_ptr.vmem [resolvable:$true] %s575_s16 }
  0x81   : > { %s7209_s2 = scalar_lea.hbm %s9125_s7, %s9179_s12  ;;  %s6812_s10 = scalar_lea.hbm %s9125_s7, 27648 }
  0x82   : > { %s6807_s14 = scalar_lea.hbm %s7209_s2, 13824  ;;  %p6813_p1 = scmp.lt.u32.totalorder %s7209_s2, %s9125_s7 }
  0x83   : > { %p6808_p2 = scmp.ne.s32.totalorder %s7209_s2, %s6807_s14  ;;  %p6814_p4 = scmp.lt.u32.totalorder %s6812_s10, %s6807_s14 }
  0x84   : > { %p6816_p10 = scmp.lt.u32.totalorder %s6807_s14, %s7209_s2 }
  0x85   : > { %p6810_p9 = pnand %p6808_p2, %p6779_p13  ;;  %p6815_p5 = por %p6814_p4, %p6813_p1 }
  0x87   : > { %p6811_p8 = pneg %p6810_p9  ;;  %p6817_p11 = por %p6816_p10, %p6815_p5 }
  0x89   : > { %p6818_p12 = pnand %p6817_p11, %p6811_p8 }
  0x8b   : > { %6821 = shalt.err (!%p6818_p12)
}
  0x8c   : > { %s6822_s11 = scalar_lea.vmem %s7212_s16, 13824  ;;  %s6924_s23 = smov [#allocation6]  }
  0x8d   : > { %p6823_p0 = scmp.ne.s32.totalorder %s7212_s16, %s6822_s11  ;;  %s6827_s18 = sshll.u32 %s6924_s23, 4  ;;  %s6828_s18 = int_to_ptr.vmem [resolvable:$false] %s6827_s18 }
  0x8e   : > { %s6829_s21 = scalar_lea.vmem %s6828_s18, 27648  ;;  %p6830_p2 = scmp.lt.s32.totalorder %s7212_s16, %s6828_s18 }
  0x8f   : > { %p6825_p3 = pnand %p6823_p0, %p6779_p13  ;;  %p6831_p9 = scmp.lt.s32.totalorder %s6829_s21, %s6822_s11 }
  0x91   : > { %p6826_p6 = pneg %p6825_p3  ;;  %p6832_p1 = por %p6831_p9, %p6830_p2 }
  0x93   : > { %p6833_p4 = pnand %p6832_p1, %p6826_p6 }
  0x95   : > { %6836 = shalt.err (!%p6833_p4)
}
  0x96   : > { %6186 = dma.hbm_to_vmem [thread:$0]  (!%p7158_p7), %s7209_s2, 13824, %s7212_s16, %s7216_s5, %s6922_s15, %s6922_s15, %s6923_s4  }
  0x97   : > { %p9180_p13 = scmp.ne.s32.totalorder %s9171_s20, 0 }
  0x98   : > { %s596_s14 = sand.u32 (!%p9180_p13), 1, %s6891_s25   ;;  %p9181_p8 = scmp.ne.s32.totalorder (!%p9180_p13), %s9170_s1, 0 }
  0x99   : > { %594 = sbr.rel (%p9180_p13) target bundleno = 5549 (0x15ad), region = 88  ;;  %s597_s3 = scalar_lea.sflag (!%p9180_p13), [#allocation5], %s596_s14 }
  0x9a   : > { %s6160_s22 = smul.u32 (!%p9180_p13), 864, %s596_s14 }
  0x9c   : > { %s7248_s10 = scalar_lea.vmem (!%p9180_p13), [#allocation4], %s6160_s22 }
  0xa0   : > { %6870 = dma.done.wait (%p9181_p8), %s597_s3, 13824  }
  0xa1   : > { %6872 = vsyncadd (%p9181_p8), %s597_s3, 4294953472  ;;  %s9182_s13 = sadd.s32 4294967295, %s6915_s30   ;;  %s7256_s15 = scalar_lea.vmem [#allocation6], %s6160_s22 }
  0xa2   : > { %s605_s12 = sand.u32 1, %s9182_s13  }
  0xa3   : > { %s606_s5 = scalar_lea.sflag [#allocation7], %s605_s12 }
  0xa4   : > { %6874 = dma.done.wait (%p9181_p8), %s606_s5, 13824  }
  0xa5   : > { %6876 = vsyncadd (%p9181_p8), %s606_s5, 4294953472  ;;  %p9183_p7 = scmp.ne.s32.totalorder %s9169_s19, 0 }
  0xa7   : > { %6878 = dma.done.wait (%p9183_p7), [#allocation7], 2048  }
  0xa8   : > { %6880 = vsyncadd (%p9183_p7), [#allocation7], 4294965248 }
  0xa9   : > { %6882 = dma.done.wait (%p9183_p7), [#allocation10], 2048  }
  0xaa   : > { %6884 = vsyncadd (%p9183_p7), [#allocation10], 4294965248  ;;  %p686_p5 = scmp.lt.s32.totalorder %s6903_s28, 1  ;;  %p691_p10 = scmp.lt.s32.totalorder %s6899_s27, 1 }
  0xab   : > { %s9184_s16 = sld [smem:[#allocation17_spill]]  ;;  %p5043_p11 = scmp.ne.s32.totalorder %s6899_s27, 0 }
  0xac   : > { %s9216_s28 = smov (!%p686_p5, %s6903_s28), 1  ;;  %vm711_vm0 = vcmask (!%p5043_p11), 261120   ;;  %vm718_vm1 = vcmask (!%p5043_p11), 254976   ;;  %v6925_v7 = vmov (!%p5043_p11), 0.0   ;;  %s9186_s2 = sld [smem:[#allocation28_spill]] (!%p5043_p11)  ;;  %vm988_vm2 = vcmask (!%p5043_p11), 523264  }
  0xad   : > { %s692_s1 = scalar_select %p691_p10, %s6899_s27, 1 }
  0xae   : > { %s5290_s20 = sshll.u32 %s9216_s28, 4  ;;  %708 = sbr.rel (%p5043_p11) target bundleno = 1588 (0x634), region = 108  ;;  %709 = vst [vmem:[#allocation3] sm:$0xff] (!%p5043_p11), %v6925_v7  ;;  %710 = vst [vmem:[#allocation3 + $0x8] sm:$0xff] (!%p5043_p11), %v6925_v7  ;;  %830 = vmatprep.mubr.f32.mxu0 (!%p5043_p11), %v6925_v7 }
  0xaf   : > { %s5039_s11 = sshll.u32 %s692_s1, 1  ;;  %s7292_s28 = scalar_lea.vmem %s9135_s17, %s5290_s20  ;;  %712 = vst.msk [vmem:[#allocation3 + $0x10] sm:$0xff] (!%p5043_p11), %vm711_vm0, %v6925_v7  ;;  %713 = vst [vmem:[#allocation3 + $0x18] sm:$0xff] (!%p5043_p11), %v6925_v7 }
  0xb0   : > { %s7282_s19 = scalar_lea.vmem %s9124_s6, %s5039_s11  ;;  %s7287_s22 = scalar_lea.vmem %s9126_s8, %s5039_s11  ;;  %715 = vst.msk [vmem:[#allocation3 + $0x28] sm:$0xff] (!%p5043_p11), %vm711_vm0, %v6925_v7  ;;  %716 = vst [vmem:[#allocation3 + $0x30] sm:$0x3] (!%p5043_p11), %v6925_v7 }
  0xb1   : > { %s7277_s24 = scalar_lea.vmem %s9184_s16, %s5290_s20  ;;  %s9185_s1 = sld [smem:[#allocation18_spill]] (!%p5043_p11)  ;;  %717 = vst [vmem:[#allocation3 + $0x38] sm:$0x3] (!%p5043_p11), %v6925_v7  ;;  %719 = vst.msk [vmem:[#allocation3 + $0x40] sm:$0x3] (!%p5043_p11), %vm718_vm1, %v6925_v7 }
  0xb2   : > { %v859_v28 = vld [vmem:[%s9186_s2 + $0x80] sm:$0xff] (!%p5043_p11)  ;;  %v860_v29 = vld [vmem:[%s9186_s2 + $0x88] sm:$0xff] (!%p5043_p11)  ;;  %v861_v35 = vld [vmem:[%s9186_s2 + $0x90] sm:$0xff] (!%p5043_p11)  ;;  %s9187_s11 = sld [smem:[#allocation19_spill]] (!%p5043_p11)  ;;  %s9188_s21 = sld [smem:[#allocation20_spill]] (!%p5043_p11) }
  0xb3   : > { %v7373_v32 = vpack.c.bf16 (!%p5043_p11), %v860_v29, %v859_v28  ;;  %v843_v33 = vld [vmem:[%s9186_s2] sm:$0xff] (!%p5043_p11)  ;;  %v844_v34 = vld [vmem:[%s9186_s2 + $0x8] sm:$0xff] (!%p5043_p11)  ;;  %v862_v38 = vld [vmem:[%s9186_s2 + $0x98] sm:$0xff] (!%p5043_p11) }
  0xb4   : > { %v7384_v37 = vpack.c.bf16 (!%p5043_p11), %v844_v34, %v843_v33  ;;  %v845_v39 = vld [vmem:[%s9186_s2 + $0x10] sm:$0xff] (!%p5043_p11)  ;;  %v846_v40 = vld [vmem:[%s9186_s2 + $0x18] sm:$0xff] (!%p5043_p11)  ;;  %v7399_v42 = vpack.c.bf16 (!%p5043_p11), %v862_v38, %v861_v35  ;;  %v863_v43 = vld [vmem:[%s9186_s2 + $0xa0] sm:$0xff] (!%p5043_p11)  ;;  %v756_v38 = vlaneseq (!%p5043_p11) }
  0xb5   : > { %5629 = vmatprep.subr.bf16.mxu1 %v7373_v32  ;;  %v864_v44 = vld [vmem:[%s9186_s2 + $0xa8] sm:$0xff]  ;;  %v7408_v45 = vpack.c.bf16 %v846_v40, %v845_v39  ;;  %v847_v49 = vld [vmem:[%s9186_s2 + $0x20] sm:$0xff]  ;;  %v865_v53 = vld [vmem:[%s9186_s2 + $0xb0] sm:$0xff] }
  0xb6   : > { %5631 = vmatpush3.bf16.msra.mxu1 %v7384_v37  ;;  %v7414_v48 = vpack.c.bf16 %v864_v44, %v863_v43  ;;  %v848_v50 = vld [vmem:[%s9186_s2 + $0x28] sm:$0xff]  ;;  %v866_v54 = vld [vmem:[%s9186_s2 + $0xb8] sm:$0xff]  ;;  %v849_v61 = vld [vmem:[%s9186_s2 + $0x30] sm:$0xff]  ;;  %v7548_v39 = vshrl.u32 %v756_v38, 7 }
  0xb7   : > { %v723_v0 = vld [vmem:[%s9185_s1 + $0x8] sm:$0xff]  ;;  %v725_v1 = vld [vmem:[%s9185_s1 + $0x18] sm:$0xff]  ;;  %v722_v2 = vld [vmem:[%s9185_s1] sm:$0xff]  ;;  %5633 = vmatprep.subr.bf16.mxu1 %v7399_v42  ;;  %v7438_v57 = vpack.c.bf16 %v848_v50, %v847_v49  ;;  %v7444_v60 = vpack.c.bf16 %v866_v54, %v865_v53 }
  0xb8   : > { %v5596_v3 = vpack.c.bf16 %v725_v1, %v723_v0  ;;  %v724_v4 = vld [vmem:[%s9185_s1 + $0x10] sm:$0xff]  ;;  %v727_v5 = vld [vmem:[%s9185_s1 + $0x28] sm:$0xff]  ;;  %v729_v6 = vld [vmem:[%s9185_s1 + $0x38] sm:$0xff]  ;;  %v762_v40 = vsub.s32 1, %v7548_v39  ;;  %v758_v43 = vsub.s32 0, %v7548_v39 }
  0xb9   : > { %v5598_v8 = vpack.c.bf16 %v724_v4, %v722_v2  ;;  %v5600_v9 = vpack.c.bf16 %v729_v6, %v727_v5  ;;  %v726_v10 = vld [vmem:[%s9185_s1 + $0x20] sm:$0xff]  ;;  %v728_v11 = vld [vmem:[%s9185_s1 + $0x30] sm:$0xff]  ;;  %v731_v12 = vld [vmem:[%s9185_s1 + $0x48] sm:$0xff] }
  0xba   : > { %5597 = vmatprep.subr.bf16.mxu0 %v5596_v3  ;;  %v733_v13 = vld [vmem:[%s9185_s1 + $0x58] sm:$0xff]  ;;  %v5602_v14 = vpack.c.bf16 %v728_v11, %v726_v10  ;;  %v730_v16 = vld [vmem:[%s9185_s1 + $0x40] sm:$0xff]  ;;  %v732_v17 = vld [vmem:[%s9185_s1 + $0x50] sm:$0xff]  ;;  %5635 = vmatpush3.bf16.msra.mxu1 %v7408_v45 }
  0xbb   : > { %5599 = vmatpush1.bf16.msra.mxu0 %v5598_v8  ;;  %v5604_v15 = vpack.c.bf16 %v733_v13, %v731_v12  ;;  %v735_v18 = vld [vmem:[%s9185_s1 + $0x68] sm:$0xff]  ;;  %v737_v19 = vld [vmem:[%s9185_s1 + $0x78] sm:$0xff]  ;;  %v5606_v20 = vpack.c.bf16 %v732_v17, %v730_v16  ;;  %v734_v22 = vld [vmem:[%s9185_s1 + $0x60] sm:$0xff]  ;;  %5637 = vmatprep.subr.bf16.mxu1 %v7414_v48 }
  0xbc   : > { %5601 = vmatprep.subr.bf16.mxu0 %v5600_v9  ;;  %v5608_v21 = vpack.c.bf16 %v737_v19, %v735_v18  ;;  %v736_v23 = vld [vmem:[%s9185_s1 + $0x70] sm:$0xff]  ;;  %v739_v24 = vld [vmem:[%s9185_s1 + $0x88] sm:$0xff]  ;;  %v741_v25 = vld [vmem:[%s9185_s1 + $0x98] sm:$0xff] }
  0xbd   : > { %v738_v26 = vld [vmem:[%s9185_s1 + $0x80] sm:$0xff]  ;;  %v740_v27 = vld [vmem:[%s9185_s1 + $0x90] sm:$0xff]  ;;  %v5610_v30 = vpack.c.bf16 %v736_v23, %v734_v22  ;;  %v743_v31 = vld [vmem:[%s9185_s1 + $0xa8] sm:$0xff]  ;;  %v5612_v36 = vpack.c.bf16 %v741_v25, %v739_v24 }
  0xbe   : > { %v745_v41 = vld [vmem:[%s9185_s1 + $0xb8] sm:$0xff]  ;;  %v5614_v46 = vpack.c.bf16 %v740_v27, %v738_v26  ;;  %v742_v47 = vld [vmem:[%s9185_s1 + $0xa0] sm:$0xff]  ;;  %v744_v52 = vld [vmem:[%s9185_s1 + $0xb0] sm:$0xff]  ;;  %5639 = vmatpush3.bf16.msra.mxu1 %v7438_v57 }
  0xbf   : > { %5603 = vmatpush1.bf16.msra.mxu0 %v5602_v14  ;;  %v5616_v51 = vpack.c.bf16 %v745_v41, %v743_v31  ;;  %v747_v55 = vld [vmem:[%s9185_s1 + $0xc8] sm:$0xff]  ;;  %v749_v56 = vld [vmem:[%s9185_s1 + $0xd8] sm:$0xff]  ;;  %v5618_v58 = vpack.c.bf16 %v744_v52, %v742_v47  ;;  %v746_v59 = vld [vmem:[%s9185_s1 + $0xc0] sm:$0xff]  ;;  %5641 = vmatprep.subr.bf16.mxu1 %v7444_v60 }
  0xc0   : > { %5605 = vmatprep.subr.bf16.mxu0 %v5604_v15  ;;  %v850_v62 = vld [vmem:[%s9186_s2 + $0x38] sm:$0xff]  ;;  %v5620_v63 = vpack.c.bf16 %v749_v56, %v747_v55  ;;  %v748_v0 = vld [vmem:[%s9185_s1 + $0xd0] sm:$0xff]  ;;  %v867_v1 = vld [vmem:[%s9186_s2 + $0xc0] sm:$0xff] }
  0xc1   : > { %v868_v2 = vld [vmem:[%s9186_s2 + $0xc8] sm:$0xff]  ;;  %v753_v4 = vld [vmem:[%s9185_s1 + $0xf8] sm:$0xff]  ;;  %v7468_v5 = vpack.c.bf16 %v850_v62, %v849_v61  ;;  %v5622_v6 = vpack.c.bf16 %v748_v0, %v746_v59  ;;  %v750_v8 = vld [vmem:[%s9185_s1 + $0xe0] sm:$0xff] }
  0xc2   : > { %v751_v3 = vld [vmem:[%s9185_s1 + $0xe8] sm:$0xff]  ;;  %v7474_v9 = vpack.c.bf16 %v868_v2, %v867_v1  ;;  %v851_v10 = vld [vmem:[%s9186_s2 + $0x40] sm:$0xff]  ;;  %v752_v13 = vld [vmem:[%s9185_s1 + $0xf0] sm:$0xff] }
  0xc3   : > { %5607 = vmatpush1.bf16.msra.mxu0 %v5606_v20  ;;  %v852_v11 = vld [vmem:[%s9186_s2 + $0x48] sm:$0xff]  ;;  %v5624_v12 = vpack.c.bf16 %v753_v4, %v751_v3  ;;  %v869_v14 = vld [vmem:[%s9186_s2 + $0xd0] sm:$0xff]  ;;  %v870_v15 = vld [vmem:[%s9186_s2 + $0xd8] sm:$0xff]  ;;  %5643 = vmatpush3.bf16.msra.mxu1 %v7468_v5  ;;  %v5626_v17 = vpack.c.bf16 %v752_v13, %v750_v8 }
  0xc4   : > { %5609 = vmatprep.subr.bf16.mxu0 %v5608_v21  ;;  %v7492_v16 = vpack.c.bf16 %v852_v11, %v851_v10  ;;  %5645 = vmatprep.subr.bf16.mxu1 %v7474_v9  ;;  %v7495_v18 = vpack.c.bf16 %v870_v15, %v869_v14  ;;  %v853_v19 = vld [vmem:[%s9186_s2 + $0x50] sm:$0xff]  ;;  %v854_v20 = vld [vmem:[%s9186_s2 + $0x58] sm:$0xff]  ;;  %v871_v21 = vld [vmem:[%s9186_s2 + $0xe0] sm:$0xff] }
  0xc5   : > { %v872_v22 = vld [vmem:[%s9186_s2 + $0xe8] sm:$0xff]  ;;  %v7510_v23 = vpack.c.bf16 %v854_v20, %v853_v19  ;;  %v720_v24 = vld [vmem:[%s7277_s24] sm:$0xff]  ;;  %v874_v31 = vld [vmem:[%s9186_s2 + $0xf8] sm:$0xff] }
  0xc6   : > { %v7514_v25 = vpack.c.bf16 %v872_v22, %v871_v21  ;;  %v855_v26 = vld [vmem:[%s9186_s2 + $0x60] sm:$0xff]  ;;  %v856_v27 = vld [vmem:[%s9186_s2 + $0x68] sm:$0xff]  ;;  %v857_v34 = vld [vmem:[%s9186_s2 + $0x70] sm:$0xff] }
  0xc7   : > { %5611 = vmatpush1.bf16.msra.mxu0 %v5610_v30  ;;  %5647 = vmatpush3.bf16.msra.mxu1 %v7492_v16  ;;  %v7523_v28 = vpack.c.bf16 %v856_v27, %v855_v26  ;;  %v721_v29 = vld [vmem:[%s7277_s24 + $0x8] sm:$0xff]  ;;  %v873_v30 = vld [vmem:[%s9186_s2 + $0xf0] sm:$0xff]  ;;  %v858_v35 = vld [vmem:[%s9186_s2 + $0x78] sm:$0xff]  ;;  %s9189_s2 = sld [smem:[#allocation21_spill]] }
  0xc8   : > { %5613 = vmatprep.subr.bf16.mxu0 %v5612_v36  ;;  %5649 = vmatprep.subr.bf16.mxu1 %v7495_v18  ;;  %v7536_v33 = vpack.c.bf16 %v874_v31, %v873_v30  ;;  %v7544_v36 = vpack.c.bf16 %v858_v35, %v857_v34  ;;  %v754_v41 = vld [vmem:[%s9187_s11] sm:$0x3]  ;;  %v973_v56 = vld [vmem:[#allocation8 + $0x8] sm:$0xff]  ;;  %v972_v61 = vld [vmem:[#allocation8] sm:$0xff] }
  0xc9   : > { %v763_v44 = vrot.slane %v754_v41, %v762_v40  ;;  %v974_v62 = vld [vmem:[#allocation8 + $0x10] sm:$0xff]  ;;  %v977_v0 = vld [vmem:[#allocation8 + $0x28] sm:$0xff]  ;;  %v979_v1 = vld [vmem:[#allocation8 + $0x38] sm:$0xff] }
  0xca   : > { %v7577_v2 = vpack.c.bf16 %v979_v1, %v977_v0  ;;  %v976_v3 = vld [vmem:[#allocation8 + $0x20] sm:$0xff]  ;;  %v978_v4 = vld [vmem:[#allocation8 + $0x30] sm:$0xff]  ;;  %v981_v8 = vld [vmem:[#allocation8 + $0x48] sm:$0xff] }
  0xcb   : > { %5615 = vmatpush1.bf16.msra.mxu0 %v5614_v46  ;;  %5651 = vmatpush3.bf16.msra.mxu1 %v7510_v23  ;;  %v759_v46 = vrot.slane %v754_v41, %v758_v43  ;;  %v983_v10 = vld [vmem:[#allocation8 + $0x58] sm:$0xff]  ;;  %v982_v13 = vld [vmem:[#allocation8 + $0x50] sm:$0xff]  ;;  %v985_v15 = vld [vmem:[#allocation8 + $0x68] sm:$0xff] }
  0xcc   : > { %5617 = vmatprep.subr.bf16.mxu0 %v5616_v51  ;;  %5653 = vmatprep.subr.bf16.mxu1 %v7514_v25  ;;  %v7583_v11 = vpack.c.bf16 %v983_v10, %v981_v8  ;;  %v984_v19 = vld [vmem:[#allocation8 + $0x60] sm:$0xff]  ;;  %v986_v21 = vld [vmem:[#allocation8 + $0x70] sm:$0xff]  ;;  %v1076_v27 = vld [vmem:[%s9188_s21] sm:$0xff] }
  0xcd   : > { %v7591_v22 = vpack.c.bf16 %v986_v21, %v984_v19  ;;  %v1079_v26 = vld [vmem:[%s9188_s21 + $0x18] sm:$0xff]  ;;  %v1078_v30 = vld [vmem:[%s9188_s21 + $0x10] sm:$0xff]  ;;  %v1080_v38 = vld [vmem:[%s9188_s21 + $0x20] sm:$0xff] }
  0xce   : > { %v1083_v31 = vld [vmem:[%s9188_s21 + $0x38] sm:$0xff]  ;;  %v5678_v34 = vpack.c.bf16 %v1078_v30, %v1076_v27  ;;  %v1082_v41 = vld [vmem:[%s9188_s21 + $0x30] sm:$0xff]  ;;  %v1088_v0 = vld [vmem:[%s9188_s21 + $0x60] sm:$0xff] }
  0xcf   : > { %5619 = vmatpush1.bf16.msra.mxu0 %v5618_v58  ;;  %5655 = vmatpush3.bf16.msra.mxu1 %v7523_v28  ;;  %v975_v58 = vld [vmem:[#allocation8 + $0x18] sm:$0xff]  ;;  %v1090_v1 = vld [vmem:[%s9188_s21 + $0x70] sm:$0xff]  ;;  %v1101_v27 = vld [vmem:[%s9188_s21 + $0xc8] sm:$0xff] }
  0xd0   : > { %5621 = vmatprep.subr.bf16.mxu0 %v5620_v63  ;;  %5657 = vmatprep.subr.bf16.mxu1 %v7536_v33  ;;  %v7571_v59 = vpack.c.bf16 %v975_v58, %v973_v56  ;;  %v7573_v63 = vpack.c.bf16 %v974_v62, %v972_v61  ;;  %v1089_v56 = vld [vmem:[%s9188_s21 + $0x68] sm:$0xff]  ;;  %v1091_v58 = vld [vmem:[%s9188_s21 + $0x78] sm:$0xff]  ;;  %v5690_v8 = vpack.c.bf16 %v1090_v1, %v1088_v0 }
  0xd1   : > { %v5688_v62 = vpack.c.bf16 %v1091_v58, %v1089_v56  ;;  %v1108_v58 = vld [vmem:[%s9188_s21 + $0x100] sm:$0xff]  ;;  %v1115_v0 = vld [vmem:[%s9188_s21 + $0x138] sm:$0xff] }
  0xd3   : > { %5623 = vmatpush1.bf16.msra.mxu0 %v5622_v6  ;;  %5659 = vmatpush3.bf16.msra.mxu1 %v7544_v36  ;;  %v7579_v6 = vpack.c.bf16 %v978_v4, %v976_v3  ;;  %v1093_v3 = vld [vmem:[%s9188_s21 + $0x88] sm:$0xff]  ;;  %v1095_v4 = vld [vmem:[%s9188_s21 + $0x98] sm:$0xff] }
  0xd4   : > { %5625 = vmatprep.subr.bf16.mxu0 %v5624_v12  ;;  %v980_v12 = vld [vmem:[#allocation8 + $0x40] sm:$0xff]  ;;  %v5692_v10 = vpack.c.bf16 %v1095_v4, %v1093_v3  ;;  %v1112_v4 = vld [vmem:[%s9188_s21 + $0x120] sm:$0xff] }
  0xd5   : > { %v7585_v14 = vpack.c.bf16 %v982_v13, %v980_v12  ;;  %v1092_v12 = vld [vmem:[%s9188_s21 + $0x80] sm:$0xff]  ;;  %v1094_v13 = vld [vmem:[%s9188_s21 + $0x90] sm:$0xff] }
  0xd6   : > { %v5694_v19 = vpack.c.bf16 %v1094_v13, %v1092_v12  ;;  %v1119_v12 = vld [vmem:[%s9188_s21 + $0x158] sm:$0xff] }
  0xd7   : > { %5627 = vmatpush1.bf16.msra.mxu0 %v5626_v17  ;;  %v987_v17 = vld [vmem:[#allocation8 + $0x78] sm:$0xff] }
  0xd8   : > { %5661 = vmatprep.subr.bf16.mxu0 %v7571_v59  ;;  %v7589_v20 = vpack.c.bf16 %v987_v17, %v985_v15  ;;  %v1097_v15 = vld [vmem:[%s9188_s21 + $0xa8] sm:$0xff]  ;;  %v1099_v17 = vld [vmem:[%s9188_s21 + $0xb8] sm:$0xff] }
  0xd9   : > { %v5696_v21 = vpack.c.bf16 %v1099_v17, %v1097_v15  ;;  %v1116_v17 = vld [vmem:[%s9188_s21 + $0x140] sm:$0xff] }
  0xda   : > { %831 = vmatmul.mubr.f32.vlgmr.msra.gmra.mrb[0].mxu0 %v720_v24  ;;  %v1077_v24 = vld [vmem:[%s9188_s21 + $0x8] sm:$0xff] }
  0xdb   : > { %836 = vmatprep.mubr.f32.mxu0 %v6925_v7  ;;  %5663 = vmatpush1.bf16.msra.mxu0 %v7573_v63 }
  0xdc   : > { %5665 = vmatprep.subr.bf16.mxu0 %v7577_v2 }
  0xde   : > { %837 = vmatmul.mubr.f32.gmra.mrb[2].mxu0 %v721_v29  ;;  %v5676_v29 = vpack.c.bf16 %v1079_v26, %v1077_v24  ;;  %v1096_v24 = vld [vmem:[%s9188_s21 + $0xa0] sm:$0xff]  ;;  %v1098_v26 = vld [vmem:[%s9188_s21 + $0xb0] sm:$0xff] }
  0xdf   : > { %1059 = vmatprep.mubr.f32.mxu0 %v6925_v7  ;;  %5667 = vmatpush1.bf16.msra.mxu0 %v7579_v6  ;;  %v5698_v30 = vpack.c.bf16 %v1098_v26, %v1096_v24  ;;  %v1123_v24 = vld [vmem:[%s9188_s21 + $0x178] sm:$0xff] }
  0xe0   : > { %5669 = vmatprep.subr.bf16.mxu0 %v7583_v11  ;;  %5677 = vmatprep.subr.bf16.mxu1 %v5676_v29  ;;  %v1103_v29 = vld [vmem:[%s9188_s21 + $0xd8] sm:$0xff] }
  0xe3   : > { %5671 = vmatpush1.bf16.msra.mxu0 %v7585_v14 }
  0xe4   : > { %5673 = vmatprep.subr.bf16.mxu0 %v7589_v20 }
  0xe7   : > { %5675 = vmatpush1.bf16.msra.mxu0 %v7591_v22 }
  0xe8   : > { %5741 = vmatprep.subr.bf16.mxu0 %v7373_v32  ;;  %v1081_v32 = vld [vmem:[%s9188_s21 + $0x28] sm:$0xff] }
  0xe9   : > { %v5680_v35 = vpack.c.bf16 %v1083_v31, %v1081_v32  ;;  %v5700_v32 = vpack.c.bf16 %v1103_v29, %v1101_v27  ;;  %v1100_v31 = vld [vmem:[%s9188_s21 + $0xc0] sm:$0xff] }
  0xea   : > { %v1120_v29 = vld [vmem:[%s9188_s21 + $0x160] sm:$0xff] }
 0x1ad   : > { %v832_v47 = vpop.f32.mrb[0].mxu0 }
 0x1ae   : > { %v834_v49 = vpop.f32.mrb[1].mxu0  ;;  %v7561_v51 = vadd.f32 %v832_v47, %v759_v46  ;;  %v5682_v47 = vpack.c.bf16 %v1082_v41, %v1080_v38  ;;  %v1107_v38 = vld [vmem:[%s9188_s21 + $0xf8] sm:$0xff] }
 0x1af   : > { %v7559_v50 = vadd.f32 %v834_v49, %v763_v44 }
 0x1b1   : > { %v838_v52 = vpop.f32.mrb[2].mxu0  ;;  %939 = vmatprep.mubr.f32.mxu1 %v7559_v50 }
 0x1b2   : > { %v840_v53 = vpop.f32.mrb[3].mxu0  ;;  %940 = vmatmul.mubr.f32.vlgmr.msra.gmra.mrb[0].mxu1 %v7561_v51  ;;  %v7567_v55 = vadd.f32 %v838_v52, %v759_v46  ;;  %v1087_v46 = vld [vmem:[%s9188_s21 + $0x58] sm:$0xff]  ;;  %v1084_v52 = vld [vmem:[%s9188_s21 + $0x40] sm:$0xff] }
 0x1b3   : > { %v7565_v54 = vadd.f32 %v840_v53, %v763_v44  ;;  %v1085_v44 = vld [vmem:[%s9188_s21 + $0x48] sm:$0xff]  ;;  %5679 = vmatpush1.bf16.msra.mxu1 %v5678_v34  ;;  %v1086_v53 = vld [vmem:[%s9188_s21 + $0x50] sm:$0xff] }
 0x1b4   : > { %5681 = vmatprep.subr.bf16.mxu1 %v5680_v35  ;;  %v5684_v49 = vpack.c.bf16 %v1087_v46, %v1085_v44  ;;  %v5686_v61 = vpack.c.bf16 %v1086_v53, %v1084_v52  ;;  %v1102_v34 = vld [vmem:[%s9188_s21 + $0xd0] sm:$0xff]  ;;  %v1105_v35 = vld [vmem:[%s9188_s21 + $0xe8] sm:$0xff]  ;;  %v1104_v46 = vld [vmem:[%s9188_s21 + $0xe0] sm:$0xff] }
 0x1b5   : > { %944 = vmatprep.mubr.f32.mxu1 %v7565_v54  ;;  %v5702_v41 = vpack.c.bf16 %v1102_v34, %v1100_v31  ;;  %v5704_v44 = vpack.c.bf16 %v1107_v38, %v1105_v35  ;;  %v1111_v52 = vld [vmem:[%s9188_s21 + $0x118] sm:$0xff]  ;;  %v1124_v38 = vld [vmem:[%s9188_s21 + $0x180] sm:$0xff] }
 0x1b6   : > { %945 = vmatmul.mubr.f32.gmra.mrb[2].mxu1 %v7567_v55  ;;  %v1127_v31 = vld [vmem:[%s9188_s21 + $0x198] sm:$0xff] }
 0x1b7   : > { %5683 = vmatpush1.bf16.msra.mxu1 %v5682_v47  ;;  %v1106_v47 = vld [vmem:[%s9188_s21 + $0xf0] sm:$0xff] }
 0x1b8   : > { %5685 = vmatprep.subr.bf16.mxu1 %v5684_v49  ;;  %v1109_v49 = vld [vmem:[%s9188_s21 + $0x108] sm:$0xff]  ;;  %v5706_v53 = vpack.c.bf16 %v1106_v47, %v1104_v46  ;;  %v1131_v46 = vld [vmem:[%s9188_s21 + $0x1b8] sm:$0xff] }
 0x1b9   : > { %v5708_v56 = vpack.c.bf16 %v1111_v52, %v1109_v49  ;;  %v1128_v52 = vld [vmem:[%s9188_s21 + $0x1a0] sm:$0xff] }
 0x1bb   : > { %5687 = vmatpush1.bf16.msra.mxu1 %v5686_v61  ;;  %v1110_v61 = vld [vmem:[%s9188_s21 + $0x110] sm:$0xff] }
 0x1bc   : > { %5689 = vmatprep.subr.bf16.mxu1 %v5688_v62  ;;  %v1113_v62 = vld [vmem:[%s9188_s21 + $0x128] sm:$0xff]  ;;  %v5710_v1 = vpack.c.bf16 %v1110_v61, %v1108_v58  ;;  %v1135_v58 = vld [vmem:[%s9188_s21 + $0x1d8] sm:$0xff] }
 0x1bd   : > { %v5712_v3 = vpack.c.bf16 %v1115_v0, %v1113_v62  ;;  %v1132_v0 = vld [vmem:[%s9188_s21 + $0x1c0] sm:$0xff] }
 0x1bf   : > { %5691 = vmatpush1.bf16.msra.mxu1 %v5690_v8  ;;  %v1114_v8 = vld [vmem:[%s9188_s21 + $0x130] sm:$0xff] }
 0x1c0   : > { %5693 = vmatprep.subr.bf16.mxu1 %v5692_v10  ;;  %v1117_v10 = vld [vmem:[%s9188_s21 + $0x148] sm:$0xff]  ;;  %v5714_v13 = vpack.c.bf16 %v1114_v8, %v1112_v4 }
 0x1c1   : > { %v5716_v15 = vpack.c.bf16 %v1119_v12, %v1117_v10 }
 0x1c3   : > { %5695 = vmatpush1.bf16.msra.mxu1 %v5694_v19  ;;  %v1118_v19 = vld [vmem:[%s9188_s21 + $0x150] sm:$0xff] }
 0x1c4   : > { %5697 = vmatprep.subr.bf16.mxu1 %v5696_v21  ;;  %v1121_v21 = vld [vmem:[%s9188_s21 + $0x168] sm:$0xff]  ;;  %v5718_v26 = vpack.c.bf16 %v1118_v19, %v1116_v17 }
 0x1c5   : > { %v5720_v27 = vpack.c.bf16 %v1123_v24, %v1121_v21 }
 0x1c7   : > { %5699 = vmatpush1.bf16.msra.mxu1 %v5698_v30  ;;  %v1122_v30 = vld [vmem:[%s9188_s21 + $0x170] sm:$0xff] }
 0x1c8   : > { %5701 = vmatprep.subr.bf16.mxu1 %v5700_v32  ;;  %v1125_v32 = vld [vmem:[%s9188_s21 + $0x188] sm:$0xff]  ;;  %v5722_v34 = vpack.c.bf16 %v1122_v30, %v1120_v29 }
 0x1c9   : > { %v5724_v35 = vpack.c.bf16 %v1127_v31, %v1125_v32 }
 0x1cb   : > { %5703 = vmatpush1.bf16.msra.mxu1 %v5702_v41  ;;  %v1126_v41 = vld [vmem:[%s9188_s21 + $0x190] sm:$0xff] }
 0x1cc   : > { %5705 = vmatprep.subr.bf16.mxu1 %v5704_v44  ;;  %v1129_v44 = vld [vmem:[%s9188_s21 + $0x1a8] sm:$0xff]  ;;  %v5726_v47 = vpack.c.bf16 %v1126_v41, %v1124_v38 }
 0x1cd   : > { %v5728_v49 = vpack.c.bf16 %v1131_v46, %v1129_v44 }
 0x1cf   : > { %5707 = vmatpush1.bf16.msra.mxu1 %v5706_v53  ;;  %v1130_v53 = vld [vmem:[%s9188_s21 + $0x1b0] sm:$0xff] }
 0x1d0   : > { %5709 = vmatprep.subr.bf16.mxu1 %v5708_v56  ;;  %v1133_v56 = vld [vmem:[%s9188_s21 + $0x1c8] sm:$0xff]  ;;  %v5730_v61 = vpack.c.bf16 %v1130_v53, %v1128_v52 }
 0x1d1   : > { %v5732_v62 = vpack.c.bf16 %v1135_v58, %v1133_v56 }
 0x1d3   : > { %5711 = vmatpush1.bf16.msra.mxu1 %v5710_v1  ;;  %v1134_v1 = vld [vmem:[%s9188_s21 + $0x1d0] sm:$0xff] }
 0x1d4   : > { %5713 = vmatprep.subr.bf16.mxu1 %v5712_v3  ;;  %v5734_v3 = vpack.c.bf16 %v1134_v1, %v1132_v0 }
 0x1d7   : > { %5715 = vmatpush1.bf16.msra.mxu1 %v5714_v13 }
 0x1d8   : > { %5717 = vmatprep.subr.bf16.mxu1 %v5716_v15 }
 0x1db   : > { %5719 = vmatpush1.bf16.msra.mxu1 %v5718_v26 }
 0x1dc   : > { %5721 = vmatprep.subr.bf16.mxu1 %v5720_v27 }
 0x1df   : > { %5723 = vmatpush1.bf16.msra.mxu1 %v5722_v34 }
 0x1e0   : > { %5725 = vmatprep.subr.bf16.mxu1 %v5724_v35 }
 0x1e3   : > { %5727 = vmatpush1.bf16.msra.mxu1 %v5726_v47 }
 0x1e4   : > { %5729 = vmatprep.subr.bf16.mxu1 %v5728_v49 }
 0x1e7   : > { %5731 = vmatpush1.bf16.msra.mxu1 %v5730_v61 }
 0x1e8   : > { %5733 = vmatprep.subr.bf16.mxu1 %v5732_v62 }
 0x1eb   : > { %5735 = vmatpush1.bf16.msra.mxu1 %v5734_v3 }
 0x285   : > { %v5324_v4 = vpop.f32.mrb[0].mxu1 }
 0x286   : > { %v5325_v8 = vpop.f32.mrb[1].mxu1 }
 0x287   : > { %v5326_v10 = vadd.f32 %v5325_v8, %v5324_v4 }
 0x289   : > { %v950_v12 = vmul.f32 0.044715, %v5326_v10  ;;  %v5327_v13 = vpop.f32.mrb[2].mxu1 }
 0x28a   : > { %v5328_v15 = vpop.f32.mrb[3].mxu1 }
 0x28b   : > { %v952_v17 = vmul.f32 %v5326_v10, %v950_v12  ;;  %v5329_v19 = vadd.f32 %v5328_v15, %v5327_v13 }
 0x28d   : > { %v954_v21 = vmul.f32 %v5326_v10, %v952_v17  ;;  %v951_v24 = vmul.f32 0.044715, %v5329_v19 }
 0x28f   : > { %v956_v26 = vadd.f32 %v5326_v10, %v954_v21  ;;  %v953_v27 = vmul.f32 %v5329_v19, %v951_v24 }
 0x291   : > { %v5044_v29 = vmul.f32 -1.5957692, %v956_v26  ;;  %v955_v30 = vmul.f32 %v5329_v19, %v953_v27 }
 0x293   : > { %v962_v32 = vmul.f32 1.442695, %v5044_v29  ;;  %v957_v31 = vadd.f32 %v5329_v19, %v955_v30 }
 0x295   : > { %6269 = vpow2.f32 %v962_v32  ;;  %v5045_v34 = vmul.f32 -1.5957692, %v957_v31 }
 0x297   : > { %v964_v35 = vmul.f32 1.442695, %v5045_v34 }
 0x299   : > { %6271 = vpow2.f32 %v964_v35 }
 0x29f   : > { %v6270_v38 = vpop.eup %6269 }
 0x2a0   : > { %v966_v41 = vadd.f32 1.0, %v6270_v38 }
 0x2a2   : > { %6273 = vrcp.f32 %v966_v41 }
 0x2a3   : > { %v6272_v44 = vpop.eup %6271 }
 0x2a4   : > { %v967_v46 = vadd.f32 1.0, %v6272_v44 }
 0x2a6   : > { %6275 = vrcp.f32 %v967_v46 }
 0x2ac   : > { %v6274_v47 = vpop.eup %6273 }
 0x2ad   : > { %5046 = vmatmul.mubr.msk.f32.vlgmr.msra.gmra.mrb[4].mxu0 %vm988_vm2, %v6274_v47 }
 0x2ae   : > { %1065 = vmatprep.mubr.f32.mxu0 %v6925_v7  ;;  %5743 = vmatpush3.bf16.msra.mxu0 %v7384_v37  ;;  %v1137_v37 = vld [vmem:[%s9188_s21 + $0x1e8] sm:$0xff] }
 0x2af   : > { %5745 = vmatprep.subr.bf16.mxu0 %v7399_v42  ;;  %v1139_v42 = vld [vmem:[%s9188_s21 + $0x1f8] sm:$0xff] }
 0x2b0   : > { %v6276_v49 = vpop.eup %6275 }
 0x2b1   : > { %5047 = vmatmul.mubr.msk.f32.gmra.mrb[6].mxu0 %vm988_vm2, %v6276_v49 }
 0x2b2   : > { %5747 = vmatpush3.bf16.msra.mxu0 %v7408_v45  ;;  %v5736_v45 = vpack.c.bf16 %v1139_v42, %v1137_v37 }
 0x2b3   : > { %5749 = vmatprep.subr.bf16.mxu0 %v7414_v48  ;;  %v1136_v48 = vld [vmem:[%s9188_s21 + $0x1e0] sm:$0xff] }
 0x2b4   : > { %5737 = vmatprep.subr.bf16.mxu1 %v5736_v45 }
 0x2b6   : > { %5751 = vmatpush3.bf16.msra.mxu0 %v7438_v57  ;;  %v1138_v57 = vld [vmem:[%s9188_s21 + $0x1f0] sm:$0xff] }
 0x2b7   : > { %5753 = vmatprep.subr.bf16.mxu0 %v7444_v60  ;;  %v5738_v60 = vpack.c.bf16 %v1138_v57, %v1136_v48 }
 0x2b9   : > { %5739 = vmatpush1.bf16.msra.mxu1 %v5738_v60 }
 0x2ba   : > { %5755 = vmatpush3.bf16.msra.mxu0 %v7468_v5 }
 0x2bb   : > { %5757 = vmatprep.subr.bf16.mxu0 %v7474_v9 }
 0x2be   : > { %5759 = vmatpush3.bf16.msra.mxu0 %v7492_v16 }
 0x2bf   : > { %5761 = vmatprep.subr.bf16.mxu0 %v7495_v18 }
 0x2c2   : > { %5763 = vmatpush3.bf16.msra.mxu0 %v7510_v23 }
 0x2c3   : > { %5765 = vmatprep.subr.bf16.mxu0 %v7514_v25 }
 0x2c6   : > { %5767 = vmatpush3.bf16.msra.mxu0 %v7523_v28 }
 0x2c7   : > { %5769 = vmatprep.subr.bf16.mxu0 %v7536_v33 }
 0x2ca   : > { %5771 = vmatpush3.bf16.msra.mxu0 %v7544_v36  ;;  %v1140_v36 = vld [vmem:[%s9189_s2] sm:$0x3] }
 0x2cb   : > { %5773 = vmatprep.subr.bf16.mxu0 %v7571_v59  ;;  %v1149_v59 = vrot.slane %v1140_v36, %v762_v40 }
 0x380   : > { %v1061_v5 = vpop.f32.mrb[4].mxu0 }
 0x381   : > { %v1063_v9 = vpop.f32.mrb[5].mxu0  ;;  %v1072_v18 = vmul.f32 %v1061_v5, %v7561_v51 }
 0x382   : > { %v1073_v16 = vmul.f32 %v1063_v9, %v7559_v50  ;;  %v1145_v50 = vrot.slane %v1140_v36, %v758_v43 }
 0x384   : > { %v1067_v23 = vpop.f32.mrb[6].mxu0  ;;  %1216 = vmatprep.mubr.f32.mxu1 %v1073_v16 }
 0x385   : > { %v1069_v25 = vpop.f32.mrb[7].mxu0  ;;  %1217 = vmatmul.mubr.f32.vlgmr.msra.gmra.mrb[4].mxu1 %v1072_v18  ;;  %v1074_v33 = vmul.f32 %v1067_v23, %v7567_v55 }
 0x386   : > { %v1075_v28 = vmul.f32 %v1069_v25, %v7565_v54 }
 0x388   : > { %1222 = vmatprep.mubr.f32.mxu1 %v1075_v28 }
 0x389   : > { %1223 = vmatmul.mubr.f32.gmra.mrb[6].mxu1 %v1074_v33 }
 0x458   : > { %v1218_v51 = vpop.f32.mrb[4].mxu1 }
 0x459   : > { %v1220_v52 = vpop.f32.mrb[5].mxu1  ;;  %v1219_v56 = vadd.f32 %v1218_v51, %v1145_v50 }
 0x45a   : > { %v1221_v53 = vadd.f32 %v1220_v52, %v1149_v59 }
 0x45c   : > { %v1224_v58 = vpop.f32.mrb[6].mxu1  ;;  %1293 = vmatprep.mubr.f32.mxu0 %v1221_v53 }
 0x45d   : > { %v1226_v54 = vpop.f32.mrb[7].mxu1  ;;  %1294 = vmatmul.mubr.f32.vlgmr.msra.gmra.mrb[8].mxu0 %v1219_v56  ;;  %v1225_v61 = vadd.f32 %v1224_v58, %v1145_v50 }
 0x45e   : > { %v1227_v55 = vadd.f32 %v1226_v54, %v1149_v59  ;;  %5775 = vmatpush1.bf16.msra.mxu0 %v7573_v63 }
 0x45f   : > { %5777 = vmatprep.subr.bf16.mxu0 %v7577_v2 }
 0x460   : > { %1298 = vmatprep.mubr.f32.mxu0 %v1227_v55 }
 0x461   : > { %1299 = vmatmul.mubr.f32.gmra.mrb[10].mxu0 %v1225_v61 }
 0x462   : > { %5779 = vmatpush1.bf16.msra.mxu0 %v7579_v6  ;;  %1396 = vmatprep.mubr.f32.mxu0 %v6925_v7 }
 0x463   : > { %5781 = vmatprep.subr.bf16.mxu0 %v7583_v11 }
 0x466   : > { %5783 = vmatpush1.bf16.msra.mxu0 %v7585_v14 }
 0x467   : > { %5785 = vmatprep.subr.bf16.mxu0 %v7589_v20 }
 0x46a   : > { %5787 = vmatpush1.bf16.msra.mxu0 %v7591_v22 }
 0x530   : > { %v5362_v39 = vpop.f32.mrb[8].mxu0 }
 0x531   : > { %v5363_v40 = vpop.f32.mrb[9].mxu0 }
 0x532   : > { %v5364_v43 = vadd.f32 %v5363_v40, %v5362_v39 }
 0x534   : > { %v1304_v63 = vmul.f32 0.044715, %v5364_v43  ;;  %v5365_v62 = vpop.f32.mrb[10].mxu0 }
 0x535   : > { %v5366_v2 = vpop.f32.mrb[11].mxu0 }
 0x536   : > { %v1306_v0 = vmul.f32 %v5364_v43, %v1304_v63  ;;  %v5367_v1 = vadd.f32 %v5366_v2, %v5365_v62 }
 0x538   : > { %v1308_v3 = vmul.f32 %v5364_v43, %v1306_v0  ;;  %v1305_v6 = vmul.f32 0.044715, %v5367_v1 }
 0x53a   : > { %v1310_v4 = vadd.f32 %v5364_v43, %v1308_v3  ;;  %v1307_v8 = vmul.f32 %v5367_v1, %v1305_v6 }
 0x53c   : > { %v5048_v10 = vmul.f32 -1.5957692, %v1310_v4  ;;  %v1309_v11 = vmul.f32 %v5367_v1, %v1307_v8 }
 0x53e   : > { %v1316_v12 = vmul.f32 1.442695, %v5048_v10  ;;  %v1311_v14 = vadd.f32 %v5367_v1, %v1309_v11 }
 0x540   : > { %6277 = vpow2.f32 %v1316_v12  ;;  %v5049_v20 = vmul.f32 -1.5957692, %v1311_v14 }
 0x542   : > { %v1318_v13 = vmul.f32 1.442695, %v5049_v20 }
 0x544   : > { %6279 = vpow2.f32 %v1318_v13 }
 0x54a   : > { %v6278_v22 = vpop.eup %6277 }
 0x54b   : > { %v1320_v15 = vadd.f32 1.0, %v6278_v22 }
 0x54d   : > { %6281 = vrcp.f32 %v1320_v15 }
 0x54e   : > { %v6280_v17 = vpop.eup %6279 }
 0x54f   : > { %v1321_v19 = vadd.f32 1.0, %v6280_v17 }
 0x551   : > { %6283 = vrcp.f32 %v1321_v19 }
 0x557   : > { %v6282_v21 = vpop.eup %6281 }
 0x558   : > { %5050 = vmatmul.mubr.msk.f32.vlgmr.msra.gmra.mrb[12].mxu0 %vm988_vm2, %v6282_v21 }
 0x559   : > { %1402 = vmatprep.mubr.f32.mxu0 %v6925_v7 }
 0x55b   : > { %v6284_v24 = vpop.eup %6283 }
 0x55c   : > { %5051 = vmatmul.mubr.msk.f32.gmra.mrb[14].mxu0 %vm988_vm2, %v6284_v24 }
 0x62b   : > { %v1398_v26 = vpop.f32.mrb[12].mxu0 }
 0x62c   : > { %v1409_v27 = vmul.f32 %v1398_v26, %v1219_v56  ;;  %v1400_v29 = vpop.f32.mrb[13].mxu0 }
 0x62d   : > { %v1410_v30 = vmul.f32 %v1400_v29, %v1221_v53 }
 0x62e   : > { %1413 = vst [vmem:[#allocation2] sm:$0xff] %v1409_v27 }
 0x62f   : > { %1414 = vst [vmem:[#allocation2 + $0x8] sm:$0xff] %v1410_v30  ;;  %v1404_v32 = vpop.f32.mrb[14].mxu0 }
 0x630   : > { %v1411_v31 = vmul.f32 %v1404_v32, %v1225_v61  ;;  %v1406_v34 = vpop.f32.mrb[15].mxu0 }
 0x631   : > { %v1412_v35 = vmul.f32 %v1406_v34, %v1227_v55 }
 0x632   : > { %1415 = vst [vmem:[#allocation2 + $0x10] sm:$0xff] %v1411_v31 }
 0x633   : > { %1416 = vst [vmem:[#allocation2 + $0x18] sm:$0xff] %v1412_v35 }
 0x634 PF: > { %vm1425_vm3 = vcmask 1040384   ;;  %v6345_v42 = vld [vmem:[%s7248_s10 + $0x4] ss:$8 sps:$4 sm:$0xff]   ;;  %v6347_v45 = vld [vmem:[%s7248_s10] ss:$8 sps:$4 sm:$0xff]   ;;  %s6926_s18 = smov 16  }
 0x635   : > { %v1417_v38 = vld [vmem:[#allocation2] sm:$0xff]  ;;  %2257 = vmatprep.subr.bf16.mxu0 %v6345_v42  ;;  %v6351_v9 = vld [vmem:[%s7248_s10 + $0x24] ss:$8 sps:$4 sm:$0xff]   ;;  %v6353_v16 = vld [vmem:[%s7248_s10 + $0x20] ss:$8 sps:$4 sm:$0xff]   ;;  %vm1457_vm4 = vcmask 1047681  }
 0x636   : > { %v1418_v41 = vld [vmem:[#allocation2 + $0x8] sm:$0xff]  ;;  %v1426_v44 = vrot.slane %v1417_v38, 7  ;;  %v6348_v57 = vld [vmem:[%s7248_s10 + $0x14] ss:$8 sps:$4 sm:$0xff]   ;;  %2258 = vmatpush1.bf16.msra.mxu0 %v6347_v45  ;;  %v6350_v5 = vld [vmem:[%s7248_s10 + $0x10] ss:$8 sps:$4 sm:$0xff]  }
 0x637   : > { %v1427_v47 = vrot.slane %v1418_v41, 7  ;;  %2259 = vmatprep.subr.bf16.mxu0 %v6348_v57  ;;  %v6354_v18 = vld [vmem:[%s7248_s10 + $0x34] ss:$8 sps:$4 sm:$0xff]   ;;  %v6356_v23 = vld [vmem:[%s7248_s10 + $0x30] ss:$8 sps:$4 sm:$0xff]   ;;  %vm1462_vm5 = vcmask 1047680  }
 0x638   : > { %1432 = vrot.lane.b32.xlu0 %v1426_v44, %s6926_s18  ;;  %v6357_v25 = vld [vmem:[%s7248_s10 + $0x44] ss:$8 sps:$4 sm:$0xff]   ;;  %v6359_v28 = vld [vmem:[%s7248_s10 + $0x40] ss:$8 sps:$4 sm:$0xff]   ;;  %v6360_v33 = vld [vmem:[%s7248_s10 + $0x54] ss:$8 sps:$4 sm:$0xff]  }
 0x639   : > { %v1419_v7 = vld [vmem:[#allocation2 + $0x10] sm:$0xff]  ;;  %v6362_v36 = vld [vmem:[%s7248_s10 + $0x50] ss:$8 sps:$4 sm:$0xff]   ;;  %v6366_v51 = vld [vmem:[%s7248_s10 + $0x74] ss:$8 sps:$4 sm:$0xff]   ;;  %vm1444_vm6 = vcmask 130048  }
 0x63a   : > { %v1428_v46 = vrot.slane %v1419_v7, 7  ;;  %v1420_v49 = vld [vmem:[#allocation2 + $0x18] sm:$0xff]  ;;  %2260 = vmatpush1.bf16.msra.mxu0 %v6350_v5  ;;  %v6363_v59 = vld [vmem:[%s7248_s10 + $0x64] ss:$8 sps:$4 sm:$0xff]   ;;  %v6365_v50 = vld [vmem:[%s7248_s10 + $0x60] ss:$8 sps:$4 sm:$0xff]  }
 0x63b   : > { %v1430_v37 = vrot.slane %v1420_v49, 7  ;;  %2261 = vmatprep.subr.bf16.mxu0 %v6351_v9  ;;  %v6368_v52 = vld [vmem:[%s7248_s10 + $0x70] ss:$8 sps:$4 sm:$0xff]   ;;  %v6369_v53 = vld [vmem:[%s7248_s10 + $0x84] ss:$8 sps:$4 sm:$0xff]   ;;  %vm1460_vm7 = vcmask 130049  }
 0x63c   : > { %v1429_v48 = vsel %vm1425_vm3, %v1426_v44, %v1428_v46  ;;  %1434 = vrot.lane.b32.xlu0 %v1427_v47, %s6926_s18  ;;  %v6371_v56 = vld [vmem:[%s7248_s10 + $0x80] ss:$8 sps:$4 sm:$0xff]   ;;  %v6372_v58 = vld [vmem:[%s7248_s10 + $0x94] ss:$8 sps:$4 sm:$0xff]   ;;  %v6374_v54 = vld [vmem:[%s7248_s10 + $0x90] ss:$8 sps:$4 sm:$0xff]  }
 0x63d   : > { %1436 = vrot.lane.b32.xlu1 %v1429_v48, %s6926_s18  ;;  %v1431_v60 = vsel %vm1425_vm3, %v1427_v47, %v1430_v37  ;;  %v6375_v55 = vld [vmem:[%s7248_s10 + $0xa4] ss:$8 sps:$4 sm:$0xff]   ;;  %v6377_v61 = vld [vmem:[%s7248_s10 + $0xa0] ss:$8 sps:$4 sm:$0xff]   ;;  %v6378_v39 = vld [vmem:[%s7248_s10 + $0xb4] ss:$8 sps:$4 sm:$0xff]  }
 0x63e   : > { %2262 = vmatpush1.bf16.msra.mxu0 %v6353_v16  ;;  %v6380_v40 = vld [vmem:[%s7248_s10 + $0xb0] ss:$8 sps:$4 sm:$0xff]   ;;  %v6381_v43 = vld [vmem:[%s7248_s10 + $0xc4] ss:$8 sps:$4 sm:$0xff]   ;;  %v6383_v63 = vld [vmem:[%s7248_s10 + $0xc0] ss:$8 sps:$4 sm:$0xff]  }
 0x63f   : > { %2263 = vmatprep.subr.bf16.mxu0 %v6354_v18  ;;  %v6384_v62 = vld [vmem:[%s7248_s10 + $0xd4] ss:$8 sps:$4 sm:$0xff]   ;;  %v6386_v2 = vld [vmem:[%s7248_s10 + $0xd0] ss:$8 sps:$4 sm:$0xff]   ;;  %v6387_v0 = vld [vmem:[%s7248_s10 + $0xe4] ss:$8 sps:$4 sm:$0xff]  }
 0x640   : > { %1440 = vrot.lane.b32.xlu0 %v1428_v46, %s6926_s18  ;;  %v6389_v1 = vld [vmem:[%s7248_s10 + $0xe0] ss:$8 sps:$4 sm:$0xff]   ;;  %v6390_v3 = vld [vmem:[%s7248_s10 + $0xf4] ss:$8 sps:$4 sm:$0xff]   ;;  %v6392_v6 = vld [vmem:[%s7248_s10 + $0xf0] ss:$8 sps:$4 sm:$0xff]  }
 0x641   : > { %1438 = vrot.lane.b32.xlu1 %v1431_v60, %s6926_s18  ;;  %v6395_v4 = vld [vmem:[%s7248_s10 + $0x104] ss:$8 sps:$4 sm:$0xff]   ;;  %vm1466_vm8 = vcmask 1040512   ;;  %vm1469_vm9 = vcmask 122880   ;;  %vm1498_vm10 = vcmask 1046528   ;;  %vm1543_vm11 = vcmask 1045504  }
 0x642   : > { %2264 = vmatpush1.bf16.msra.mxu0 %v6356_v23  ;;  %v6393_v38 = vld [vmem:[%s7248_s10 + $0x100] ss:$8 sps:$4 sm:$0xff]   ;;  %v6398_v44 = vld [vmem:[%s7248_s10 + $0x114] ss:$8 sps:$4 sm:$0xff]   ;;  %v6396_v48 = vld [vmem:[%s7248_s10 + $0x110] ss:$8 sps:$4 sm:$0xff]  }
 0x643   : > { %2265 = vmatprep.subr.bf16.mxu0 %v6357_v25  ;;  %s9153_s14 = smov 32   ;;  %s9151_s3 = smov 64   ;;  %vm1526_vm12 = vcmask 261120   ;;  %vm1571_vm13 = vcmask 523264   ;;  %vm2253_vm14 = vcmask 785408  }
 0x644   : > { %s9190_s5 = sld [smem:[#allocation27_spill]]  ;;  %p5282_p12 = scmp.ne.s32.totalorder %s6899_s27, 1 }
 0x645   : > { %1442 = vrot.lane.b32.xlu1 %v1430_v37, %s6926_s18  ;;  %s9194_s24 = sld [smem:[#allocation23_spill]] (!%p5282_p12)  ;;  %s9196_s12 = sld [smem:[#allocation28_spill]] (!%p5282_p12) }
 0x646   : > { %2266 = vmatpush1.bf16.msra.mxu0 %v6359_v28 }
 0x647   : > { %2267 = vmatprep.subr.bf16.mxu0 %v6360_v33 }
 0x64a   : > { %2268 = vmatpush1.bf16.msra.mxu0 %v6362_v36 }
 0x64b   : > { %2269 = vmatprep.subr.bf16.mxu0 %v6363_v59  ;;  %v6401_v59 = vld [vmem:[%s7248_s10 + $0x124] ss:$8 sps:$4 sm:$0xff]   ;;  %s9195_s16 = smov (!%p5282_p12), %s9194_s24 }
 0x64e   : > { %2270 = vmatpush1.bf16.msra.mxu0 %v6365_v50 }
 0x64f   : > { %2271 = vmatprep.subr.bf16.mxu0 %v6366_v51 }
 0x652   : > { %2272 = vmatpush1.bf16.msra.mxu0 %v6368_v52 }
 0x653   : > { %2273 = vmatprep.subr.bf16.mxu0 %v6369_v53 }
 0x656   : > { %2274 = vmatpush1.bf16.msra.mxu0 %v6371_v56 }
 0x657   : > { %2275 = vmatprep.subr.bf16.mxu0 %v6372_v58 }
 0x65a   : > { %2276 = vmatpush1.bf16.msra.mxu0 %v6374_v54 }
 0x65b   : > { %2277 = vmatprep.subr.bf16.mxu0 %v6375_v55 }
 0x65e   : > { %2278 = vmatpush1.bf16.msra.mxu0 %v6377_v61 }
 0x65f   : > { %2279 = vmatprep.subr.bf16.mxu0 %v6378_v39 }
 0x662   : > { %2280 = vmatpush1.bf16.msra.mxu0 %v6380_v40 }
 0x663   : > { %2281 = vmatprep.subr.bf16.mxu0 %v6381_v43 }
 0x666   : > { %2282 = vmatpush1.bf16.msra.mxu0 %v6383_v63  ;;  %v6399_v63 = vld [vmem:[%s7248_s10 + $0x120] ss:$8 sps:$4 sm:$0xff]  }
 0x667   : > { %2283 = vmatprep.subr.bf16.mxu0 %v6384_v62 }
 0x66a   : > { %2284 = vmatpush1.bf16.msra.mxu0 %v6386_v2 }
 0x66b   : > { %2285 = vmatprep.subr.bf16.mxu0 %v6387_v0  ;;  %v6404_v0 = vld [vmem:[%s7248_s10 + $0x134] ss:$8 sps:$4 sm:$0xff]  }
 0x66e   : > { %2286 = vmatpush1.bf16.msra.mxu0 %v6389_v1 }
 0x66f   : > { %2287 = vmatprep.subr.bf16.mxu0 %v6390_v3 }
 0x672   : > { %2288 = vmatpush1.bf16.msra.mxu0 %v6392_v6 }
 0x673   : > { %2300 = vmatprep.subr.bf16.mxu0 %v6395_v4 }
 0x6aa   : > { %v1433_v8 = vpop.permute.xlu0 %1432 }
 0x6ab   : > { %1458 = vst.msk [vmem:[#allocation3] sm:$0xfe] %vm1457_vm4, %v1433_v8 }
 0x6ae   : > { %v1435_v11 = vpop.permute.xlu0 %1434 }
 0x6af   : > { %v1437_v10 = vpop.permute.xlu1 %1436  ;;  %v1445_v12 = vsel %vm1444_vm6, %v1433_v8, %v1435_v11  ;;  %1461 = vst.msk [vmem:[#allocation3 + $0x10] sm:$0xfe] %vm1460_vm7, %v1435_v11  ;;  %v6402_v11 = vld [vmem:[%s7248_s10 + $0x130] ss:$8 sps:$4 sm:$0xff]  }
 0x6b0   : > { %1463 = vst.msk [vmem:[#allocation3 + $0x18] sm:$0xff] %vm1462_vm5, %v1437_v10  ;;  %1459 = vst [vmem:[#allocation3 + $0x8] sm:$0xfe] %v1445_v12 }
 0x6b2   : > { %v1441_v20 = vpop.permute.xlu0 %1440  ;;  %v1477_v15 = vld [vmem:[#allocation3] sm:$0xfe] }
 0x6b3   : > { %v1439_v14 = vpop.permute.xlu1 %1438  ;;  %1467 = vst.msk [vmem:[#allocation3 + $0x30] sm:$0x1] %vm1466_vm8, %v1441_v20  ;;  %v1471_v21 = vld [vmem:[#allocation3] sm:$0xff]  ;;  %v1499_v24 = vrot.slane %v1477_v15, 1 }
 0x6b4   : > { %1465 = vst.msk [vmem:[#allocation3 + $0x28] sm:$0xff] %vm1444_vm6, %v1439_v14  ;;  %v1446_v19 = vsel %vm1444_vm6, %v1437_v10, %v1439_v14  ;;  %v1483_v41 = vld [vmem:[#allocation3] sm:$0xfc]  ;;  %v6407_v14 = vld [vmem:[%s7248_s10 + $0x144] ss:$8 sps:$4 sm:$0xff]  }
 0x6b5   : > { %v1503_v31 = vrot.slane %v1446_v19, 1  ;;  %v1548_v25 = vrot.slane %v1446_v19, 2  ;;  %v1544_v53 = vrot.slane %v1483_v41, 2  ;;  %v6410_v15 = vld [vmem:[%s7248_s10 + $0x154] ss:$8 sps:$4 sm:$0xff]  }
 0x6b6   : > { %v1479_v27 = vld [vmem:[#allocation3 + $0x10] sm:$0xfe] }
 0x6b7   : > { %v1443_v13 = vpop.permute.xlu1 %1442  ;;  %v7876_v22 = vld [vmem:[#allocation3 + $0x18] sm:$0xff]  ;;  %v1472_v29 = vld [vmem:[#allocation3 + $0x8] sm:$0xff]  ;;  %v1505_v49 = vrot.slane %v1479_v27, 1  ;;  %v1485_v43 = vld [vmem:[#allocation3 + $0x10] sm:$0xfc] }
 0x6b8   : > { %v1447_v17 = vsel %vm1444_vm6, %v1441_v20, %v1443_v13  ;;  %1470 = vst.msk [vmem:[#allocation3 + $0x40] sm:$0x1] %vm1469_vm9, %v1443_v13  ;;  %v1500_v26 = vrot.slane %v7876_v22, 1  ;;  %v1478_v30 = vld [vmem:[#allocation3 + $0x8] sm:$0xfe]  ;;  %v1587_v34 = vpack.c.bf16 %v1446_v19, %v1472_v29  ;;  %v1586_v7 = vpack.c.bf16 %v7876_v22, %v1471_v21 }
 0x6b9   : > { %1468 = vst [vmem:[#allocation3 + $0x38] sm:$0x1] %v1447_v17  ;;  %v1502_v35 = vrot.slane %v1478_v30, 1  ;;  %v1484_v45 = vld [vmem:[#allocation3 + $0x8] sm:$0xfc]  ;;  %v1545_v61 = vrot.slane %v7876_v22, 2 }
 0x6ba   : > { %2289 = vmatprep.mubr.bf16.mxu0 %v1587_v34  ;;  %v1501_v46 = vsel %vm1498_vm10, %v1499_v24, %v1500_v26  ;;  %v1480_v42 = vld [vmem:[#allocation3 + $0x30] sm:$0x1]  ;;  %v1547_v36 = vrot.slane %v1484_v45, 2  ;;  %v1550_v4 = vrot.slane %v1485_v43, 2  ;;  %v6408_v17 = vld [vmem:[%s7248_s10 + $0x150] ss:$8 sps:$4 sm:$0xff]  }
 0x6bb   : > { %v7882_v32 = vld [vmem:[#allocation3 + $0x28] sm:$0xff]  ;;  %v1504_v47 = vsel %vm1498_vm10, %v1502_v35, %v1503_v31  ;;  %2290 = vmatmul.mubr.bf16.vlgmr.msra.gmra.mrb[0].mxu0 %v1586_v7  ;;  %v1508_v5 = vrot.slane %v1480_v42, 1  ;;  %v1486_v9 = vld [vmem:[#allocation3 + $0x30] sm:$0x3]  ;;  %v1546_v6 = vsel %vm1543_vm11, %v1544_v53, %v1545_v61  ;;  %v6416_v24 = vld [vmem:[%s7248_s10 + $0x174] ss:$8 sps:$4 sm:$0xff]  }
 0x6bc   : > { %v1506_v37 = vrot.slane %v7882_v32, 1  ;;  %v6285_v57 = vpack.i.bf16 %v1504_v47, %v1501_v46  ;;  %2301 = vmatpush1.bf16.msra.mxu0 %v6393_v38  ;;  %v1553_v52 = vrot.slane %v1486_v9, 2  ;;  %v1549_v62 = vsel %vm1543_vm11, %v1547_v36, %v1548_v25  ;;  %v6405_v22 = vld [vmem:[%s7248_s10 + $0x140] ss:$8 sps:$4 sm:$0xff]   ;;  %v6413_v19 = vld [vmem:[%s7248_s10 + $0x164] ss:$8 sps:$4 sm:$0xff]  }
 0x6bd   : > { %2302 = vmatprep.subr.bf16.mxu0 %v6398_v44  ;;  %v1509_v54 = vsel %vm1498_vm10, %v1500_v26, %v1508_v5  ;;  %v1551_v8 = vrot.slane %v7882_v32, 2  ;;  %v6300_v10 = vpack.i.bf16 %v1549_v62, %v1546_v6  ;;  %v6411_v21 = vld [vmem:[%s7248_s10 + $0x160] ss:$8 sps:$4 sm:$0xff]   ;;  %v6414_v26 = vld [vmem:[%s7248_s10 + $0x170] ss:$8 sps:$4 sm:$0xff]  }
 0x6be   : > { %6286 = vrot.lane.b32.xlu0 %v6285_v57, %s9153_s14  ;;  %v1507_v50 = vsel %vm1498_vm10, %v1505_v49, %v1506_v37  ;;  %v1554_v1 = vsel %vm1543_vm11, %v1545_v61, %v1553_v52  ;;  %v6419_v27 = vld [vmem:[%s7248_s10 + $0x184] ss:$8 sps:$4 sm:$0xff]   ;;  %v6417_v29 = vld [vmem:[%s7248_s10 + $0x180] ss:$8 sps:$4 sm:$0xff]   ;;  %v6422_v30 = vld [vmem:[%s7248_s10 + $0x194] ss:$8 sps:$4 sm:$0xff]  }
 0x6bf   : > { %v1482_v60 = vld [vmem:[#allocation3 + $0x40] sm:$0x1]  ;;  %v1552_v20 = vsel %vm1543_vm11, %v1550_v4, %v1551_v8  ;;  %v6425_v34 = vld [vmem:[%s7248_s10 + $0x1a4] ss:$8 sps:$4 sm:$0xff]   ;;  %v6423_v35 = vld [vmem:[%s7248_s10 + $0x1a0] ss:$8 sps:$4 sm:$0xff]  }
 0x6c0   : > { %v1512_v16 = vrot.slane %v1482_v60, 1  ;;  %v1481_v18 = vld [vmem:[#allocation3 + $0x38] sm:$0x1]  ;;  %v1488_v56 = vld [vmem:[#allocation3 + $0x40] sm:$0x3]  ;;  %2303 = vmatpush1.bf16.msra.mxu0 %v6396_v48  ;;  %v2450_v60 = vld [vmem:[%s9190_s5 + $0x88] sm:$0xff] }
 0x6c1   : > { %v1487_v23 = vld [vmem:[#allocation3 + $0x38] sm:$0x3]  ;;  %v1510_v28 = vrot.slane %v1481_v18, 1  ;;  %v1557_v2 = vrot.slane %v1488_v56, 2  ;;  %2304 = vmatprep.subr.bf16.mxu0 %v6401_v59  ;;  %v6428_v38 = vld [vmem:[%s7248_s10 + $0x1b4] ss:$8 sps:$4 sm:$0xff]  }
 0x6c2   : > { %v1555_v33 = vrot.slane %v1487_v23, 2  ;;  %v1513_v51 = vsel %vm1498_vm10, %v1506_v37, %v1512_v16  ;;  %v6426_v7 = vld [vmem:[%s7248_s10 + $0x1b0] ss:$8 sps:$4 sm:$0xff]   ;;  %v6431_v41 = vld [vmem:[%s7248_s10 + $0x1c4] ss:$8 sps:$4 sm:$0xff]  }
 0x6c3   : > { %v6295_v58 = vpack.i.bf16 %v1513_v51, %v1507_v50  ;;  %v1511_v55 = vsel %vm1498_vm10, %v1503_v31, %v1510_v28  ;;  %v1558_v12 = vsel %vm1543_vm11, %v1551_v8, %v1557_v2  ;;  %v6420_v31 = vld [vmem:[%s7248_s10 + $0x190] ss:$8 sps:$4 sm:$0xff]   ;;  %v6429_v44 = vld [vmem:[%s7248_s10 + $0x1c0] ss:$8 sps:$4 sm:$0xff]   ;;  %v6434_v46 = vld [vmem:[%s7248_s10 + $0x1d4] ss:$8 sps:$4 sm:$0xff]  }
 0x6c4   : > { %v6290_v39 = vpack.i.bf16 %v1511_v55, %v1509_v54  ;;  %v1556_v40 = vsel %vm1543_vm11, %v1548_v25, %v1555_v33  ;;  %2305 = vmatpush1.bf16.msra.mxu0 %v6399_v63  ;;  %v6310_v13 = vpack.i.bf16 %v1558_v12, %v1552_v20  ;;  %v6432_v47 = vld [vmem:[%s7248_s10 + $0x1d0] ss:$8 sps:$4 sm:$0xff]   ;;  %v6437_v49 = vld [vmem:[%s7248_s10 + $0x1e4] ss:$8 sps:$4 sm:$0xff]   ;;  %v6435_v37 = vld [vmem:[%s7248_s10 + $0x1e0] ss:$8 sps:$4 sm:$0xff]  }
 0x6c5   : > { %6296 = vrot.lane.b32.xlu0 %v6295_v58, %s9153_s14  ;;  %v6305_v3 = vpack.i.bf16 %v1556_v40, %v1554_v1  ;;  %2306 = vmatprep.subr.bf16.mxu0 %v6404_v0  ;;  %v6440_v42 = vld [vmem:[%s7248_s10 + $0x1f4] ss:$8 sps:$4 sm:$0xff]   ;;  %v6438_v45 = vld [vmem:[%s7248_s10 + $0x1f0] ss:$8 sps:$4 sm:$0xff]   ;;  %v6443_v48 = vld [vmem:[%s7248_s10 + $0x204] ss:$8 sps:$4 sm:$0xff]  }
 0x6c6   : > { %6291 = vrot.lane.b32.xlu1 %v6290_v39, %s9153_s14  ;;  %v2449_v57 = vld [vmem:[%s9190_s5 + $0x80] sm:$0xff]  ;;  %v2434_v16 = vld [vmem:[%s9190_s5 + $0x8] sm:$0xff]  ;;  %v2451_v18 = vld [vmem:[%s9190_s5 + $0x90] sm:$0xff]  ;;  %s9191_s14 = sld [smem:[#allocation28_spill]] }
 0x6c7   : > { %v2433_v5 = vld [vmem:[%s9190_s5] sm:$0xff]  ;;  %v5788_v9 = vpack.c.bf16 %v2450_v60, %v2449_v57  ;;  %v2452_v23 = vld [vmem:[%s9190_s5 + $0x98] sm:$0xff]  ;;  %v2435_v33 = vld [vmem:[%s9190_s5 + $0x10] sm:$0xff] }
 0x6c8   : > { %2307 = vmatpush1.bf16.msra.mxu0 %v6402_v11  ;;  %v5790_v25 = vpack.c.bf16 %v2434_v16, %v2433_v5  ;;  %v5792_v28 = vpack.c.bf16 %v2452_v23, %v2451_v18  ;;  %v2436_v36 = vld [vmem:[%s9190_s5 + $0x18] sm:$0xff]  ;;  %v2453_v59 = vld [vmem:[%s9190_s5 + $0xa0] sm:$0xff]  ;;  %v2454_v50 = vld [vmem:[%s9190_s5 + $0xa8] sm:$0xff] }
 0x6c9   : > { %6306 = vrot.lane.b32.xlu0 %v6305_v3, %s9151_s3  ;;  %2308 = vmatprep.subr.bf16.mxu0 %v6407_v14  ;;  %v5794_v51 = vpack.c.bf16 %v2436_v36, %v2435_v33  ;;  %v5796_v52 = vpack.c.bf16 %v2454_v50, %v2453_v59  ;;  %v2437_v53 = vld [vmem:[%s9190_s5 + $0x20] sm:$0xff]  ;;  %v2438_v56 = vld [vmem:[%s9190_s5 + $0x28] sm:$0xff]  ;;  %v2455_v58 = vld [vmem:[%s9190_s5 + $0xb0] sm:$0xff] }
 0x6ca   : > { %6301 = vrot.lane.b32.xlu1 %v6300_v10, %s9151_s3  ;;  %5789 = vmatprep.subr.bf16.mxu1 %v5788_v9  ;;  %v2456_v54 = vld [vmem:[%s9190_s5 + $0xb8] sm:$0xff]  ;;  %v5798_v55 = vpack.c.bf16 %v2438_v56, %v2437_v53  ;;  %v2439_v39 = vld [vmem:[%s9190_s5 + $0x30] sm:$0xff]  ;;  %v2457_v43 = vld [vmem:[%s9190_s5 + $0xc0] sm:$0xff] }
 0x6cb   : > { %5791 = vmatpush3.bf16.msra.mxu1 %v5790_v25  ;;  %v5800_v61 = vpack.c.bf16 %v2456_v54, %v2455_v58  ;;  %v2440_v40 = vld [vmem:[%s9190_s5 + $0x38] sm:$0xff]  ;;  %v2458_v63 = vld [vmem:[%s9190_s5 + $0xc8] sm:$0xff]  ;;  %v2441_v0 = vld [vmem:[%s9190_s5 + $0x40] sm:$0xff] }
 0x6cc   : > { %2309 = vmatpush1.bf16.msra.mxu0 %v6405_v22  ;;  %5793 = vmatprep.subr.bf16.mxu1 %v5792_v28  ;;  %v5802_v62 = vpack.c.bf16 %v2440_v40, %v2439_v39  ;;  %v5804_v2 = vpack.c.bf16 %v2458_v63, %v2457_v43  ;;  %v2442_v1 = vld [vmem:[%s9190_s5 + $0x48] sm:$0xff]  ;;  %v2459_v3 = vld [vmem:[%s9190_s5 + $0xd0] sm:$0xff]  ;;  %v2460_v6 = vld [vmem:[%s9190_s5 + $0xd8] sm:$0xff] }
 0x6cd   : > { %2310 = vmatprep.subr.bf16.mxu0 %v6410_v15  ;;  %v5806_v4 = vpack.c.bf16 %v2442_v1, %v2441_v0  ;;  %v5808_v8 = vpack.c.bf16 %v2460_v6, %v2459_v3  ;;  %v2443_v10 = vld [vmem:[%s9190_s5 + $0x50] sm:$0xff]  ;;  %v2444_v11 = vld [vmem:[%s9190_s5 + $0x58] sm:$0xff]  ;;  %v2461_v12 = vld [vmem:[%s9190_s5 + $0xe0] sm:$0xff] }
 0x6ce   : > { %6311 = vrot.lane.b32.xlu1 %v6310_v13, %s9151_s3  ;;  %v2462_v14 = vld [vmem:[%s9190_s5 + $0xe8] sm:$0xff]  ;;  %v5810_v20 = vpack.c.bf16 %v2444_v11, %v2443_v10  ;;  %v6446_v60 = vld [vmem:[%s7248_s10 + $0x214] ss:$8 sps:$4 sm:$0xff]   ;;  %v6444_v25 = vld [vmem:[%s7248_s10 + $0x210] ss:$8 sps:$4 sm:$0xff]  }
 0x6cf   : > { %5795 = vmatpush3.bf16.msra.mxu1 %v5794_v51  ;;  %v5812_v13 = vpack.c.bf16 %v2462_v14, %v2461_v12  ;;  %v6449_v59 = vld [vmem:[%s7248_s10 + $0x224] ss:$8 sps:$4 sm:$0xff]   ;;  %v6447_v53 = vld [vmem:[%s7248_s10 + $0x220] ss:$8 sps:$4 sm:$0xff]   ;;  %v6452_v56 = vld [vmem:[%s7248_s10 + $0x234] ss:$8 sps:$4 sm:$0xff]  }
 0x6d0   : > { %2311 = vmatpush1.bf16.msra.mxu0 %v6408_v17  ;;  %5797 = vmatprep.subr.bf16.mxu1 %v5796_v52  ;;  %v6450_v58 = vld [vmem:[%s7248_s10 + $0x230] ss:$8 sps:$4 sm:$0xff]   ;;  %v6455_v54 = vld [vmem:[%s7248_s10 + $0x244] ss:$8 sps:$4 sm:$0xff]   ;;  %v6459_v43 = vld [vmem:[%s7248_s10 + $0x260] ss:$8 sps:$4 sm:$0xff]  }
 0x6d1   : > { %2312 = vmatprep.subr.bf16.mxu0 %v6413_v19  ;;  %v6456_v39 = vld [vmem:[%s7248_s10 + $0x250] ss:$8 sps:$4 sm:$0xff]   ;;  %v6461_v40 = vld [vmem:[%s7248_s10 + $0x264] ss:$8 sps:$4 sm:$0xff]   ;;  %v6464_v63 = vld [vmem:[%s7248_s10 + $0x274] ss:$8 sps:$4 sm:$0xff]  }
 0x6d2   : > { %v6465_v0 = vld [vmem:[%s7248_s10 + $0x280] ss:$8 sps:$4 sm:$0xff]   ;;  %v6470_v1 = vld [vmem:[%s7248_s10 + $0x294] ss:$8 sps:$4 sm:$0xff]   ;;  %v6468_v3 = vld [vmem:[%s7248_s10 + $0x290] ss:$8 sps:$4 sm:$0xff]  }
 0x6d3   : > { %5799 = vmatpush3.bf16.msra.mxu1 %v5798_v55  ;;  %v6453_v55 = vld [vmem:[%s7248_s10 + $0x240] ss:$8 sps:$4 sm:$0xff]   ;;  %v6473_v6 = vld [vmem:[%s7248_s10 + $0x2a4] ss:$8 sps:$4 sm:$0xff]   ;;  %v6474_v10 = vld [vmem:[%s7248_s10 + $0x2b0] ss:$8 sps:$4 sm:$0xff]  }
 0x6d4   : > { %2313 = vmatpush1.bf16.msra.mxu0 %v6411_v21  ;;  %5801 = vmatprep.subr.bf16.mxu1 %v5800_v61  ;;  %v6458_v61 = vld [vmem:[%s7248_s10 + $0x254] ss:$8 sps:$4 sm:$0xff]   ;;  %v6479_v11 = vld [vmem:[%s7248_s10 + $0x2c4] ss:$8 sps:$4 sm:$0xff]   ;;  %v6477_v12 = vld [vmem:[%s7248_s10 + $0x2c0] ss:$8 sps:$4 sm:$0xff]  }
 0x6d5   : > { %2314 = vmatprep.subr.bf16.mxu0 %v6416_v24  ;;  %v6482_v14 = vld [vmem:[%s7248_s10 + $0x2d4] ss:$8 sps:$4 sm:$0xff]  }
 0x6d7   : > { %5803 = vmatpush3.bf16.msra.mxu1 %v5802_v62  ;;  %v6462_v62 = vld [vmem:[%s7248_s10 + $0x270] ss:$8 sps:$4 sm:$0xff]  }
 0x6d8   : > { %2315 = vmatpush1.bf16.msra.mxu0 %v6414_v26  ;;  %5805 = vmatprep.subr.bf16.mxu1 %v5804_v2  ;;  %v6467_v2 = vld [vmem:[%s7248_s10 + $0x284] ss:$8 sps:$4 sm:$0xff]  }
 0x6d9   : > { %2316 = vmatprep.subr.bf16.mxu0 %v6419_v27  ;;  %v1473_v27 = vld [vmem:[#allocation3 + $0x10] sm:$0xff] }
 0x6db   : > { %5807 = vmatpush3.bf16.msra.mxu1 %v5806_v4  ;;  %v6471_v4 = vld [vmem:[%s7248_s10 + $0x2a0] ss:$8 sps:$4 sm:$0xff]  }
 0x6dc   : > { %2317 = vmatpush1.bf16.msra.mxu0 %v6417_v29  ;;  %5809 = vmatprep.subr.bf16.mxu1 %v5808_v8  ;;  %v6476_v8 = vld [vmem:[%s7248_s10 + $0x2b4] ss:$8 sps:$4 sm:$0xff]  }
 0x6dd   : > { %2318 = vmatprep.subr.bf16.mxu0 %v6422_v30 }
 0x6df   : > { %5811 = vmatpush3.bf16.msra.mxu1 %v5810_v20  ;;  %v6480_v20 = vld [vmem:[%s7248_s10 + $0x2d0] ss:$8 sps:$4 sm:$0xff]  }
 0x6e0   : > { %2319 = vmatpush1.bf16.msra.mxu0 %v6420_v31  ;;  %5813 = vmatprep.subr.bf16.mxu1 %v5812_v13  ;;  %v6485_v13 = vld [vmem:[%s7248_s10 + $0x2e4] ss:$8 sps:$4 sm:$0xff]  }
 0x6e1   : > { %2320 = vmatprep.subr.bf16.mxu0 %v6425_v34 }
 0x6e4   : > { %2321 = vmatpush1.bf16.msra.mxu0 %v6423_v35 }
 0x6e5   : > { %2322 = vmatprep.subr.bf16.mxu0 %v6428_v38 }
 0x6e8   : > { %2323 = vmatpush1.bf16.msra.mxu0 %v6426_v7 }
 0x6e9   : > { %2324 = vmatprep.subr.bf16.mxu0 %v6431_v41 }
 0x6ec   : > { %2325 = vmatpush1.bf16.msra.mxu0 %v6429_v44 }
 0x6ed   : > { %2326 = vmatprep.subr.bf16.mxu0 %v6434_v46 }
 0x6f0   : > { %2327 = vmatpush1.bf16.msra.mxu0 %v6432_v47 }
 0x6f1   : > { %2328 = vmatprep.subr.bf16.mxu0 %v6437_v49 }
 0x6f4   : > { %2329 = vmatpush1.bf16.msra.mxu0 %v6435_v37 }
 0x6f5   : > { %2330 = vmatprep.subr.bf16.mxu0 %v6440_v42 }
 0x6f8   : > { %2331 = vmatpush1.bf16.msra.mxu0 %v6438_v45  ;;  %v6441_v45 = vld [vmem:[%s7248_s10 + $0x200] ss:$8 sps:$4 sm:$0xff]  }
 0x6f9   : > { %2343 = vmatprep.subr.bf16.mxu0 %v6443_v48 }
 0x730   : > { %v6287_v22 = vpop.permute.xlu0 %6286 }
 0x731   : > { %v6288_v15 = vunpack.i.l.bf16 %v6287_v22  ;;  %v6289_v17 = vunpack.i.h.bf16 %v6287_v22  ;;  %v6483_v22 = vld [vmem:[%s7248_s10 + $0x2e0] ss:$8 sps:$4 sm:$0xff]  }
 0x733   : > { %v1582_v31 = vsel %vm1526_vm12, %v1473_v27, %v6288_v15  ;;  %v1527_v41 = vsel %vm1526_vm12, %v6288_v15, %v6289_v17  ;;  %v6488_v15 = vld [vmem:[%s7248_s10 + $0x2f4] ss:$8 sps:$4 sm:$0xff]   ;;  %v6929_v27 = vmov 0  }
 0x737   : > { %v6297_v19 = vpop.permute.xlu0 %6296 }
 0x738   : > { %v6299_v21 = vunpack.i.h.bf16 %v6297_v19  ;;  %v6298_v24 = vunpack.i.l.bf16 %v6297_v19  ;;  %v6292_v26 = vpop.permute.xlu1 %6291  ;;  %v6491_v19 = vld [vmem:[%s7248_s10 + $0x304] ss:$8 sps:$4 sm:$0xff]  }
 0x739   : > { %v6294_v29 = vunpack.i.h.bf16 %v6292_v26  ;;  %v6293_v30 = vunpack.i.l.bf16 %v6292_v26  ;;  %v6492_v26 = vld [vmem:[%s7248_s10 + $0x310] ss:$8 sps:$4 sm:$0xff]  }
 0x73a   : > { %v1528_v34 = vsel %vm1526_vm12, %v6289_v17, %v6298_v24  ;;  %v6486_v17 = vld [vmem:[%s7248_s10 + $0x2f0] ss:$8 sps:$4 sm:$0xff]   ;;  %v6494_v24 = vld [vmem:[%s7248_s10 + $0x314] ss:$8 sps:$4 sm:$0xff]  }
 0x73b   : > { %v1530_v35 = vsel %vm1526_vm12, %v6294_v29, %v6299_v21  ;;  %v1583_v38 = vsel %vm1526_vm12, %v7882_v32, %v6293_v30  ;;  %v6307_v7 = vpop.permute.xlu0 %6306  ;;  %v1529_v44 = vsel %vm1526_vm12, %v6293_v30, %v6294_v29  ;;  %v6489_v21 = vld [vmem:[%s7248_s10 + $0x300] ss:$8 sps:$4 sm:$0xff]   ;;  %v6497_v29 = vld [vmem:[%s7248_s10 + $0x324] ss:$8 sps:$4 sm:$0xff]  }
 0x73c   : > { %v1588_v46 = vpack.c.bf16 %v1583_v38, %v1582_v31  ;;  %v6309_v47 = vunpack.i.h.bf16 %v6307_v7  ;;  %v6308_v49 = vunpack.i.l.bf16 %v6307_v7  ;;  %v6302_v37 = vpop.permute.xlu1 %6301  ;;  %v1589_v42 = vpack.c.bf16 %v1529_v44, %v1527_v41  ;;  %v6495_v30 = vld [vmem:[%s7248_s10 + $0x320] ss:$8 sps:$4 sm:$0xff]   ;;  %v6500_v31 = vld [vmem:[%s7248_s10 + $0x334] ss:$8 sps:$4 sm:$0xff]   ;;  %v6504_v41 = vld [vmem:[%s7248_s10 + $0x350] ss:$8 sps:$4 sm:$0xff]  }
 0x73d   : > { %v6304_v48 = vunpack.i.h.bf16 %v6302_v37  ;;  %v6303_v57 = vunpack.i.l.bf16 %v6302_v37  ;;  %v6501_v38 = vld [vmem:[%s7248_s10 + $0x340] ss:$8 sps:$4 sm:$0xff]   ;;  %v6506_v7 = vld [vmem:[%s7248_s10 + $0x354] ss:$8 sps:$4 sm:$0xff]  }
 0x73e   : > { %v8026_v5 = vsel %vm1571_vm13, %v1530_v35, %v6308_v49  ;;  %2332 = vmatprep.mubr.bf16.mxu0 %v1589_v42  ;;  %v1574_v32 = vsel %vm1571_vm13, %v6308_v49, %v6309_v47  ;;  %v6503_v35 = vld [vmem:[%s7248_s10 + $0x344] ss:$8 sps:$4 sm:$0xff]   ;;  %v2445_v44 = vld [vmem:[%s9190_s5 + $0x60] sm:$0xff]  ;;  %v2464_v37 = vld [vmem:[%s9190_s5 + $0xf8] sm:$0xff] }
 0x73f   : > { %v8030_v9 = vsel %vm1571_vm13, %v1528_v34, %v6303_v57  ;;  %2333 = vmatmul.mubr.bf16.vlgmr.msra.gmra.mrb[0].mxu0 %v1588_v46  ;;  %v1572_v16 = vsel %vm1571_vm13, %v6303_v57, %v6304_v48  ;;  %v6498_v34 = vld [vmem:[%s7248_s10 + $0x330] ss:$8 sps:$4 sm:$0xff]   ;;  %v2446_v46 = vld [vmem:[%s9190_s5 + $0x68] sm:$0xff]  ;;  %v2463_v49 = vld [vmem:[%s9190_s5 + $0xf0] sm:$0xff]  ;;  %s9193_s10 = smov 64  }
 0x740   : > { %v1590_v18 = vpack.c.bf16 %v8026_v5, %v8030_v9  ;;  %2344 = vmatpush1.bf16.msra.mxu0 %v6441_v45  ;;  %v6312_v23 = vpop.permute.xlu1 %6311  ;;  %v1591_v28 = vpack.c.bf16 %v1574_v32, %v1572_v16  ;;  %v5816_v42 = vpack.c.bf16 %v2464_v37, %v2463_v49  ;;  %v2447_v45 = vld [vmem:[%s9190_s5 + $0x70] sm:$0xff]  ;;  %v1701_v9 = vld [vmem:[%s7282_s19] sm:$0x3]  ;;  %v2680_v49 = vld [vmem:[%s9191_s14 + $0x98] sm:$0xff] }
 0x741   : > { %v6314_v33 = vunpack.i.h.bf16 %v6312_v23  ;;  %v6313_v36 = vunpack.i.l.bf16 %v6312_v23  ;;  %2345 = vmatprep.subr.bf16.mxu0 %v6446_v60  ;;  %v1703_v60 = vlaneseq }
 0x742   : > { %2375 = vmatprep.mubr.bf16.mxu0 %v1591_v28 }
 0x743   : > { %v8038_v50 = vsel %vm1571_vm13, %v6309_v47, %v6314_v33  ;;  %v8041_v51 = vsel %vm1571_vm13, %v6304_v48, %v6313_v36  ;;  %v5814_v47 = vpack.c.bf16 %v2446_v46, %v2445_v44  ;;  %v2448_v48 = vld [vmem:[%s9190_s5 + $0x78] sm:$0xff]  ;;  %v1704_v5 = vshrl.u32 %v1703_v60, 7  ;;  %v2662_v44 = vld [vmem:[%s9191_s14 + $0x8] sm:$0xff]  ;;  %v2663_v60 = vld [vmem:[%s9191_s14 + $0x10] sm:$0xff] }
 0x744   : > { %v1592_v52 = vpack.c.bf16 %v8038_v50, %v8041_v51  ;;  %2346 = vmatpush1.bf16.msra.mxu0 %v6444_v25  ;;  %v5818_v57 = vpack.c.bf16 %v2448_v48, %v2447_v45 }
 0x745   : > { %2347 = vmatprep.subr.bf16.mxu0 %v6449_v59  ;;  %5815 = vmatpush3.bf16.msra.mxu1 %v5814_v47  ;;  %v8110_v32 = vsub.s32 0, %v1704_v5  ;;  %v8113_v16 = vsub.s32 1, %v1704_v5  ;;  %v2679_v47 = vld [vmem:[%s9191_s14 + $0x90] sm:$0xff]  ;;  %v2664_v5 = vld [vmem:[%s9191_s14 + $0x18] sm:$0xff] }
 0x746   : > { %5817 = vmatprep.subr.bf16.mxu1 %v5816_v42 }
 0x747   : > { %v1710_v23 = vrot.slane %v1701_v9, %v8113_v16 }
 0x748   : > { %2348 = vmatpush1.bf16.msra.mxu0 %v6447_v53 }
 0x749   : > { %2349 = vmatprep.subr.bf16.mxu0 %v6452_v56  ;;  %5819 = vmatpush3.bf16.msra.mxu1 %v5818_v57  ;;  %v5840_v57 = vpack.c.bf16 %v2680_v49, %v2679_v47 }
 0x74c   : > { %2350 = vmatpush1.bf16.msra.mxu0 %v6450_v58 }
 0x74d   : > { %2351 = vmatprep.subr.bf16.mxu0 %v6455_v54 }
 0x750   : > { %2352 = vmatpush1.bf16.msra.mxu0 %v6453_v55  ;;  %v2555_v55 = vld [vmem:[#allocation9 + $0x8] sm:$0xff] }
 0x751   : > { %2353 = vmatprep.subr.bf16.mxu0 %v6458_v61  ;;  %v2557_v61 = vld [vmem:[#allocation9 + $0x18] sm:$0xff] }
 0x754   : > { %2354 = vmatpush1.bf16.msra.mxu0 %v6456_v39  ;;  %v5820_v39 = vpack.c.bf16 %v2557_v61, %v2555_v55  ;;  %v2683_v61 = vld [vmem:[%s9191_s14 + $0xb0] sm:$0xff] }
 0x755   : > { %2355 = vmatprep.subr.bf16.mxu0 %v6461_v40  ;;  %v2554_v40 = vld [vmem:[#allocation9] sm:$0xff] }
 0x756   : > { %5821 = vmatprep.subr.bf16.mxu1 %v5820_v39  ;;  %v2684_v39 = vld [vmem:[%s9191_s14 + $0xb8] sm:$0xff] }
 0x758   : > { %2356 = vmatpush1.bf16.msra.mxu0 %v6459_v43  ;;  %v2556_v43 = vld [vmem:[#allocation9 + $0x10] sm:$0xff] }
 0x759   : > { %2357 = vmatprep.subr.bf16.mxu0 %v6464_v63  ;;  %v5822_v63 = vpack.c.bf16 %v2556_v43, %v2554_v40  ;;  %v5848_v43 = vpack.c.bf16 %v2684_v39, %v2683_v61  ;;  %v2803_v39 = vld [vmem:[#allocation8 + $0x68] sm:$0xff] }
 0x75c   : > { %2358 = vmatpush1.bf16.msra.mxu0 %v6462_v62  ;;  %v2559_v62 = vld [vmem:[#allocation9 + $0x28] sm:$0xff] }
 0x75d   : > { %2359 = vmatprep.subr.bf16.mxu0 %v6467_v2  ;;  %v2561_v2 = vld [vmem:[#allocation9 + $0x38] sm:$0xff] }
 0x760   : > { %2360 = vmatpush1.bf16.msra.mxu0 %v6465_v0  ;;  %v5824_v0 = vpack.c.bf16 %v2561_v2, %v2559_v62  ;;  %v2668_v62 = vld [vmem:[%s9191_s14 + $0x38] sm:$0xff] }
 0x761   : > { %2361 = vmatprep.subr.bf16.mxu0 %v6470_v1  ;;  %v2558_v1 = vld [vmem:[#allocation9 + $0x20] sm:$0xff] }
 0x764   : > { %2362 = vmatpush1.bf16.msra.mxu0 %v6468_v3  ;;  %v2560_v3 = vld [vmem:[#allocation9 + $0x30] sm:$0xff] }
 0x765   : > { %2363 = vmatprep.subr.bf16.mxu0 %v6473_v6  ;;  %v5826_v6 = vpack.c.bf16 %v2560_v3, %v2558_v1  ;;  %v2686_v1 = vld [vmem:[%s9191_s14 + $0xc8] sm:$0xff] }
 0x768   : > { %2364 = vmatpush1.bf16.msra.mxu0 %v6471_v4  ;;  %v2563_v4 = vld [vmem:[#allocation9 + $0x48] sm:$0xff] }
 0x769   : > { %2365 = vmatprep.subr.bf16.mxu0 %v6476_v8  ;;  %v2565_v8 = vld [vmem:[#allocation9 + $0x58] sm:$0xff] }
 0x76c   : > { %2366 = vmatpush1.bf16.msra.mxu0 %v6474_v10  ;;  %v2562_v10 = vld [vmem:[#allocation9 + $0x40] sm:$0xff] }
 0x76d   : > { %2367 = vmatprep.subr.bf16.mxu0 %v6479_v11  ;;  %v5828_v11 = vpack.c.bf16 %v2565_v8, %v2563_v4  ;;  %v2670_v4 = vld [vmem:[%s9191_s14 + $0x48] sm:$0xff] }
 0x770   : > { %2368 = vmatpush1.bf16.msra.mxu0 %v6477_v12  ;;  %v2564_v12 = vld [vmem:[#allocation9 + $0x50] sm:$0xff] }
 0x771   : > { %2369 = vmatprep.subr.bf16.mxu0 %v6482_v14  ;;  %v2567_v14 = vld [vmem:[#allocation9 + $0x68] sm:$0xff] }
 0x774   : > { %2370 = vmatpush1.bf16.msra.mxu0 %v6480_v20  ;;  %v2569_v20 = vld [vmem:[#allocation9 + $0x78] sm:$0xff] }
 0x775   : > { %2371 = vmatprep.subr.bf16.mxu0 %v6485_v13  ;;  %v6930_v13 = vmov 0.0  }
 0x778   : > { %2372 = vmatpush1.bf16.msra.mxu0 %v6483_v22  ;;  %v5830_v22 = vpack.c.bf16 %v2564_v12, %v2562_v10  ;;  %v2687_v10 = vld [vmem:[%s9191_s14 + $0xd0] sm:$0xff] }
 0x779   : > { %2373 = vmatprep.subr.bf16.mxu0 %v6488_v15  ;;  %v5832_v15 = vpack.c.bf16 %v2569_v20, %v2567_v14  ;;  %v2671_v14 = vld [vmem:[%s9191_s14 + $0x50] sm:$0xff]  ;;  %v2672_v20 = vld [vmem:[%s9191_s14 + $0x58] sm:$0xff] }
 0x77c   : > { %2374 = vmatpush1.bf16.msra.mxu0 %v6486_v17  ;;  %v2566_v17 = vld [vmem:[#allocation9 + $0x60] sm:$0xff] }
 0x77d   : > { %2386 = vmatprep.subr.bf16.mxu0 %v6491_v19  ;;  %v2568_v19 = vld [vmem:[#allocation9 + $0x70] sm:$0xff] }
 0x77f   : > { %2376 = vmatmul.mubr.bf16.vlgmr.msra.gmra.mrb[0].mxu0 %v1590_v18  ;;  %v1706_v18 = vrot.slane %v1701_v9, %v8110_v32 }
 0x780   : > { %2387 = vmatpush1.bf16.msra.mxu0 %v6489_v21  ;;  %2418 = vmatprep.mubr.bf16.mxu0 %v6929_v27  ;;  %v5834_v21 = vpack.c.bf16 %v2568_v19, %v2566_v17  ;;  %v2690_v17 = vld [vmem:[%s9191_s14 + $0xe8] sm:$0xff] }
 0x781   : > { %2388 = vmatprep.subr.bf16.mxu0 %v6494_v24  ;;  %v2677_v24 = vld [vmem:[%s9191_s14 + $0x80] sm:$0xff] }
 0x784   : > { %2389 = vmatpush1.bf16.msra.mxu0 %v6492_v26  ;;  %v2678_v26 = vld [vmem:[%s9191_s14 + $0x88] sm:$0xff] }
 0x785   : > { %2390 = vmatprep.subr.bf16.mxu0 %v6497_v29  ;;  %v5836_v29 = vpack.c.bf16 %v2678_v26, %v2677_v24  ;;  %v2674_v24 = vld [vmem:[%s9191_s14 + $0x68] sm:$0xff] }
 0x788   : > { %2391 = vmatpush1.bf16.msra.mxu0 %v6495_v30 }
 0x789   : > { %2392 = vmatprep.subr.bf16.mxu0 %v6500_v31 }
 0x78c   : > { %2393 = vmatpush1.bf16.msra.mxu0 %v6498_v34 }
 0x78d   : > { %2394 = vmatprep.subr.bf16.mxu0 %v6503_v35 }
 0x790   : > { %2395 = vmatpush1.bf16.msra.mxu0 %v6501_v38 }
 0x791   : > { %2396 = vmatprep.subr.bf16.mxu0 %v6506_v7 }
 0x794   : > { %2397 = vmatpush1.bf16.msra.mxu0 %v6504_v41  ;;  %v2661_v41 = vld [vmem:[%s9191_s14] sm:$0xff] }
 0x795   : > { %v5838_v45 = vpack.c.bf16 %v2662_v44, %v2661_v41 }
 0x797   : > { %5160 = vmatmul.mubr.msk.bf16.vlgmr.msra.gmra.mrb[0].mxu0 %vm2253_vm14, %v1592_v52 }
 0x86a   : > { %v2420_v25 = vpop.f32.mrb[0].mxu0 }
 0x86b   : > { %v8117_v28 = vadd.f32 %v2420_v25, %v1706_v18  ;;  %v2422_v33 = vpop.f32.mrb[1].mxu0  ;;  %v2682_v25 = vld [vmem:[%s9191_s14 + $0xa8] sm:$0xff] }
 0x86c   : > { %v8119_v36 = vadd.f32 %v2422_v33, %v1710_v23  ;;  %v2424_v59 = vpop.f32.mrb[2].mxu0 }
 0x86d   : > { %v2426_v50 = vpop.f32.mrb[3].mxu0  ;;  %v2429_v53 = vmul.f32 %v8117_v28, %v8117_v28  ;;  %v8127_v56 = vadd.f32 %v2424_v59, %v1706_v18 }
 0x86e   : > { %v8121_v51 = vadd.f32 %v2426_v50, %v1710_v23  ;;  %v2430_v52 = vmul.f32 %v8119_v36, %v8119_v36  ;;  %v2681_v23 = vld [vmem:[%s9191_s14 + $0xa0] sm:$0xff]  ;;  %v5842_v50 = vpack.c.bf16 %v2664_v5, %v2663_v60 }
 0x86f   : > { %v2431_v54 = vmul.f32 %v8127_v56, %v8127_v56 }
 0x870   : > { %v2432_v58 = vmul.f32 %v8121_v51, %v8121_v51  ;;  %2529 = vmatprep.mubr.f32.mxu1 %v2430_v52 }
 0x871   : > { %2530 = vmatmul.mubr.f32.vlgmr.msra.gmra.mrb[0].mxu1 %v2429_v53  ;;  %v5844_v53 = vpack.c.bf16 %v2682_v25, %v2681_v23  ;;  %v2795_v25 = vld [vmem:[#allocation8 + $0x28] sm:$0xff] }
 0x872   : > { %2534 = vmatprep.mubr.f32.mxu1 %v2432_v58  ;;  %5823 = vmatpush1.bf16.msra.mxu1 %v5822_v63  ;;  %v2665_v58 = vld [vmem:[%s9191_s14 + $0x20] sm:$0xff]  ;;  %v2667_v63 = vld [vmem:[%s9191_s14 + $0x30] sm:$0xff] }
 0x873   : > { %5825 = vmatprep.subr.bf16.mxu1 %v5824_v0  ;;  %v5850_v2 = vpack.c.bf16 %v2668_v62, %v2667_v63  ;;  %v2685_v0 = vld [vmem:[%s9191_s14 + $0xc0] sm:$0xff]  ;;  %v2804_v62 = vld [vmem:[#allocation8 + $0x70] sm:$0xff] }
 0x874   : > { %v5852_v3 = vpack.c.bf16 %v2686_v1, %v2685_v0 }
 0x875   : > { %2535 = vmatmul.mubr.f32.gmra.mrb[2].mxu1 %v2431_v54  ;;  %v2666_v54 = vld [vmem:[%s9191_s14 + $0x28] sm:$0xff] }
 0x876   : > { %5827 = vmatpush1.bf16.msra.mxu1 %v5826_v6  ;;  %2640 = vmatprep.mubr.f32.mxu1 %v6930_v13  ;;  %v5846_v40 = vpack.c.bf16 %v2666_v54, %v2665_v58  ;;  %v2669_v6 = vld [vmem:[%s9191_s14 + $0x40] sm:$0xff]  ;;  %v2798_v54 = vld [vmem:[#allocation8 + $0x40] sm:$0xff] }
 0x877   : > { %5829 = vmatprep.subr.bf16.mxu1 %v5828_v11  ;;  %v5854_v8 = vpack.c.bf16 %v2670_v4, %v2669_v6  ;;  %v2688_v11 = vld [vmem:[%s9191_s14 + $0xd8] sm:$0xff] }
 0x878   : > { %v5856_v12 = vpack.c.bf16 %v2688_v11, %v2687_v10 }
 0x87a   : > { %5831 = vmatpush1.bf16.msra.mxu1 %v5830_v22  ;;  %v5858_v22 = vpack.c.bf16 %v2672_v20, %v2671_v14 }
 0x87b   : > { %5833 = vmatprep.subr.bf16.mxu1 %v5832_v15  ;;  %v2689_v15 = vld [vmem:[%s9191_s14 + $0xe0] sm:$0xff] }
 0x87c   : > { %v5860_v19 = vpack.c.bf16 %v2690_v17, %v2689_v15 }
 0x87e   : > { %5835 = vmatpush1.bf16.msra.mxu1 %v5834_v21  ;;  %v2673_v21 = vld [vmem:[%s9191_s14 + $0x60] sm:$0xff] }
 0x87f   : > { %5837 = vmatprep.subr.bf16.mxu1 %v5836_v29  ;;  %v5862_v26 = vpack.c.bf16 %v2674_v24, %v2673_v21  ;;  %v2691_v29 = vld [vmem:[%s9191_s14 + $0xf0] sm:$0xff] }
 0x944   : > { %v5400_v30 = vpop.f32.mrb[0].mxu1 }
 0x945   : > { %v5401_v31 = vpop.f32.mrb[1].mxu1 }
 0x946   : > { %v5402_v34 = vadd.f32 %v5401_v31, %v5400_v30  ;;  %v2692_v30 = vld [vmem:[%s9191_s14 + $0xf8] sm:$0xff] }
 0x947   : > { %v5864_v31 = vpack.c.bf16 %v2692_v30, %v2691_v29 }
 0x948   : > { %6669 = vrsqrt.f32 %v5402_v34  ;;  %v5403_v35 = vpop.f32.mrb[2].mxu1  ;;  %vm2542_vm15 = vcmp.eq.f32.partialorder %v5402_v34, inf  ;;  %v2545_v42 = vand.u32 2147483648, %v5402_v34  ;;  %vm2544_vm0 = vcmp.eq.f32.partialorder %v5402_v34, 0.0 }
 0x949   : > { %v5404_v38 = vpop.f32.mrb[3].mxu1 }
 0x94a   : > { %v5405_v7 = vadd.f32 %v5404_v38, %v5403_v35  ;;  %v2676_v35 = vld [vmem:[%s9191_s14 + $0x78] sm:$0xff] }
 0x94c   : > { %6671 = vrsqrt.f32 %v5405_v7  ;;  %vm2549_vm1 = vcmp.eq.f32.partialorder %v5405_v7, inf  ;;  %v2552_v59 = vand.u32 2147483648, %v5405_v7  ;;  %vm2551_vm2 = vcmp.eq.f32.partialorder %v5405_v7, 0.0 }
 0x952   : > { %v6670_v46 = vpop.eup %6669 }
 0x953   : > { %v2541_v37 = vmul.f32 %v6670_v46, %v5402_v34 }
 0x955   : > { %v2543_v48 = vsel %vm2542_vm15, %v5402_v34, %v2541_v37  ;;  %v2675_v34 = vld [vmem:[%s9191_s14 + $0x70] sm:$0xff] }
 0x956   : > { %v6672_v9 = vpop.eup %6671  ;;  %v2546_v18 = vsel %vm2544_vm0, %v2545_v42, %v2543_v48  ;;  %v5866_v38 = vpack.c.bf16 %v2676_v35, %v2675_v34 }
 0x957   : > { %5161 = vmatmul.mubr.msk.f32.vlgmr.msra.gmra.mrb[4].mxu1 %vm1571_vm13, %v2546_v18  ;;  %v2548_v33 = vmul.f32 %v6672_v9, %v5405_v7  ;;  %v2790_v9 = vld [vmem:[#allocation8] sm:$0xff]  ;;  %v2792_v18 = vld [vmem:[#allocation8 + $0x10] sm:$0xff] }
 0x958   : > { %2646 = vmatprep.mubr.f32.mxu1 %v6930_v13  ;;  %5839 = vmatpush3.bf16.msra.mxu1 %v5838_v45  ;;  %v5870_v23 = vpack.c.bf16 %v2792_v18, %v2790_v9  ;;  %v6522_v9 = vld [vmem:[%s7256_s15 + $0x50] ss:$8 sps:$4 sm:$0xff]   ;;  %v6527_v18 = vld [vmem:[%s7256_s15 + $0x64] ss:$8 sps:$4 sm:$0xff]  }
 0x959   : > { %v2550_v52 = vsel %vm2549_vm1, %v5405_v7, %v2548_v33  ;;  %5841 = vmatprep.subr.bf16.mxu1 %v5840_v57 }
 0x95a   : > { %v2553_v55 = vsel %vm2551_vm2, %v2552_v59, %v2550_v52  ;;  %v2794_v59 = vld [vmem:[#allocation8 + $0x20] sm:$0xff]  ;;  %v2799_v52 = vld [vmem:[#allocation8 + $0x48] sm:$0xff] }
 0x95b   : > { %5162 = vmatmul.mubr.msk.f32.gmra.mrb[6].mxu1 %vm1571_vm13, %v2553_v55  ;;  %v2800_v55 = vld [vmem:[#allocation8 + $0x50] sm:$0xff] }
 0x95c   : > { %5843 = vmatpush3.bf16.msra.mxu1 %v5842_v50  ;;  %v5878_v61 = vpack.c.bf16 %v2800_v55, %v2798_v54  ;;  %v6540_v54 = vld [vmem:[%s7256_s15 + $0xb0] ss:$8 sps:$4 sm:$0xff]   ;;  %v6545_v55 = vld [vmem:[%s7256_s15 + $0xc4] ss:$8 sps:$4 sm:$0xff]  }
 0x95d   : > { %5845 = vmatprep.subr.bf16.mxu1 %v5844_v53  ;;  %v2801_v53 = vld [vmem:[#allocation8 + $0x58] sm:$0xff] }
 0x95e   : > { %v5876_v58 = vpack.c.bf16 %v2801_v53, %v2799_v52  ;;  %v6539_v52 = vld [vmem:[%s7256_s15 + $0xa4] ss:$8 sps:$4 sm:$0xff]   ;;  %v6537_v53 = vld [vmem:[%s7256_s15 + $0xa0] ss:$8 sps:$4 sm:$0xff]  }
 0x960   : > { %5847 = vmatpush3.bf16.msra.mxu1 %v5846_v40  ;;  %v2805_v40 = vld [vmem:[#allocation8 + $0x78] sm:$0xff] }
 0x961   : > { %5849 = vmatprep.subr.bf16.mxu1 %v5848_v43  ;;  %v2802_v43 = vld [vmem:[#allocation8 + $0x60] sm:$0xff]  ;;  %v5880_v63 = vpack.c.bf16 %v2805_v40, %v2803_v39  ;;  %v6548_v39 = vld [vmem:[%s7256_s15 + $0xd4] ss:$8 sps:$4 sm:$0xff]   ;;  %v6546_v40 = vld [vmem:[%s7256_s15 + $0xd0] ss:$8 sps:$4 sm:$0xff]  }
 0x964   : > { %5851 = vmatpush3.bf16.msra.mxu1 %v5850_v2  ;;  %v5882_v2 = vpack.c.bf16 %v2804_v62, %v2802_v43  ;;  %v6551_v43 = vld [vmem:[%s7256_s15 + $0xe4] ss:$8 sps:$4 sm:$0xff]  }
 0x965   : > { %5853 = vmatprep.subr.bf16.mxu1 %v5852_v3 }
 0x968   : > { %5855 = vmatpush3.bf16.msra.mxu1 %v5854_v8 }
 0x969   : > { %5857 = vmatprep.subr.bf16.mxu1 %v5856_v12 }
 0x96c   : > { %5859 = vmatpush3.bf16.msra.mxu1 %v5858_v22 }
 0x96d   : > { %5861 = vmatprep.subr.bf16.mxu1 %v5860_v19 }
 0x970   : > { %5863 = vmatpush3.bf16.msra.mxu1 %v5862_v26 }
 0x971   : > { %5865 = vmatprep.subr.bf16.mxu1 %v5864_v31 }
 0x974   : > { %5867 = vmatpush3.bf16.msra.mxu1 %v5866_v38 }
 0xa2a   : > { %v2642_v7 = vpop.f32.mrb[4].mxu1 }
 0xa2b   : > { %6673 = vrcp.f32 %v2642_v7  ;;  %v2644_v41 = vpop.f32.mrb[5].mxu1  ;;  %v6507_v7 = vld [vmem:[%s7256_s15] ss:$8 sps:$4 sm:$0xff]  }
 0xa2c   : > { %6675 = vrcp.f32 %v2644_v41  ;;  %v6509_v41 = vld [vmem:[%s7256_s15 + $0x4] ss:$8 sps:$4 sm:$0xff]  }
 0xa2e   : > { %v2648_v44 = vpop.f32.mrb[6].mxu1 }
 0xa2f   : > { %6677 = vrcp.f32 %v2648_v44  ;;  %v2650_v46 = vpop.f32.mrb[7].mxu1  ;;  %v6512_v44 = vld [vmem:[%s7256_s15 + $0x14] ss:$8 sps:$4 sm:$0xff]  }
 0xa30   : > { %6679 = vrcp.f32 %v2650_v46  ;;  %v6510_v46 = vld [vmem:[%s7256_s15 + $0x10] ss:$8 sps:$4 sm:$0xff]  }
 0xa35   : > { %v6674_v47 = vpop.eup %6673 }
 0xa36   : > { %v6676_v49 = vpop.eup %6675  ;;  %v8237_v42 = vmul.f32 %v6674_v47, %v8117_v28  ;;  %v2791_v28 = vld [vmem:[#allocation8 + $0x8] sm:$0xff] }
 0xa37   : > { %v8234_v37 = vmul.f32 %v6676_v49, %v8119_v36  ;;  %v2793_v36 = vld [vmem:[#allocation8 + $0x18] sm:$0xff]  ;;  %v6515_v47 = vld [vmem:[%s7256_s15 + $0x24] ss:$8 sps:$4 sm:$0xff]   ;;  %v6513_v49 = vld [vmem:[%s7256_s15 + $0x20] ss:$8 sps:$4 sm:$0xff]  }
 0xa38   : > { %v5868_v5 = vpack.c.bf16 %v2793_v36, %v2791_v28  ;;  %v6521_v28 = vld [vmem:[%s7256_s15 + $0x44] ss:$8 sps:$4 sm:$0xff]   ;;  %v6519_v36 = vld [vmem:[%s7256_s15 + $0x40] ss:$8 sps:$4 sm:$0xff]  }
 0xa39   : > { %v6678_v45 = vpop.eup %6677  ;;  %2757 = vmatprep.mubr.f32.mxu1 %v8234_v37 }
 0xa3a   : > { %v6680_v48 = vpop.eup %6679  ;;  %2758 = vmatmul.mubr.f32.vlgmr.msra.gmra.mrb[8].mxu1 %v8237_v42  ;;  %v8245_v60 = vmul.f32 %v6678_v45, %v8127_v56  ;;  %5869 = vmatprep.subr.bf16.mxu1 %v5868_v5  ;;  %v2796_v56 = vld [vmem:[#allocation8 + $0x30] sm:$0xff] }
 0xa3b   : > { %v8242_v57 = vmul.f32 %v6680_v48, %v8121_v51  ;;  %5871 = vmatpush1.bf16.msra.mxu1 %v5870_v23  ;;  %v2797_v51 = vld [vmem:[#allocation8 + $0x38] sm:$0xff]  ;;  %v5874_v50 = vpack.c.bf16 %v2796_v56, %v2794_v59  ;;  %v6525_v23 = vld [vmem:[%s7256_s15 + $0x60] ss:$8 sps:$4 sm:$0xff]  }
 0xa3c   : > { %v5872_v33 = vpack.c.bf16 %v2797_v51, %v2795_v25  ;;  %v6518_v45 = vld [vmem:[%s7256_s15 + $0x34] ss:$8 sps:$4 sm:$0xff]   ;;  %v6516_v48 = vld [vmem:[%s7256_s15 + $0x30] ss:$8 sps:$4 sm:$0xff]   ;;  %v6531_v59 = vld [vmem:[%s7256_s15 + $0x80] ss:$8 sps:$4 sm:$0xff]  }
 0xa3d   : > { %2762 = vmatprep.mubr.f32.mxu1 %v8242_v57  ;;  %v6524_v5 = vld [vmem:[%s7256_s15 + $0x54] ss:$8 sps:$4 sm:$0xff]   ;;  %v6528_v51 = vld [vmem:[%s7256_s15 + $0x70] ss:$8 sps:$4 sm:$0xff]  }
 0xa3e   : > { %2763 = vmatmul.mubr.f32.gmra.mrb[10].mxu1 %v8245_v60  ;;  %5873 = vmatprep.subr.bf16.mxu1 %v5872_v33  ;;  %v6530_v25 = vld [vmem:[%s7256_s15 + $0x74] ss:$8 sps:$4 sm:$0xff]   ;;  %v6533_v33 = vld [vmem:[%s7256_s15 + $0x84] ss:$8 sps:$4 sm:$0xff]  }
 0xa3f   : > { %2876 = vmatprep.mubr.f32.mxu1 %v6930_v13  ;;  %5875 = vmatpush1.bf16.msra.mxu1 %v5874_v50  ;;  %v6536_v56 = vld [vmem:[%s7256_s15 + $0x94] ss:$8 sps:$4 sm:$0xff]   ;;  %v6534_v50 = vld [vmem:[%s7256_s15 + $0x90] ss:$8 sps:$4 sm:$0xff]  }
 0xa40   : > { %5877 = vmatprep.subr.bf16.mxu1 %v5876_v58  ;;  %v6542_v58 = vld [vmem:[%s7256_s15 + $0xb4] ss:$8 sps:$4 sm:$0xff]  }
 0xa43   : > { %5879 = vmatpush1.bf16.msra.mxu1 %v5878_v61  ;;  %v6543_v61 = vld [vmem:[%s7256_s15 + $0xc0] ss:$8 sps:$4 sm:$0xff]  }
 0xa44   : > { %5881 = vmatprep.subr.bf16.mxu1 %v5880_v63  ;;  %v6549_v63 = vld [vmem:[%s7256_s15 + $0xe0] ss:$8 sps:$4 sm:$0xff]  }
 0xa47   : > { %5883 = vmatpush1.bf16.msra.mxu1 %v5882_v2 }
 0xa48   : > { %3717 = vmatprep.subr.bf16.mxu1 %v6509_v41 }
 0xb0d   : > { %v5438_v0 = vpop.f32.mrb[8].mxu1 }
 0xb0e   : > { %v5439_v1 = vpop.f32.mrb[9].mxu1 }
 0xb0f   : > { %v5440_v3 = vadd.f32 %v5439_v1, %v5438_v0  ;;  %v6554_v1 = vld [vmem:[%s7256_s15 + $0xf4] ss:$8 sps:$4 sm:$0xff]  }
 0xb11   : > { %v2768_v6 = vmul.f32 0.044715, %v5440_v3  ;;  %v5441_v4 = vpop.f32.mrb[10].mxu1 }
 0xb12   : > { %v5442_v8 = vpop.f32.mrb[11].mxu1 }
 0xb13   : > { %v2770_v10 = vmul.f32 %v5440_v3, %v2768_v6  ;;  %v5443_v11 = vadd.f32 %v5442_v8, %v5441_v4  ;;  %v6552_v6 = vld [vmem:[%s7256_s15 + $0xf0] ss:$8 sps:$4 sm:$0xff]  }
 0xb15   : > { %v2772_v12 = vmul.f32 %v5440_v3, %v2770_v10  ;;  %v2769_v14 = vmul.f32 0.044715, %v5443_v11 }
 0xb17   : > { %v2774_v20 = vadd.f32 %v5440_v3, %v2772_v12  ;;  %v2771_v22 = vmul.f32 %v5443_v11, %v2769_v14 }
 0xb19   : > { %v5163_v15 = vmul.f32 -1.5957692, %v2774_v20  ;;  %v2773_v17 = vmul.f32 %v5443_v11, %v2771_v22 }
 0xb1b   : > { %v2780_v19 = vmul.f32 1.442695, %v5163_v15  ;;  %v2775_v21 = vadd.f32 %v5443_v11, %v2773_v17 }
 0xb1d   : > { %6681 = vpow2.f32 %v2780_v19  ;;  %v5164_v24 = vmul.f32 -1.5957692, %v2775_v21 }
 0xb1f   : > { %v2782_v26 = vmul.f32 1.442695, %v5164_v24 }
 0xb21   : > { %6683 = vpow2.f32 %v2782_v26 }
 0xb27   : > { %v6682_v29 = vpop.eup %6681 }
 0xb28   : > { %v2784_v30 = vadd.f32 1.0, %v6682_v29 }
 0xb2a   : > { %6685 = vrcp.f32 %v2784_v30 }
 0xb2b   : > { %v6684_v31 = vpop.eup %6683 }
 0xb2c   : > { %v2785_v34 = vadd.f32 1.0, %v6684_v31 }
 0xb2e   : > { %6687 = vrcp.f32 %v2785_v34 }
 0xb34   : > { %v6686_v35 = vpop.eup %6685 }
 0xb35   : > { %5165 = vmatmul.mubr.msk.f32.vlgmr.msra.gmra.mrb[12].mxu1 %vm1571_vm13, %v6686_v35 }
 0xb36   : > { %2882 = vmatprep.mubr.f32.mxu1 %v6930_v13  ;;  %3718 = vmatpush1.bf16.msra.mxu1 %v6507_v7 }
 0xb37   : > { %3719 = vmatprep.subr.bf16.mxu1 %v6512_v44 }
 0xb38   : > { %v6688_v38 = vpop.eup %6687 }
 0xb39   : > { %5166 = vmatmul.mubr.msk.f32.gmra.mrb[14].mxu1 %vm1571_vm13, %v6688_v38 }
 0xb3a   : > { %3720 = vmatpush1.bf16.msra.mxu1 %v6510_v46  ;;  %v6555_v46 = vld [vmem:[%s7256_s15 + $0x100] ss:$8 sps:$4 sm:$0xff]  }
 0xb3b   : > { %3721 = vmatprep.subr.bf16.mxu1 %v6515_v47 }
 0xb3e   : > { %3722 = vmatpush1.bf16.msra.mxu1 %v6513_v49 }
 0xb3f   : > { %3723 = vmatprep.subr.bf16.mxu1 %v6518_v45 }
 0xb42   : > { %3724 = vmatpush1.bf16.msra.mxu1 %v6516_v48 }
 0xb43   : > { %3725 = vmatprep.subr.bf16.mxu1 %v6521_v28 }
 0xb46   : > { %3726 = vmatpush1.bf16.msra.mxu1 %v6519_v36  ;;  %v6560_v36 = vld [vmem:[%s7256_s15 + $0x114] ss:$8 sps:$4 sm:$0xff]  }
 0xb47   : > { %3727 = vmatprep.subr.bf16.mxu1 %v6524_v5  ;;  %v6558_v5 = vld [vmem:[%s7256_s15 + $0x110] ss:$8 sps:$4 sm:$0xff]  }
 0xb4a   : > { %3728 = vmatpush1.bf16.msra.mxu1 %v6522_v9 }
 0xb4b   : > { %3729 = vmatprep.subr.bf16.mxu1 %v6527_v18 }
 0xb4e   : > { %3730 = vmatpush1.bf16.msra.mxu1 %v6525_v23 }
 0xb4f   : > { %3731 = vmatprep.subr.bf16.mxu1 %v6530_v25 }
 0xb52   : > { %3732 = vmatpush1.bf16.msra.mxu1 %v6528_v51  ;;  %v6563_v51 = vld [vmem:[%s7256_s15 + $0x124] ss:$8 sps:$4 sm:$0xff]  }
 0xb53   : > { %3733 = vmatprep.subr.bf16.mxu1 %v6533_v33 }
 0xb56   : > { %3734 = vmatpush1.bf16.msra.mxu1 %v6531_v59 }
 0xb57   : > { %3735 = vmatprep.subr.bf16.mxu1 %v6536_v56 }
 0xb5a   : > { %3736 = vmatpush1.bf16.msra.mxu1 %v6534_v50 }
 0xb5b   : > { %3737 = vmatprep.subr.bf16.mxu1 %v6539_v52 }
 0xb5e   : > { %3738 = vmatpush1.bf16.msra.mxu1 %v6537_v53 }
 0xb5f   : > { %3739 = vmatprep.subr.bf16.mxu1 %v6542_v58 }
 0xb62   : > { %3740 = vmatpush1.bf16.msra.mxu1 %v6540_v54 }
 0xb63   : > { %3741 = vmatprep.subr.bf16.mxu1 %v6545_v55 }
 0xb66   : > { %3742 = vmatpush1.bf16.msra.mxu1 %v6543_v61 }
 0xb67   : > { %3743 = vmatprep.subr.bf16.mxu1 %v6548_v39 }
 0xb6a   : > { %3744 = vmatpush1.bf16.msra.mxu1 %v6546_v40 }
 0xb6b   : > { %3745 = vmatprep.subr.bf16.mxu1 %v6551_v43 }
 0xb6e   : > { %3746 = vmatpush1.bf16.msra.mxu1 %v6549_v63 }
 0xb6f   : > { %3747 = vmatprep.subr.bf16.mxu1 %v6554_v1 }
 0xb72   : > { %3748 = vmatpush1.bf16.msra.mxu1 %v6552_v6 }
 0xc08   : > { %v2878_v62 = vpop.f32.mrb[12].mxu1 }
 0xc09   : > { %v2889_v2 = vmul.f32 %v2878_v62, %v8237_v42  ;;  %v2880_v0 = vpop.f32.mrb[13].mxu1 }
 0xc0a   : > { %v2890_v3 = vmul.f32 %v2880_v0, %v8234_v37 }
 0xc0b   : > { %v2897_v4 = vrot.slane %v2889_v2, 7 }
 0xc0c   : > { %v2898_v8 = vrot.slane %v2890_v3, 7  ;;  %v2884_v10 = vpop.f32.mrb[14].mxu1 }
 0xc0d   : > { %v2891_v11 = vmul.f32 %v2884_v10, %v8245_v60  ;;  %2903 = vrot.lane.b32.xlu0 %v2897_v4, %s6926_s18  ;;  %v2886_v12 = vpop.f32.mrb[15].mxu1  ;;  %v6557_v60 = vld [vmem:[%s7256_s15 + $0x104] ss:$8 sps:$4 sm:$0xff]  }
 0xc0e   : > { %v2892_v14 = vmul.f32 %v2886_v12, %v8242_v57  ;;  %2905 = vrot.lane.b32.xlu1 %v2898_v8, %s6926_s18  ;;  %3760 = vmatprep.subr.bf16.mxu1 %v6557_v60 }
 0xc0f   : > { %v2899_v42 = vrot.slane %v2891_v11, 7 }
 0xc10   : > { %v2901_v20 = vrot.slane %v2892_v14, 7  ;;  %v6566_v14 = vld [vmem:[%s7256_s15 + $0x134] ss:$8 sps:$4 sm:$0xff]  }
 0xc11   : > { %v2900_v37 = vsel %vm1425_vm3, %v2897_v4, %v2899_v42  ;;  %v6561_v4 = vld [vmem:[%s7256_s15 + $0x120] ss:$8 sps:$4 sm:$0xff]  }
 0xc12   : > { %2907 = vrot.lane.b32.xlu0 %v2900_v37, %s6926_s18  ;;  %v2902_v22 = vsel %vm1425_vm3, %v2898_v8, %v2901_v20 }
 0xc13   : > { %2909 = vrot.lane.b32.xlu1 %v2902_v22, %s6926_s18 }
 0xc16   : > { %2911 = vrot.lane.b32.xlu0 %v2899_v42, %s6926_s18 }
 0xc17   : > { %2913 = vrot.lane.b32.xlu1 %v2901_v20, %s6926_s18  ;;  %s9192_s18 = smov 32  }
 0xc7f   : > { %v2904_v15 = vpop.permute.xlu0 %2903 }
 0xc80   : > { %2927 = vst.msk [vmem:[#allocation3] sm:$0xfe] %vm1457_vm4, %v2904_v15  ;;  %v2906_v57 = vpop.permute.xlu1 %2905 }
 0xc81   : > { %v2915_v17 = vsel %vm1444_vm6, %v2904_v15, %v2906_v57  ;;  %2929 = vst.msk [vmem:[#allocation3 + $0x10] sm:$0xfe] %vm1460_vm7, %v2906_v57  ;;  %v6564_v57 = vld [vmem:[%s7256_s15 + $0x130] ss:$8 sps:$4 sm:$0xff]  }
 0xc82   : > { %2928 = vst [vmem:[#allocation3 + $0x8] sm:$0xfe] %v2915_v17 }
 0xc84   : > { %v2908_v19 = vpop.permute.xlu0 %2907 }
 0xc85   : > { %2930 = vst.msk [vmem:[#allocation3 + $0x18] sm:$0xff] %vm1462_vm5, %v2908_v19  ;;  %v2910_v21 = vpop.permute.xlu1 %2909 }
 0xc86   : > { %v8303_v24 = vsel %vm1444_vm6, %v2908_v19, %v2910_v21  ;;  %2932 = vst.msk [vmem:[#allocation3 + $0x28] sm:$0xff] %vm1444_vm6, %v2910_v21 }
 0xc87   : > { %v2942_v38 = vld [vmem:[#allocation3] sm:$0xfe]  ;;  %v2967_v47 = vrot.slane %v8303_v24, 1  ;;  %v3010_v40 = vrot.slane %v8303_v24, 2 }
 0xc88   : > { %v2912_v26 = vpop.permute.xlu0 %2911  ;;  %v2936_v41 = vld [vmem:[#allocation3] sm:$0xff]  ;;  %v2963_v45 = vrot.slane %v2942_v38, 1  ;;  %v2944_v23 = vld [vmem:[#allocation3 + $0x10] sm:$0xfe] }
 0xc89   : > { %2933 = vst.msk [vmem:[#allocation3 + $0x30] sm:$0x1] %vm1466_vm8, %v2912_v26  ;;  %v2914_v29 = vpop.permute.xlu1 %2913  ;;  %v2937_v30 = vld [vmem:[#allocation3 + $0x8] sm:$0xff]  ;;  %v2948_v25 = vld [vmem:[#allocation3] sm:$0xfc]  ;;  %v2969_v54 = vrot.slane %v2944_v23, 1 }
 0xc8a   : > { %v2943_v31 = vld [vmem:[#allocation3 + $0x8] sm:$0xfe]  ;;  %v2917_v34 = vsel %vm1444_vm6, %v2912_v26, %v2914_v29  ;;  %2935 = vst.msk [vmem:[#allocation3 + $0x40] sm:$0x1] %vm1469_vm9, %v2914_v29  ;;  %v3048_v35 = vpack.c.bf16 %v8303_v24, %v2937_v30  ;;  %v3006_v3 = vrot.slane %v2948_v25, 2 }
 0xc8b   : > { %2934 = vst [vmem:[#allocation3 + $0x38] sm:$0x1] %v2917_v34  ;;  %v2966_v7 = vrot.slane %v2943_v31, 1  ;;  %v2949_v50 = vld [vmem:[#allocation3 + $0x8] sm:$0xfc] }
 0xc8c   : > { %3749 = vmatprep.mubr.bf16.mxu1 %v3048_v35  ;;  %v2939_v44 = vld [vmem:[#allocation3 + $0x18] sm:$0xff]  ;;  %v3009_v12 = vrot.slane %v2949_v50, 2  ;;  %v2950_v15 = vld [vmem:[#allocation3 + $0x10] sm:$0xfc] }
 0xc8d   : > { %v3047_v49 = vpack.c.bf16 %v2939_v44, %v2936_v41  ;;  %v2964_v48 = vrot.slane %v2939_v44, 1  ;;  %v8312_v28 = vld [vmem:[#allocation3 + $0x28] sm:$0xff]  ;;  %v2968_v18 = vsel %vm1498_vm10, %v2966_v7, %v2967_v47  ;;  %v3007_v63 = vrot.slane %v2939_v44, 2  ;;  %v6572_v35 = vld [vmem:[%s7256_s15 + $0x154] ss:$8 sps:$4 sm:$0xff]  }
 0xc8e   : > { %v2970_v59 = vrot.slane %v8312_v28, 1  ;;  %v3011_v19 = vsel %vm1543_vm11, %v3009_v12, %v3010_v40  ;;  %v3013_v21 = vrot.slane %v8312_v28, 2  ;;  %v6569_v24 = vld [vmem:[%s7256_s15 + $0x144] ss:$8 sps:$4 sm:$0xff]   ;;  %v3012_v29 = vrot.slane %v2950_v15, 2 }
 0xc8f   : > { %3750 = vmatmul.mubr.bf16.vlgmr.msra.gmra.mrb[16].mxu1 %v3047_v49  ;;  %v2965_v9 = vsel %vm1498_vm10, %v2963_v45, %v2964_v48  ;;  %v3008_v37 = vsel %vm1543_vm11, %v3006_v3, %v3007_v63  ;;  %v6567_v31 = vld [vmem:[%s7256_s15 + $0x140] ss:$8 sps:$4 sm:$0xff]   ;;  %v6570_v7 = vld [vmem:[%s7256_s15 + $0x150] ss:$8 sps:$4 sm:$0xff]   ;;  %v6575_v41 = vld [vmem:[%s7256_s15 + $0x164] ss:$8 sps:$4 sm:$0xff]  }
 0xc90   : > { %v6315_v33 = vpack.i.bf16 %v2968_v18, %v2965_v9  ;;  %v2945_v56 = vld [vmem:[#allocation3 + $0x30] sm:$0x1]  ;;  %3761 = vmatpush1.bf16.msra.mxu1 %v6555_v46  ;;  %v2971_v2 = vsel %vm1498_vm10, %v2969_v54, %v2970_v59  ;;  %v6330_v26 = vpack.i.bf16 %v3011_v19, %v3008_v37  ;;  %v3014_v34 = vsel %vm1543_vm11, %v3012_v29, %v3013_v21  ;;  %v6578_v46 = vld [vmem:[%s7256_s15 + $0x174] ss:$8 sps:$4 sm:$0xff]   ;;  %v6581_v49 = vld [vmem:[%s7256_s15 + $0x184] ss:$8 sps:$4 sm:$0xff]  }
 0xc91   : > { %v2947_v52 = vld [vmem:[#allocation3 + $0x40] sm:$0x1]  ;;  %v2972_v53 = vrot.slane %v2945_v56, 1  ;;  %v2951_v58 = vld [vmem:[#allocation3 + $0x30] sm:$0x3]  ;;  %3762 = vmatprep.subr.bf16.mxu1 %v6560_v36  ;;  %v3918_v15 = vld [vmem:[%s9190_s5 + $0xc8] sm:$0xff] }
 0xc92   : > { %6316 = vrot.lane.b32.xlu0 %v6315_v33, %s9192_s18  ;;  %v2976_v55 = vrot.slane %v2947_v52, 1  ;;  %v2946_v61 = vld [vmem:[#allocation3 + $0x38] sm:$0x1]  ;;  %v3015_v1 = vrot.slane %v2951_v58, 2  ;;  %v2953_v6 = vld [vmem:[#allocation3 + $0x40] sm:$0x3] }
 0xc93   : > { %v2952_v39 = vld [vmem:[#allocation3 + $0x38] sm:$0x3]  ;;  %v2974_v43 = vrot.slane %v2946_v61, 1  ;;  %v2973_v10 = vsel %vm1498_vm10, %v2964_v48, %v2972_v53  ;;  %v3019_v22 = vrot.slane %v2953_v6, 2  ;;  %v6573_v44 = vld [vmem:[%s7256_s15 + $0x160] ss:$8 sps:$4 sm:$0xff]  }
 0xc94   : > { %v3017_v62 = vrot.slane %v2952_v39, 2  ;;  %v2977_v0 = vsel %vm1498_vm10, %v2970_v59, %v2976_v55  ;;  %3763 = vmatpush1.bf16.msra.mxu1 %v6558_v5  ;;  %v3016_v60 = vsel %vm1543_vm11, %v3007_v63, %v3015_v1  ;;  %v6579_v45 = vld [vmem:[%s7256_s15 + $0x180] ss:$8 sps:$4 sm:$0xff]   ;;  %v6584_v48 = vld [vmem:[%s7256_s15 + $0x194] ss:$8 sps:$4 sm:$0xff]  }
 0xc95   : > { %v6325_v8 = vpack.i.bf16 %v2977_v0, %v2971_v2  ;;  %v2975_v11 = vsel %vm1498_vm10, %v2967_v47, %v2974_v43  ;;  %3764 = vmatprep.subr.bf16.mxu1 %v6563_v51  ;;  %v3020_v30 = vsel %vm1543_vm11, %v3013_v21, %v3019_v22  ;;  %v6576_v47 = vld [vmem:[%s7256_s15 + $0x170] ss:$8 sps:$4 sm:$0xff]   ;;  %v6587_v5 = vld [vmem:[%s7256_s15 + $0x1a4] ss:$8 sps:$4 sm:$0xff]   ;;  %v6585_v9 = vld [vmem:[%s7256_s15 + $0x1a0] ss:$8 sps:$4 sm:$0xff]  }
 0xc96   : > { %v6320_v42 = vpack.i.bf16 %v2975_v11, %v2973_v10  ;;  %v3018_v20 = vsel %vm1543_vm11, %v3010_v40, %v3017_v62  ;;  %v6340_v38 = vpack.i.bf16 %v3020_v30, %v3014_v34  ;;  %v6582_v36 = vld [vmem:[%s7256_s15 + $0x190] ss:$8 sps:$4 sm:$0xff]   ;;  %v6590_v18 = vld [vmem:[%s7256_s15 + $0x1b4] ss:$8 sps:$4 sm:$0xff]   ;;  %v6593_v25 = vld [vmem:[%s7256_s15 + $0x1c4] ss:$8 sps:$4 sm:$0xff]  }
 0xc97   : > { %6326 = vrot.lane.b32.xlu0 %v6325_v8, %s9192_s18  ;;  %v6335_v17 = vpack.i.bf16 %v3018_v20, %v3016_v60  ;;  %v6588_v23 = vld [vmem:[%s7256_s15 + $0x1b0] ss:$8 sps:$4 sm:$0xff]   ;;  %v6591_v51 = vld [vmem:[%s7256_s15 + $0x1c0] ss:$8 sps:$4 sm:$0xff]   ;;  %v6596_v33 = vld [vmem:[%s7256_s15 + $0x1d4] ss:$8 sps:$4 sm:$0xff]  }
 0xc98   : > { %6321 = vrot.lane.b32.xlu1 %v6320_v42, %s9192_s18  ;;  %3765 = vmatpush1.bf16.msra.mxu1 %v6561_v4  ;;  %v6594_v59 = vld [vmem:[%s7256_s15 + $0x1d0] ss:$8 sps:$4 sm:$0xff]   ;;  %v6599_v56 = vld [vmem:[%s7256_s15 + $0x1e4] ss:$8 sps:$4 sm:$0xff]   ;;  %v6597_v50 = vld [vmem:[%s7256_s15 + $0x1e0] ss:$8 sps:$4 sm:$0xff]  }
 0xc99   : > { %3766 = vmatprep.subr.bf16.mxu1 %v6566_v14  ;;  %v6602_v52 = vld [vmem:[%s7256_s15 + $0x1f4] ss:$8 sps:$4 sm:$0xff]   ;;  %v6600_v53 = vld [vmem:[%s7256_s15 + $0x1f0] ss:$8 sps:$4 sm:$0xff]   ;;  %v6605_v58 = vld [vmem:[%s7256_s15 + $0x204] ss:$8 sps:$4 sm:$0xff]  }
 0xc9a   : > { %v3909_v54 = vld [vmem:[%s9190_s5 + $0x80] sm:$0xff]  ;;  %v3910_v55 = vld [vmem:[%s9190_s5 + $0x88] sm:$0xff]  ;;  %v3911_v43 = vld [vmem:[%s9190_s5 + $0x90] sm:$0xff] }
 0xc9b   : > { %6336 = vrot.lane.b32.xlu0 %v6335_v17, %s9193_s10  ;;  %v3893_v61 = vld [vmem:[%s9190_s5] sm:$0xff]  ;;  %v5884_v39 = vpack.c.bf16 %v3910_v55, %v3909_v54  ;;  %v3894_v40 = vld [vmem:[%s9190_s5 + $0x8] sm:$0xff]  ;;  %v3912_v63 = vld [vmem:[%s9190_s5 + $0x98] sm:$0xff] }
 0xc9c   : > { %6331 = vrot.lane.b32.xlu1 %v6330_v26, %s9193_s10  ;;  %3767 = vmatpush1.bf16.msra.mxu1 %v6564_v57  ;;  %v5886_v62 = vpack.c.bf16 %v3894_v40, %v3893_v61  ;;  %v5888_v2 = vpack.c.bf16 %v3912_v63, %v3911_v43  ;;  %v3895_v0 = vld [vmem:[%s9190_s5 + $0x10] sm:$0xff]  ;;  %v3896_v1 = vld [vmem:[%s9190_s5 + $0x18] sm:$0xff]  ;;  %v3913_v3 = vld [vmem:[%s9190_s5 + $0xa0] sm:$0xff] }
 0xc9d   : > { %3768 = vmatprep.subr.bf16.mxu1 %v6569_v24  ;;  %5885 = vmatprep.subr.bf16.mxu0 %v5884_v39  ;;  %v3914_v6 = vld [vmem:[%s9190_s5 + $0xa8] sm:$0xff]  ;;  %v5890_v4 = vpack.c.bf16 %v3896_v1, %v3895_v0  ;;  %v3897_v10 = vld [vmem:[%s9190_s5 + $0x20] sm:$0xff]  ;;  %v3915_v12 = vld [vmem:[%s9190_s5 + $0xb0] sm:$0xff] }
 0xc9e   : > { %5887 = vmatpush3.bf16.msra.mxu0 %v5886_v62  ;;  %v5892_v8 = vpack.c.bf16 %v3914_v6, %v3913_v3  ;;  %v3898_v11 = vld [vmem:[%s9190_s5 + $0x28] sm:$0xff]  ;;  %v3916_v14 = vld [vmem:[%s9190_s5 + $0xb8] sm:$0xff]  ;;  %v3899_v37 = vld [vmem:[%s9190_s5 + $0x30] sm:$0xff] }
 0xc9f   : > { %5889 = vmatprep.subr.bf16.mxu0 %v5888_v2  ;;  %v5894_v42 = vpack.c.bf16 %v3898_v11, %v3897_v10  ;;  %v5896_v20 = vpack.c.bf16 %v3916_v14, %v3915_v12  ;;  %v3900_v22 = vld [vmem:[%s9190_s5 + $0x38] sm:$0xff]  ;;  %v3917_v60 = vld [vmem:[%s9190_s5 + $0xc0] sm:$0xff]  ;;  %v3902_v21 = vld [vmem:[%s9190_s5 + $0x48] sm:$0xff] }
 0xca0   : > { %6341 = vrot.lane.b32.xlu1 %v6340_v38, %s9193_s10  ;;  %3769 = vmatpush1.bf16.msra.mxu1 %v6567_v31  ;;  %v5898_v57 = vpack.c.bf16 %v3900_v22, %v3899_v37  ;;  %v5900_v17 = vpack.c.bf16 %v3918_v15, %v3917_v60  ;;  %v3901_v19 = vld [vmem:[%s9190_s5 + $0x40] sm:$0xff]  ;;  %v3919_v24 = vld [vmem:[%s9190_s5 + $0xd0] sm:$0xff]  ;;  %v3920_v26 = vld [vmem:[%s9190_s5 + $0xd8] sm:$0xff]  ;;  %s9198_s10 = sld [smem:[#allocation25_spill]] (!%p5282_p12) }
 0xca1   : > { %3770 = vmatprep.subr.bf16.mxu1 %v6572_v35  ;;  %v5902_v29 = vpack.c.bf16 %v3902_v21, %v3901_v19  ;;  %v5904_v30 = vpack.c.bf16 %v3920_v26, %v3919_v24  ;;  %v3903_v31 = vld [vmem:[%s9190_s5 + $0x50] sm:$0xff]  ;;  %v3904_v34 = vld [vmem:[%s9190_s5 + $0x58] sm:$0xff]  ;;  %v3921_v35 = vld [vmem:[%s9190_s5 + $0xe0] sm:$0xff] }
 0xca2   : > { %5891 = vmatpush3.bf16.msra.mxu0 %v5890_v4  ;;  %v3922_v38 = vld [vmem:[%s9190_s5 + $0xe8] sm:$0xff]  ;;  %v6608_v43 = vld [vmem:[%s7256_s15 + $0x214] ss:$8 sps:$4 sm:$0xff]   ;;  %v6606_v3 = vld [vmem:[%s7256_s15 + $0x210] ss:$8 sps:$4 sm:$0xff]  }
 0xca3   : > { %5893 = vmatprep.subr.bf16.mxu0 %v5892_v8  ;;  %v6603_v61 = vld [vmem:[%s7256_s15 + $0x200] ss:$8 sps:$4 sm:$0xff]   ;;  %v6611_v10 = vld [vmem:[%s7256_s15 + $0x224] ss:$8 sps:$4 sm:$0xff]   ;;  %v6612_v37 = vld [vmem:[%s7256_s15 + $0x230] ss:$8 sps:$4 sm:$0xff]  }
 0xca4   : > { %3771 = vmatpush1.bf16.msra.mxu1 %v6570_v7  ;;  %v5906_v7 = vpack.c.bf16 %v3904_v34, %v3903_v31  ;;  %v6617_v22 = vld [vmem:[%s7256_s15 + $0x244] ss:$8 sps:$4 sm:$0xff]   ;;  %v6615_v60 = vld [vmem:[%s7256_s15 + $0x240] ss:$8 sps:$4 sm:$0xff]   ;;  %v6620_v15 = vld [vmem:[%s7256_s15 + $0x254] ss:$8 sps:$4 sm:$0xff]  }
 0xca5   : > { %3772 = vmatprep.subr.bf16.mxu1 %v6575_v41  ;;  %v5908_v41 = vpack.c.bf16 %v3922_v38, %v3921_v35  ;;  %v6621_v19 = vld [vmem:[%s7256_s15 + $0x260] ss:$8 sps:$4 sm:$0xff]   ;;  %v6626_v21 = vld [vmem:[%s7256_s15 + $0x274] ss:$8 sps:$4 sm:$0xff]   ;;  %v6624_v24 = vld [vmem:[%s7256_s15 + $0x270] ss:$8 sps:$4 sm:$0xff]  }
 0xca6   : > { %5895 = vmatpush3.bf16.msra.mxu0 %v5894_v42  ;;  %v6609_v42 = vld [vmem:[%s7256_s15 + $0x220] ss:$8 sps:$4 sm:$0xff]   ;;  %v6629_v26 = vld [vmem:[%s7256_s15 + $0x284] ss:$8 sps:$4 sm:$0xff]   ;;  %v6630_v31 = vld [vmem:[%s7256_s15 + $0x290] ss:$8 sps:$4 sm:$0xff]  }
 0xca7   : > { %5897 = vmatprep.subr.bf16.mxu0 %v5896_v20  ;;  %v6614_v20 = vld [vmem:[%s7256_s15 + $0x234] ss:$8 sps:$4 sm:$0xff]   ;;  %v6635_v34 = vld [vmem:[%s7256_s15 + $0x2a4] ss:$8 sps:$4 sm:$0xff]   ;;  %v6633_v35 = vld [vmem:[%s7256_s15 + $0x2a0] ss:$8 sps:$4 sm:$0xff]  }
 0xca8   : > { %3773 = vmatpush1.bf16.msra.mxu1 %v6573_v44  ;;  %v6638_v38 = vld [vmem:[%s7256_s15 + $0x2b4] ss:$8 sps:$4 sm:$0xff]  }
 0xca9   : > { %3774 = vmatprep.subr.bf16.mxu1 %v6578_v46 }
 0xcaa   : > { %5899 = vmatpush3.bf16.msra.mxu0 %v5898_v57  ;;  %v6618_v57 = vld [vmem:[%s7256_s15 + $0x250] ss:$8 sps:$4 sm:$0xff]  }
 0xcab   : > { %5901 = vmatprep.subr.bf16.mxu0 %v5900_v17  ;;  %v6623_v17 = vld [vmem:[%s7256_s15 + $0x264] ss:$8 sps:$4 sm:$0xff]  }
 0xcac   : > { %3775 = vmatpush1.bf16.msra.mxu1 %v6576_v47 }
 0xcad   : > { %3776 = vmatprep.subr.bf16.mxu1 %v6581_v49 }
 0xcae   : > { %5903 = vmatpush3.bf16.msra.mxu0 %v5902_v29  ;;  %v6627_v29 = vld [vmem:[%s7256_s15 + $0x280] ss:$8 sps:$4 sm:$0xff]  }
 0xcaf   : > { %5905 = vmatprep.subr.bf16.mxu0 %v5904_v30  ;;  %v6632_v30 = vld [vmem:[%s7256_s15 + $0x294] ss:$8 sps:$4 sm:$0xff]  }
 0xcb0   : > { %3777 = vmatpush1.bf16.msra.mxu1 %v6579_v45 }
 0xcb1   : > { %3778 = vmatprep.subr.bf16.mxu1 %v6584_v48 }
 0xcb2   : > { %5907 = vmatpush3.bf16.msra.mxu0 %v5906_v7  ;;  %v6636_v7 = vld [vmem:[%s7256_s15 + $0x2b0] ss:$8 sps:$4 sm:$0xff]  }
 0xcb3   : > { %5909 = vmatprep.subr.bf16.mxu0 %v5908_v41  ;;  %v6641_v41 = vld [vmem:[%s7256_s15 + $0x2c4] ss:$8 sps:$4 sm:$0xff]  }
 0xcb4   : > { %3779 = vmatpush1.bf16.msra.mxu1 %v6582_v36 }
 0xcb5   : > { %3780 = vmatprep.subr.bf16.mxu1 %v6587_v5  ;;  %v2938_v5 = vld [vmem:[#allocation3 + $0x10] sm:$0xff] }
 0xcb8   : > { %3781 = vmatpush1.bf16.msra.mxu1 %v6585_v9 }
 0xcb9   : > { %3782 = vmatprep.subr.bf16.mxu1 %v6590_v18 }
 0xcbc   : > { %3783 = vmatpush1.bf16.msra.mxu1 %v6588_v23 }
 0xcbd   : > { %3784 = vmatprep.subr.bf16.mxu1 %v6593_v25 }
 0xcc0   : > { %3785 = vmatpush1.bf16.msra.mxu1 %v6591_v51 }
 0xcc1   : > { %3786 = vmatprep.subr.bf16.mxu1 %v6596_v33 }
 0xcc4   : > { %3787 = vmatpush1.bf16.msra.mxu1 %v6594_v59 }
 0xcc5   : > { %3788 = vmatprep.subr.bf16.mxu1 %v6599_v56 }
 0xcc8   : > { %3789 = vmatpush1.bf16.msra.mxu1 %v6597_v50 }
 0xcc9   : > { %3790 = vmatprep.subr.bf16.mxu1 %v6602_v52 }
 0xccc   : > { %3791 = vmatpush1.bf16.msra.mxu1 %v6600_v53 }
 0xccd   : > { %3803 = vmatprep.subr.bf16.mxu1 %v6605_v58 }
 0xd04   : > { %v6317_v44 = vpop.permute.xlu0 %6316 }
 0xd05   : > { %v6318_v46 = vunpack.i.l.bf16 %v6317_v44  ;;  %v6319_v47 = vunpack.i.h.bf16 %v6317_v44  ;;  %v6639_v44 = vld [vmem:[%s7256_s15 + $0x2c0] ss:$8 sps:$4 sm:$0xff]  }
 0xd07   : > { %v3043_v23 = vsel %vm1526_vm12, %v2938_v5, %v6318_v46  ;;  %v2990_v56 = vsel %vm1526_vm12, %v6318_v46, %v6319_v47  ;;  %v6644_v46 = vld [vmem:[%s7256_s15 + $0x2d4] ss:$8 sps:$4 sm:$0xff]   ;;  %v6653_v5 = vld [vmem:[%s7256_s15 + $0x304] ss:$8 sps:$4 sm:$0xff]  }
 0xd09   : > { %v6327_v49 = vpop.permute.xlu0 %6326 }
 0xd0a   : > { %v6329_v45 = vunpack.i.h.bf16 %v6327_v49  ;;  %v6328_v48 = vunpack.i.l.bf16 %v6327_v49  ;;  %v6322_v36 = vpop.permute.xlu1 %6321  ;;  %v6647_v49 = vld [vmem:[%s7256_s15 + $0x2e4] ss:$8 sps:$4 sm:$0xff]  }
 0xd0b   : > { %v6324_v9 = vunpack.i.h.bf16 %v6322_v36  ;;  %v6323_v18 = vunpack.i.l.bf16 %v6322_v36  ;;  %v6648_v36 = vld [vmem:[%s7256_s15 + $0x2f0] ss:$8 sps:$4 sm:$0xff]  }
 0xd0c   : > { %v2991_v25 = vsel %vm1526_vm12, %v6319_v47, %v6328_v48  ;;  %v6642_v47 = vld [vmem:[%s7256_s15 + $0x2d0] ss:$8 sps:$4 sm:$0xff]   ;;  %v6650_v48 = vld [vmem:[%s7256_s15 + $0x2f4] ss:$8 sps:$4 sm:$0xff]  }
 0xd0d   : > { %v2993_v51 = vsel %vm1526_vm12, %v6324_v9, %v6329_v45  ;;  %v3044_v33 = vsel %vm1526_vm12, %v8312_v28, %v6323_v18  ;;  %v6337_v59 = vpop.permute.xlu0 %6336  ;;  %v2992_v50 = vsel %vm1526_vm12, %v6323_v18, %v6324_v9  ;;  %v6645_v45 = vld [vmem:[%s7256_s15 + $0x2e0] ss:$8 sps:$4 sm:$0xff]   ;;  %v6656_v18 = vld [vmem:[%s7256_s15 + $0x314] ss:$8 sps:$4 sm:$0xff]  }
 0xd0e   : > { %v3049_v52 = vpack.c.bf16 %v3044_v33, %v3043_v23  ;;  %v6339_v53 = vunpack.i.h.bf16 %v6337_v59  ;;  %v6338_v58 = vunpack.i.l.bf16 %v6337_v59  ;;  %v6332_v54 = vpop.permute.xlu1 %6331  ;;  %v3050_v55 = vpack.c.bf16 %v2992_v50, %v2990_v56  ;;  %v6651_v9 = vld [vmem:[%s7256_s15 + $0x300] ss:$8 sps:$4 sm:$0xff]   ;;  %v6654_v23 = vld [vmem:[%s7256_s15 + $0x310] ss:$8 sps:$4 sm:$0xff]   ;;  %v6662_v33 = vld [vmem:[%s7256_s15 + $0x334] ss:$8 sps:$4 sm:$0xff]  }
 0xd0f   : > { %v6334_v39 = vunpack.i.h.bf16 %v6332_v54  ;;  %v6333_v40 = vunpack.i.l.bf16 %v6332_v54  ;;  %v6660_v59 = vld [vmem:[%s7256_s15 + $0x330] ss:$8 sps:$4 sm:$0xff]   ;;  %v6665_v56 = vld [vmem:[%s7256_s15 + $0x344] ss:$8 sps:$4 sm:$0xff]   ;;  %v6663_v50 = vld [vmem:[%s7256_s15 + $0x340] ss:$8 sps:$4 sm:$0xff]  }
 0xd10   : > { %v8454_v63 = vsel %vm1571_vm13, %v2993_v51, %v6338_v58  ;;  %3792 = vmatprep.mubr.bf16.mxu1 %v3050_v55  ;;  %v3035_v28 = vsel %vm1571_vm13, %v6338_v58, %v6339_v53  ;;  %v6657_v51 = vld [vmem:[%s7256_s15 + $0x320] ss:$8 sps:$4 sm:$0xff]  }
 0xd11   : > { %v8458_v62 = vsel %vm1571_vm13, %v2991_v25, %v6333_v40  ;;  %3793 = vmatmul.mubr.bf16.vlgmr.msra.gmra.mrb[16].mxu1 %v3049_v52  ;;  %v3033_v2 = vsel %vm1571_vm13, %v6333_v40, %v6334_v39  ;;  %v6659_v25 = vld [vmem:[%s7256_s15 + $0x324] ss:$8 sps:$4 sm:$0xff]   ;;  %v6668_v52 = vld [vmem:[%s7256_s15 + $0x354] ss:$8 sps:$4 sm:$0xff]  }
 0xd12   : > { %v3051_v0 = vpack.c.bf16 %v8454_v63, %v8458_v62  ;;  %3804 = vmatpush1.bf16.msra.mxu1 %v6603_v61  ;;  %v6342_v1 = vpop.permute.xlu1 %6341  ;;  %v3052_v6 = vpack.c.bf16 %v3035_v28, %v3033_v2  ;;  %v3906_v58 = vld [vmem:[%s9190_s5 + $0x68] sm:$0xff]  ;;  %v3923_v55 = vld [vmem:[%s9190_s5 + $0xf0] sm:$0xff]  ;;  %v3924_v61 = vld [vmem:[%s9190_s5 + $0xf8] sm:$0xff] }
 0xd13   : > { %v6344_v4 = vunpack.i.h.bf16 %v6342_v1  ;;  %v6343_v8 = vunpack.i.l.bf16 %v6342_v1  ;;  %3805 = vmatprep.subr.bf16.mxu1 %v6608_v43  ;;  %v3907_v40 = vld [vmem:[%s9190_s5 + $0x70] sm:$0xff]  ;;  %v3908_v43 = vld [vmem:[%s9190_s5 + $0x78] sm:$0xff]  ;;  %v3162_v28 = vld [vmem:[%s7287_s22] sm:$0x3]  ;;  %s9197_s22 = sld [smem:[#allocation24_spill]] (!%p5282_p12) }
 0xd14   : > { %3835 = vmatprep.mubr.bf16.mxu1 %v3052_v6  ;;  %v5914_v63 = vpack.c.bf16 %v3908_v43, %v3907_v40  ;;  %v3167_v62 = vrot.slane %v3162_v28, %v8110_v32  ;;  %v3171_v2 = vrot.slane %v3162_v28, %v8113_v16  ;;  %v4127_v40 = vld [vmem:[%s9191_s14 + $0x10] sm:$0xff]  ;;  %v4128_v43 = vld [vmem:[%s9191_s14 + $0x18] sm:$0xff] }
 0xd15   : > { %v8466_v11 = vsel %vm1571_vm13, %v6339_v53, %v6344_v4  ;;  %v8469_v12 = vsel %vm1571_vm13, %v6334_v39, %v6343_v8  ;;  %v6666_v53 = vld [vmem:[%s7256_s15 + $0x350] ss:$8 sps:$4 sm:$0xff]   ;;  %v5912_v39 = vpack.c.bf16 %v3924_v61, %v3923_v55  ;;  %s9199_s15 = sld [smem:[#allocation26_spill]] (!%p5282_p12) }
 0xd16   : > { %v3053_v14 = vpack.c.bf16 %v8466_v11, %v8469_v12  ;;  %3806 = vmatpush1.bf16.msra.mxu1 %v6606_v3 }
 0xd17   : > { %3807 = vmatprep.subr.bf16.mxu1 %v6611_v10 }
 0xd1a   : > { %3808 = vmatpush1.bf16.msra.mxu1 %v6609_v42 }
 0xd1b   : > { %3809 = vmatprep.subr.bf16.mxu1 %v6614_v20 }
 0xd1e   : > { %3810 = vmatpush1.bf16.msra.mxu1 %v6612_v37  ;;  %v4015_v37 = vld [vmem:[#allocation9 + $0x8] sm:$0xff] }
 0xd1f   : > { %3811 = vmatprep.subr.bf16.mxu1 %v6617_v22  ;;  %v4017_v22 = vld [vmem:[#allocation9 + $0x18] sm:$0xff] }
 0xd22   : > { %3812 = vmatpush1.bf16.msra.mxu1 %v6615_v60  ;;  %v5916_v60 = vpack.c.bf16 %v4017_v22, %v4015_v37  ;;  %v4147_v37 = vld [vmem:[%s9191_s14 + $0xb0] sm:$0xff]  ;;  %v4148_v22 = vld [vmem:[%s9191_s14 + $0xb8] sm:$0xff] }
 0xd23   : > { %3813 = vmatprep.subr.bf16.mxu1 %v6620_v15  ;;  %v4014_v15 = vld [vmem:[#allocation9] sm:$0xff] }
 0xd26   : > { %3814 = vmatpush1.bf16.msra.mxu1 %v6618_v57  ;;  %v4016_v57 = vld [vmem:[#allocation9 + $0x10] sm:$0xff] }
 0xd27   : > { %3815 = vmatprep.subr.bf16.mxu1 %v6623_v17  ;;  %v5918_v17 = vpack.c.bf16 %v4016_v57, %v4014_v15  ;;  %v5944_v15 = vpack.c.bf16 %v4148_v22, %v4147_v37  ;;  %v4131_v57 = vld [vmem:[%s9191_s14 + $0x30] sm:$0xff]  ;;  %v4260_v37 = vld [vmem:[#allocation8 + $0x30] sm:$0xff] }
 0xd2a   : > { %3816 = vmatpush1.bf16.msra.mxu1 %v6621_v19  ;;  %v4019_v19 = vld [vmem:[#allocation9 + $0x28] sm:$0xff] }
 0xd2b   : > { %3817 = vmatprep.subr.bf16.mxu1 %v6626_v21  ;;  %v4021_v21 = vld [vmem:[#allocation9 + $0x38] sm:$0xff] }
 0xd2e   : > { %3818 = vmatpush1.bf16.msra.mxu1 %v6624_v24  ;;  %v5920_v24 = vpack.c.bf16 %v4021_v21, %v4019_v19  ;;  %v4149_v21 = vld [vmem:[%s9191_s14 + $0xc0] sm:$0xff] }
 0xd2f   : > { %3819 = vmatprep.subr.bf16.mxu1 %v6629_v26  ;;  %v4018_v26 = vld [vmem:[#allocation9 + $0x20] sm:$0xff] }
 0xd32   : > { %3820 = vmatpush1.bf16.msra.mxu1 %v6627_v29  ;;  %v4020_v29 = vld [vmem:[#allocation9 + $0x30] sm:$0xff] }
 0xd33   : > { %3821 = vmatprep.subr.bf16.mxu1 %v6632_v30  ;;  %v5922_v30 = vpack.c.bf16 %v4020_v29, %v4018_v26  ;;  %v4133_v29 = vld [vmem:[%s9191_s14 + $0x40] sm:$0xff] }
 0xd36   : > { %3822 = vmatpush1.bf16.msra.mxu1 %v6630_v31  ;;  %v4023_v31 = vld [vmem:[#allocation9 + $0x48] sm:$0xff] }
 0xd37   : > { %3823 = vmatprep.subr.bf16.mxu1 %v6635_v34  ;;  %v4025_v34 = vld [vmem:[#allocation9 + $0x58] sm:$0xff] }
 0xd3a   : > { %3824 = vmatpush1.bf16.msra.mxu1 %v6633_v35  ;;  %v4022_v35 = vld [vmem:[#allocation9 + $0x40] sm:$0xff] }
 0xd3b   : > { %3825 = vmatprep.subr.bf16.mxu1 %v6638_v38  ;;  %v5924_v38 = vpack.c.bf16 %v4025_v34, %v4023_v31  ;;  %v4151_v34 = vld [vmem:[%s9191_s14 + $0xd0] sm:$0xff] }
 0xd3e   : > { %3826 = vmatpush1.bf16.msra.mxu1 %v6636_v7  ;;  %v4024_v7 = vld [vmem:[#allocation9 + $0x50] sm:$0xff] }
 0xd3f   : > { %3827 = vmatprep.subr.bf16.mxu1 %v6641_v41  ;;  %v4027_v41 = vld [vmem:[#allocation9 + $0x68] sm:$0xff] }
 0xd42   : > { %3828 = vmatpush1.bf16.msra.mxu1 %v6639_v44  ;;  %v4029_v44 = vld [vmem:[#allocation9 + $0x78] sm:$0xff] }
 0xd43   : > { %3829 = vmatprep.subr.bf16.mxu1 %v6644_v46  ;;  %v5926_v46 = vpack.c.bf16 %v4024_v7, %v4022_v35  ;;  %v4152_v35 = vld [vmem:[%s9191_s14 + $0xd8] sm:$0xff]  ;;  %v4135_v7 = vld [vmem:[%s9191_s14 + $0x50] sm:$0xff] }
 0xd46   : > { %3830 = vmatpush1.bf16.msra.mxu1 %v6642_v47  ;;  %v5928_v47 = vpack.c.bf16 %v4029_v44, %v4027_v41  ;;  %v4136_v41 = vld [vmem:[%s9191_s14 + $0x58] sm:$0xff] }
 0xd47   : > { %3831 = vmatprep.subr.bf16.mxu1 %v6647_v49  ;;  %v4026_v49 = vld [vmem:[#allocation9 + $0x60] sm:$0xff]  ;;  %v5954_v44 = vpack.c.bf16 %v4136_v41, %v4135_v7 }
 0xd4a   : > { %3832 = vmatpush1.bf16.msra.mxu1 %v6645_v45  ;;  %v4028_v45 = vld [vmem:[#allocation9 + $0x70] sm:$0xff] }
 0xd4b   : > { %3833 = vmatprep.subr.bf16.mxu1 %v6650_v48  ;;  %v5930_v48 = vpack.c.bf16 %v4028_v45, %v4026_v49  ;;  %v4137_v45 = vld [vmem:[%s9191_s14 + $0x60] sm:$0xff] }
 0xd4e   : > { %3834 = vmatpush1.bf16.msra.mxu1 %v6648_v36  ;;  %v4141_v36 = vld [vmem:[%s9191_s14 + $0x80] sm:$0xff] }
 0xd4f   : > { %3846 = vmatprep.subr.bf16.mxu1 %v6653_v5  ;;  %v4142_v5 = vld [vmem:[%s9191_s14 + $0x88] sm:$0xff] }
 0xd51   : > { %3836 = vmatmul.mubr.bf16.vlgmr.msra.gmra.mrb[16].mxu1 %v3051_v0 }
 0xd52   : > { %3847 = vmatpush1.bf16.msra.mxu1 %v6651_v9  ;;  %3878 = vmatprep.mubr.bf16.mxu1 %v6929_v27  ;;  %v3905_v27 = vld [vmem:[%s9190_s5 + $0x60] sm:$0xff]  ;;  %v5932_v9 = vpack.c.bf16 %v4142_v5, %v4141_v36  ;;  %v4155_v5 = vld [vmem:[%s9191_s14 + $0xf0] sm:$0xff] }
 0xd53   : > { %3848 = vmatprep.subr.bf16.mxu1 %v6656_v18  ;;  %v5910_v54 = vpack.c.bf16 %v3906_v58, %v3905_v27  ;;  %v4144_v27 = vld [vmem:[%s9191_s14 + $0x98] sm:$0xff] }
 0xd55   : > { %5911 = vmatpush3.bf16.msra.mxu0 %v5910_v54 }
 0xd56   : > { %3849 = vmatpush1.bf16.msra.mxu1 %v6654_v23  ;;  %5913 = vmatprep.subr.bf16.mxu0 %v5912_v39 }
 0xd57   : > { %3850 = vmatprep.subr.bf16.mxu1 %v6659_v25 }
 0xd59   : > { %5915 = vmatpush3.bf16.msra.mxu0 %v5914_v63 }
 0xd5a   : > { %3851 = vmatpush1.bf16.msra.mxu1 %v6657_v51  ;;  %5917 = vmatprep.subr.bf16.mxu0 %v5916_v60 }
 0xd5b   : > { %3852 = vmatprep.subr.bf16.mxu1 %v6662_v33 }
 0xd5e   : > { %3853 = vmatpush1.bf16.msra.mxu1 %v6660_v59 }
 0xd5f   : > { %3854 = vmatprep.subr.bf16.mxu1 %v6665_v56  ;;  %v4125_v56 = vld [vmem:[%s9191_s14] sm:$0xff] }
 0xd62   : > { %3855 = vmatpush1.bf16.msra.mxu1 %v6663_v50  ;;  %v4126_v50 = vld [vmem:[%s9191_s14 + $0x8] sm:$0xff] }
 0xd63   : > { %3856 = vmatprep.subr.bf16.mxu1 %v6668_v52  ;;  %v5934_v55 = vpack.c.bf16 %v4126_v50, %v4125_v56 }
 0xd66   : > { %3857 = vmatpush1.bf16.msra.mxu1 %v6666_v53  ;;  %v4143_v53 = vld [vmem:[%s9191_s14 + $0x90] sm:$0xff] }
 0xd67   : > { %v5936_v39 = vpack.c.bf16 %v4144_v27, %v4143_v53 }
 0xd69   : > { %5275 = vmatmul.mubr.msk.bf16.vlgmr.msra.gmra.mrb[16].mxu1 %vm2253_vm14, %v3053_v14 }
 0xe3c   : > { %v3880_v0 = vpop.f32.mrb[16].mxu1 }
 0xe3d   : > { %v8541_v1 = vadd.f32 %v3880_v0, %v3167_v62  ;;  %v3882_v3 = vpop.f32.mrb[17].mxu1 }
 0xe3e   : > { %v8543_v6 = vadd.f32 %v3882_v3, %v3171_v2  ;;  %v3884_v4 = vpop.f32.mrb[18].mxu1 }
 0xe3f   : > { %v3886_v8 = vpop.f32.mrb[19].mxu1  ;;  %v3889_v12 = vmul.f32 %v8541_v1, %v8541_v1  ;;  %v8551_v14 = vadd.f32 %v3884_v4, %v3167_v62  ;;  %v4145_v62 = vld [vmem:[%s9191_s14 + $0xa0] sm:$0xff]  ;;  %v5938_v4 = vpack.c.bf16 %v4128_v43, %v4127_v40 }
 0xe40   : > { %v3890_v10 = vmul.f32 %v8543_v6, %v8543_v6  ;;  %v8547_v11 = vadd.f32 %v3886_v8, %v3171_v2  ;;  %v4146_v2 = vld [vmem:[%s9191_s14 + $0xa8] sm:$0xff]  ;;  %v6710_v40 = vld [vmem:[#allocation2] sm:$0xff] }
 0xe41   : > { %v3891_v20 = vmul.f32 %v8551_v14, %v8551_v14 }
 0xe42   : > { %v3892_v42 = vmul.f32 %v8547_v11, %v8547_v11  ;;  %3989 = vmatprep.mubr.f32.mxu0 %v3890_v10  ;;  %v5940_v10 = vpack.c.bf16 %v4146_v2, %v4145_v62  ;;  %v6711_v62 = vld [vmem:[#allocation2 + $0x18] sm:$0xff] }
 0xe43   : > { %3990 = vmatmul.mubr.f32.vlgmr.msra.gmra.mrb[4].mxu0 %v3889_v12  ;;  %v4129_v12 = vld [vmem:[%s9191_s14 + $0x20] sm:$0xff] }
 0xe44   : > { %3994 = vmatprep.mubr.f32.mxu0 %v3892_v42  ;;  %5919 = vmatpush1.bf16.msra.mxu0 %v5918_v17  ;;  %v4130_v42 = vld [vmem:[%s9191_s14 + $0x28] sm:$0xff]  ;;  %v4132_v17 = vld [vmem:[%s9191_s14 + $0x38] sm:$0xff] }
 0xe45   : > { %5921 = vmatprep.subr.bf16.mxu0 %v5920_v24  ;;  %v5942_v60 = vpack.c.bf16 %v4130_v42, %v4129_v12  ;;  %v5946_v19 = vpack.c.bf16 %v4132_v17, %v4131_v57  ;;  %v4150_v24 = vld [vmem:[%s9191_s14 + $0xc8] sm:$0xff]  ;;  %v4261_v12 = vld [vmem:[#allocation8 + $0x38] sm:$0xff] }
 0xe46   : > { %v5948_v26 = vpack.c.bf16 %v4150_v24, %v4149_v21  ;;  %v4262_v17 = vld [vmem:[#allocation8 + $0x40] sm:$0xff]  ;;  %v4267_v24 = vld [vmem:[#allocation8 + $0x68] sm:$0xff] }
 0xe47   : > { %3995 = vmatmul.mubr.f32.gmra.mrb[6].mxu0 %v3891_v20 }
 0xe48   : > { %4100 = vmatprep.mubr.f32.mxu0 %v6930_v13  ;;  %5923 = vmatpush1.bf16.msra.mxu0 %v5922_v30  ;;  %v4134_v30 = vld [vmem:[%s9191_s14 + $0x48] sm:$0xff] }
 0xe49   : > { %5925 = vmatprep.subr.bf16.mxu0 %v5924_v38  ;;  %v5950_v31 = vpack.c.bf16 %v4134_v30, %v4133_v29  ;;  %v5952_v38 = vpack.c.bf16 %v4152_v35, %v4151_v34  ;;  %v4266_v29 = vld [vmem:[#allocation8 + $0x60] sm:$0xff] }
 0xe4c   : > { %5927 = vmatpush1.bf16.msra.mxu0 %v5926_v46  ;;  %v4153_v46 = vld [vmem:[%s9191_s14 + $0xe0] sm:$0xff] }
 0xe4d   : > { %5929 = vmatprep.subr.bf16.mxu0 %v5928_v47  ;;  %v4154_v47 = vld [vmem:[%s9191_s14 + $0xe8] sm:$0xff] }
 0xe4e   : > { %v5956_v49 = vpack.c.bf16 %v4154_v47, %v4153_v46 }
 0xe50   : > { %5931 = vmatpush1.bf16.msra.mxu0 %v5930_v48  ;;  %v4138_v48 = vld [vmem:[%s9191_s14 + $0x68] sm:$0xff] }
 0xe51   : > { %5933 = vmatprep.subr.bf16.mxu0 %v5932_v9  ;;  %v5958_v36 = vpack.c.bf16 %v4138_v48, %v4137_v45  ;;  %v4156_v9 = vld [vmem:[%s9191_s14 + $0xf8] sm:$0xff] }
 0xf16   : > { %v5476_v18 = vpop.f32.mrb[4].mxu0 }
 0xf17   : > { %v5477_v23 = vpop.f32.mrb[5].mxu0 }
 0xf18   : > { %v5478_v25 = vadd.f32 %v5477_v23, %v5476_v18  ;;  %v4139_v18 = vld [vmem:[%s9191_s14 + $0x70] sm:$0xff]  ;;  %v5960_v23 = vpack.c.bf16 %v4156_v9, %v4155_v5 }
 0xf1a   : > { %6689 = vrsqrt.f32 %v5478_v25  ;;  %v5479_v51 = vpop.f32.mrb[6].mxu0  ;;  %vm4002_vm3 = vcmp.eq.f32.partialorder %v5478_v25, inf  ;;  %v4005_v54 = vand.u32 2147483648, %v5478_v25  ;;  %vm4004_vm4 = vcmp.eq.f32.partialorder %v5478_v25, 0.0 }
 0xf1b   : > { %v5480_v33 = vpop.f32.mrb[7].mxu0 }
 0xf1c   : > { %v5481_v59 = vadd.f32 %v5480_v33, %v5479_v51 }
 0xf1e   : > { %6691 = vrsqrt.f32 %v5481_v59  ;;  %vm4009_vm5 = vcmp.eq.f32.partialorder %v5481_v59, inf  ;;  %v4012_v3 = vand.u32 2147483648, %v5481_v59  ;;  %vm4011_vm6 = vcmp.eq.f32.partialorder %v5481_v59, 0.0 }
 0xf24   : > { %v6690_v52 = vpop.eup %6689 }
 0xf25   : > { %v4001_v58 = vmul.f32 %v6690_v52, %v5478_v25 }
 0xf27   : > { %v4003_v61 = vsel %vm4002_vm3, %v5478_v25, %v4001_v58  ;;  %v4140_v25 = vld [vmem:[%s9191_s14 + $0x78] sm:$0xff] }
 0xf28   : > { %v6692_v63 = vpop.eup %6691  ;;  %v4006_v28 = vsel %vm4004_vm4, %v4005_v54, %v4003_v61  ;;  %v5962_v51 = vpack.c.bf16 %v4140_v25, %v4139_v18 }
 0xf29   : > { %5276 = vmatmul.mubr.msk.f32.vlgmr.msra.gmra.mrb[8].mxu0 %vm1571_vm13, %v4006_v28  ;;  %v4008_v0 = vmul.f32 %v6692_v63, %v5481_v59 }
 0xf2a   : > { %4106 = vmatprep.mubr.f32.mxu0 %v6930_v13  ;;  %5935 = vmatpush3.bf16.msra.mxu0 %v5934_v55  ;;  %v6709_v55 = vld [vmem:[#allocation2 + $0x8] sm:$0xff] }
 0xf2b   : > { %v4010_v8 = vsel %vm4009_vm5, %v5481_v59, %v4008_v0  ;;  %5937 = vmatprep.subr.bf16.mxu0 %v5936_v39  ;;  %v4255_v0 = vld [vmem:[#allocation8 + $0x8] sm:$0xff] }
 0xf2c   : > { %v4013_v20 = vsel %vm4011_vm6, %v4012_v3, %v4010_v8  ;;  %v4256_v8 = vld [vmem:[#allocation8 + $0x10] sm:$0xff] }
 0xf2d   : > { %5277 = vmatmul.mubr.msk.f32.gmra.mrb[10].mxu0 %vm1571_vm13, %v4013_v20  ;;  %v4258_v20 = vld [vmem:[#allocation8 + $0x20] sm:$0xff] }
 0xf2e   : > { %5939 = vmatpush3.bf16.msra.mxu0 %v5938_v4  ;;  %v4254_v4 = vld [vmem:[#allocation8] sm:$0xff]  ;;  %v5970_v22 = vpack.c.bf16 %v4260_v37, %v4258_v20  ;;  %v4377_v20 = vld [vmem:[%s9195_s16 + $0x40] sm:$0xff] (!%p5282_p12)  ;;  %v4379_v37 = vld [vmem:[%s9195_s16 + $0x50] sm:$0xff] (!%p5282_p12) }
 0xf2f   : > { %5941 = vmatprep.subr.bf16.mxu0 %v5940_v10  ;;  %v4259_v10 = vld [vmem:[#allocation8 + $0x28] sm:$0xff] }
 0xf30   : > { %v5968_v42 = vpack.c.bf16 %v4261_v12, %v4259_v10  ;;  %v4380_v10 = vld [vmem:[%s9195_s16 + $0x58] sm:$0xff] (!%p5282_p12) }
 0xf32   : > { %5943 = vmatpush3.bf16.msra.mxu0 %v5942_v60  ;;  %v4263_v60 = vld [vmem:[#allocation8 + $0x48] sm:$0xff] }
 0xf33   : > { %5945 = vmatprep.subr.bf16.mxu0 %v5944_v15  ;;  %v4265_v15 = vld [vmem:[#allocation8 + $0x58] sm:$0xff] }
 0xf34   : > { %v5972_v57 = vpack.c.bf16 %v4265_v15, %v4263_v60  ;;  %v4384_v60 = vld [vmem:[%s9195_s16 + $0x78] sm:$0xff] (!%p5282_p12)  ;;  %v5990_v15 = vpack.c.bf16 (!%p5282_p12), %v4379_v37, %v4377_v20  ;;  %v4405_v20 = vld [vmem:[%s9195_s16 + $0x120] sm:$0xff] (!%p5282_p12) }
 0xf36   : > { %5947 = vmatpush3.bf16.msra.mxu0 %v5946_v19  ;;  %v4264_v19 = vld [vmem:[#allocation8 + $0x50] sm:$0xff] }
 0xf37   : > { %5949 = vmatprep.subr.bf16.mxu0 %v5948_v26  ;;  %v5974_v21 = vpack.c.bf16 %v4264_v19, %v4262_v17  ;;  %v4269_v26 = vld [vmem:[#allocation8 + $0x78] sm:$0xff]  ;;  %v4383_v19 = vld [vmem:[%s9195_s16 + $0x70] sm:$0xff] (!%p5282_p12) }
 0xf38   : > { %v5976_v30 = vpack.c.bf16 %v4269_v26, %v4267_v24  ;;  %v4381_v17 = vld [vmem:[%s9195_s16 + $0x60] sm:$0xff] (!%p5282_p12)  ;;  %v4388_v24 = vld [vmem:[%s9195_s16 + $0x98] sm:$0xff] (!%p5282_p12) }
 0xf39   : > { %v5994_v26 = vpack.c.bf16 (!%p5282_p12), %v4383_v19, %v4381_v17  ;;  %v4546_v17 = vld [vmem:[%s9196_s12 + $0xc0] sm:$0xff] (!%p5282_p12)  ;;  %v4547_v19 = vld [vmem:[%s9196_s12 + $0xc8] sm:$0xff] (!%p5282_p12) }
 0xf3a   : > { %5951 = vmatpush3.bf16.msra.mxu0 %v5950_v31  ;;  %v4268_v31 = vld [vmem:[#allocation8 + $0x70] sm:$0xff] }
 0xf3b   : > { %5953 = vmatprep.subr.bf16.mxu0 %v5952_v38  ;;  %v5978_v34 = vpack.c.bf16 %v4268_v31, %v4266_v29  ;;  %v4387_v31 = vld [vmem:[%s9195_s16 + $0x90] sm:$0xff] (!%p5282_p12) }
 0xf3e   : > { %5955 = vmatpush3.bf16.msra.mxu0 %v5954_v44 }
 0xf3f   : > { %5957 = vmatprep.subr.bf16.mxu0 %v5956_v49 }
 0xf42   : > { %5959 = vmatpush3.bf16.msra.mxu0 %v5958_v36 }
 0xf43   : > { %5961 = vmatprep.subr.bf16.mxu0 %v5960_v23 }
 0xf46   : > { %5963 = vmatpush3.bf16.msra.mxu0 %v5962_v51 }
 0xffc   : > { %v4102_v33 = vpop.f32.mrb[8].mxu0 }
 0xffd   : > { %6693 = vrcp.f32 %v4102_v33  ;;  %v4104_v59 = vpop.f32.mrb[9].mxu0 }
 0xffe   : > { %6695 = vrcp.f32 %v4104_v59 }
0x1000   : > { %v4108_v56 = vpop.f32.mrb[10].mxu0 }
0x1001   : > { %6697 = vrcp.f32 %v4108_v56  ;;  %v4110_v50 = vpop.f32.mrb[11].mxu0 }
0x1002   : > { %6699 = vrcp.f32 %v4110_v50 }
0x1007   : > { %v6694_v52 = vpop.eup %6693 }
0x1008   : > { %v6696_v53 = vpop.eup %6695  ;;  %v4117_v27 = vmul.f32 %v6694_v52, %v8541_v1 }
0x1009   : > { %v4118_v58 = vmul.f32 %v6696_v53, %v8543_v6  ;;  %v6712_v6 = vld [vmem:[#allocation2 + $0x10] sm:$0xff] }
0x100a   : > { %v8661_v43 = vadd.f32 %v6710_v40, %v4117_v27 }
0x100b   : > { %v6698_v54 = vpop.eup %6697  ;;  %v8659_v61 = vadd.f32 %v6709_v55, %v4118_v58 }
0x100c   : > { %v6700_v39 = vpop.eup %6699  ;;  %v4119_v63 = vmul.f32 %v6698_v54, %v8551_v14  ;;  %v4257_v14 = vld [vmem:[#allocation8 + $0x18] sm:$0xff] }
0x100d   : > { %4221 = vmatprep.mubr.f32.mxu0 %v8659_v61  ;;  %v4120_v28 = vmul.f32 %v6700_v39, %v8547_v11  ;;  %v5964_v3 = vpack.c.bf16 %v4257_v14, %v4255_v0  ;;  %v5966_v11 = vpack.c.bf16 %v4256_v8, %v4254_v4  ;;  %v4376_v0 = vld [vmem:[%s9195_s16 + $0x38] sm:$0xff] (!%p5282_p12)  ;;  %v4373_v4 = vld [vmem:[%s9195_s16 + $0x20] sm:$0xff] (!%p5282_p12)  ;;  %v4375_v8 = vld [vmem:[%s9195_s16 + $0x30] sm:$0xff] (!%p5282_p12) }
0x100e   : > { %4222 = vmatmul.mubr.f32.vlgmr.msra.gmra.mrb[12].mxu0 %v8661_v43  ;;  %v8669_v2 = vadd.f32 %v6712_v6, %v4119_v63  ;;  %v5986_v12 = vpack.c.bf16 (!%p5282_p12), %v4375_v8, %v4373_v4  ;;  %v4544_v4 = vld [vmem:[%s9196_s12 + $0xb0] sm:$0xff] (!%p5282_p12)  ;;  %v4545_v8 = vld [vmem:[%s9196_s12 + $0xb8] sm:$0xff] (!%p5282_p12) }
0x100f   : > { %v8667_v1 = vadd.f32 %v6711_v62, %v4120_v28  ;;  %5965 = vmatprep.subr.bf16.mxu0 %v5964_v3  ;;  %v6056_v37 = vpack.c.bf16 (!%p5282_p12), %v4545_v8, %v4544_v4  ;;  %v4432_v4 = vld [vmem:[%s9195_s16 + $0x1f8] sm:$0xff] (!%p5282_p12) }
0x1010   : > { %5967 = vmatpush1.bf16.msra.mxu0 %v5966_v11  ;;  %v4378_v11 = vld [vmem:[%s9195_s16 + $0x48] sm:$0xff] (!%p5282_p12) }
0x1011   : > { %4226 = vmatprep.mubr.f32.mxu0 %v8667_v1  ;;  %5969 = vmatprep.subr.bf16.mxu0 %v5968_v42  ;;  %v5988_v42 = vpack.c.bf16 (!%p5282_p12), %v4380_v10, %v4378_v11  ;;  %v4406_v11 = vld [vmem:[%s9195_s16 + $0x128] sm:$0xff] (!%p5282_p12)  ;;  %v4408_v10 = vld [vmem:[%s9195_s16 + $0x138] sm:$0xff] (!%p5282_p12) }
0x1012   : > { %4227 = vmatmul.mubr.f32.gmra.mrb[14].mxu0 %v8669_v2 }
0x1013   : > { %4340 = vmatprep.mubr.f32.mxu0 %v6930_v13 }
0x1014   : > { %5971 = vmatpush1.bf16.msra.mxu0 %v5970_v22  ;;  %v4382_v22 = vld [vmem:[%s9195_s16 + $0x68] sm:$0xff] (!%p5282_p12) }
0x1015   : > { %5973 = vmatprep.subr.bf16.mxu0 %v5972_v57  ;;  %v5992_v57 = vpack.c.bf16 (!%p5282_p12), %v4384_v60, %v4382_v22  ;;  %v4528_v22 = vld [vmem:[%s9196_s12 + $0x30] sm:$0xff] (!%p5282_p12)  ;;  %v4529_v60 = vld [vmem:[%s9196_s12 + $0x38] sm:$0xff] (!%p5282_p12) }
0x1018   : > { %5975 = vmatpush1.bf16.msra.mxu0 %v5974_v21  ;;  %v4386_v21 = vld [vmem:[%s9195_s16 + $0x88] sm:$0xff] (!%p5282_p12) }
0x1019   : > { %5977 = vmatprep.subr.bf16.mxu0 %v5976_v30  ;;  %v5996_v29 = vpack.c.bf16 (!%p5282_p12), %v4388_v24, %v4386_v21  ;;  %v4385_v30 = vld [vmem:[%s9195_s16 + $0x80] sm:$0xff] (!%p5282_p12)  ;;  %v4410_v21 = vld [vmem:[%s9195_s16 + $0x148] sm:$0xff] (!%p5282_p12)  ;;  %v4412_v24 = vld [vmem:[%s9195_s16 + $0x158] sm:$0xff] (!%p5282_p12) }
0x101c   : > { %5979 = vmatpush1.bf16.msra.mxu0 %v5978_v34  ;;  %v4390_v34 = vld [vmem:[%s9195_s16 + $0xa8] sm:$0xff] (!%p5282_p12) }
0x10e1   : > { %v5514_v35 = vpop.f32.mrb[12].mxu0 }
0x10e2   : > { %v5515_v38 = vpop.f32.mrb[13].mxu0 }
0x10e3   : > { %v5516_v7 = vadd.f32 %v5515_v38, %v5514_v35  ;;  %v4392_v35 = vld [vmem:[%s9195_s16 + $0xb8] sm:$0xff] (!%p5282_p12)  ;;  %v5998_v38 = vpack.c.bf16 (!%p5282_p12), %v4387_v31, %v4385_v30  ;;  %v4409_v30 = vld [vmem:[%s9195_s16 + $0x140] sm:$0xff] (!%p5282_p12)  ;;  %v6060_v31 = vpack.c.bf16 (!%p5282_p12), %v4547_v19, %v4546_v17  ;;  %v4536_v17 = vld [vmem:[%s9196_s12 + $0x70] sm:$0xff] (!%p5282_p12) }
0x10e4   : > { %v4537_v19 = vld [vmem:[%s9196_s12 + $0x78] sm:$0xff] (!%p5282_p12) }
0x10e5   : > { %v4232_v41 = vmul.f32 0.044715, %v5516_v7  ;;  %v5517_v44 = vpop.f32.mrb[14].mxu0 }
0x10e6   : > { %v5518_v46 = vpop.f32.mrb[15].mxu0 }
0x10e7   : > { %v4234_v47 = vmul.f32 %v5516_v7, %v4232_v41  ;;  %v5519_v49 = vadd.f32 %v5518_v46, %v5517_v44  ;;  %v4389_v41 = vld [vmem:[%s9195_s16 + $0xa0] sm:$0xff] (!%p5282_p12)  ;;  %v4391_v44 = vld [vmem:[%s9195_s16 + $0xb0] sm:$0xff] (!%p5282_p12)  ;;  %v4394_v46 = vld [vmem:[%s9195_s16 + $0xc8] sm:$0xff] (!%p5282_p12) }
0x10e9   : > { %v4236_v45 = vmul.f32 %v5516_v7, %v4234_v47  ;;  %v4233_v48 = vmul.f32 0.044715, %v5519_v49  ;;  %v4396_v47 = vld [vmem:[%s9195_s16 + $0xd8] sm:$0xff] (!%p5282_p12) }
0x10eb   : > { %v4238_v36 = vadd.f32 %v5516_v7, %v4236_v45  ;;  %v4235_v5 = vmul.f32 %v5519_v49, %v4233_v48  ;;  %v6000_v7 = vpack.c.bf16 (!%p5282_p12), %v4392_v35, %v4390_v34  ;;  %v6004_v45 = vpack.c.bf16 (!%p5282_p12), %v4396_v47, %v4394_v46  ;;  %v4393_v48 = vld [vmem:[%s9195_s16 + $0xc0] sm:$0xff] (!%p5282_p12)  ;;  %v4531_v35 = vld [vmem:[%s9196_s12 + $0x48] sm:$0xff] (!%p5282_p12)  ;;  %v4416_v47 = vld [vmem:[%s9195_s16 + $0x178] sm:$0xff] (!%p5282_p12) }
0x10ec   : > { %v4530_v34 = vld [vmem:[%s9196_s12 + $0x40] sm:$0xff] (!%p5282_p12)  ;;  %v4414_v46 = vld [vmem:[%s9195_s16 + $0x168] sm:$0xff] (!%p5282_p12) }
0x10ed   : > { %v5278_v9 = vmul.f32 -1.5957692, %v4238_v36  ;;  %v4237_v18 = vmul.f32 %v5519_v49, %v4235_v5  ;;  %v4395_v36 = vld [vmem:[%s9195_s16 + $0xd0] sm:$0xff] (!%p5282_p12) }
0x10ef   : > { %v4244_v23 = vmul.f32 1.442695, %v5278_v9  ;;  %v4239_v25 = vadd.f32 %v5519_v49, %v4237_v18  ;;  %v6002_v49 = vpack.c.bf16 (!%p5282_p12), %v4391_v44, %v4389_v41  ;;  %v4398_v9 = vld [vmem:[%s9195_s16 + $0xe8] sm:$0xff] (!%p5282_p12)  ;;  %v4400_v18 = vld [vmem:[%s9195_s16 + $0xf8] sm:$0xff] (!%p5282_p12)  ;;  %v4548_v41 = vld [vmem:[%s9196_s12 + $0xd0] sm:$0xff] (!%p5282_p12) }
0x10f0   : > { %v4549_v44 = vld [vmem:[%s9196_s12 + $0xd8] sm:$0xff] (!%p5282_p12) }
0x10f1   : > { %6701 = vpow2.f32 %v4244_v23  ;;  %v5279_v51 = vmul.f32 -1.5957692, %v4239_v25  ;;  %v4538_v23 = vld [vmem:[%s9196_s12 + $0x80] sm:$0xff] (!%p5282_p12) }
0x10f2   : > { %v4397_v25 = vld [vmem:[%s9195_s16 + $0xe0] sm:$0xff] (!%p5282_p12) }
0x10f3   : > { %v4246_v33 = vmul.f32 1.442695, %v5279_v51  ;;  %v4399_v51 = vld [vmem:[%s9195_s16 + $0xf0] sm:$0xff] (!%p5282_p12) }
0x10f5   : > { %6703 = vpow2.f32 %v4246_v33  ;;  %v4539_v33 = vld [vmem:[%s9196_s12 + $0x88] sm:$0xff] (!%p5282_p12) }
0x10fb   : > { %v6702_v59 = vpop.eup %6701 }
0x10fc   : > { %v4248_v56 = vadd.f32 1.0, %v6702_v59  ;;  %v4522_v59 = vld [vmem:[%s9196_s12] sm:$0xff] (!%p5282_p12) }
0x10fe   : > { %6705 = vrcp.f32 %v4248_v56  ;;  %v4523_v56 = vld [vmem:[%s9196_s12 + $0x8] sm:$0xff] (!%p5282_p12) }
0x10ff   : > { %v6704_v50 = vpop.eup %6703 }
0x1100   : > { %v4249_v52 = vadd.f32 1.0, %v6704_v50  ;;  %v6006_v50 = vpack.c.bf16 (!%p5282_p12), %v4395_v36, %v4393_v48  ;;  %v4413_v48 = vld [vmem:[%s9195_s16 + $0x160] sm:$0xff] (!%p5282_p12)  ;;  %v6064_v36 = vpack.c.bf16 (!%p5282_p12), %v4549_v44, %v4548_v41 }
0x1102   : > { %6707 = vrcp.f32 %v4249_v52  ;;  %v6044_v52 = vpack.c.bf16 (!%p5282_p12), %v4539_v33, %v4538_v23  ;;  %v4415_v23 = vld [vmem:[%s9195_s16 + $0x170] sm:$0xff] (!%p5282_p12)  ;;  %v4418_v33 = vld [vmem:[%s9195_s16 + $0x188] sm:$0xff] (!%p5282_p12) }
0x1104   : > { %6045 = vmatprep.subr.bf16.mxu1 (!%p5282_p12), %v6044_v52 }
0x1108   : > { %v6706_v53 = vpop.eup %6705 }
0x1109   : > { %5280 = vmatmul.mubr.msk.f32.vlgmr.msra.gmra.mrb[16].mxu0 %vm1571_vm13, %v6706_v53  ;;  %v6046_v53 = vpack.c.bf16 (!%p5282_p12), %v4523_v56, %v4522_v59  ;;  %v4420_v59 = vld [vmem:[%s9195_s16 + $0x198] sm:$0xff] (!%p5282_p12) }
0x110a   : > { %4346 = vmatprep.mubr.f32.mxu0 %v6930_v13  ;;  %v4370_v13 = vld [vmem:[%s9194_s24 + $0x8] sm:$0xff] (!%p5282_p12) }
0x110b   : > { %6047 = vmatpush3.bf16.msra.mxu1 (!%p5282_p12), %v6046_v53  ;;  %v4534_v53 = vld [vmem:[%s9196_s12 + $0x60] sm:$0xff] (!%p5282_p12) }
0x110c   : > { %v6708_v27 = vpop.eup %6707 }
0x110d   : > { %5281 = vmatmul.mubr.msk.f32.gmra.mrb[18].mxu0 %vm1571_vm13, %v6708_v27  ;;  %v4540_v27 = vld [vmem:[%s9196_s12 + $0x90] sm:$0xff] (!%p5282_p12) }
0x11dc   : > { %v4342_v58 = vpop.f32.mrb[16].mxu0 }
0x11dd   : > { %v4353_v54 = vmul.f32 %v4342_v58, %v8661_v43  ;;  %v4344_v55 = vpop.f32.mrb[17].mxu0  ;;  %v4369_v43 = vld [vmem:[%s9195_s16] sm:$0xff] (!%p5282_p12)  ;;  %v4541_v58 = vld [vmem:[%s9196_s12 + $0x98] sm:$0xff] (!%p5282_p12) }
0x11de   : > { %v4354_v39 = vmul.f32 %v4344_v55, %v8659_v61  ;;  %4364 = sbr.rel (%p5282_p12) target bundleno = 5549 (0x15ad), region = 112  ;;  %v4372_v61 = vld [vmem:[%s9195_s16 + $0x18] sm:$0xff] (!%p5282_p12)  ;;  %v6008_v55 = vpack.c.bf16 (!%p5282_p12), %v4400_v18, %v4398_v9  ;;  %v6024_v18 = vpack.c.bf16 (!%p5282_p12), %v4416_v47, %v4414_v46  ;;  %v4651_v47 = vld [vmem:[#allocation8] sm:$0xff] (!%p5282_p12) }
0x11df   : > { %4357 = vst [vmem:[#allocation2] sm:$0xff] %v4353_v54  ;;  %v5980_v6 = vpack.c.bf16 (!%p5282_p12), %v4372_v61, %v4370_v13  ;;  %v4524_v54 = vld [vmem:[%s9196_s12 + $0x10] sm:$0xff] (!%p5282_p12)  ;;  %v4404_v13 = vld [vmem:[%s9195_s16 + $0x118] sm:$0xff] (!%p5282_p12) }
0x11e0   : > { %4358 = vst [vmem:[#allocation2 + $0x8] sm:$0xff] %v4354_v39  ;;  %v4348_v40 = vpop.f32.mrb[18].mxu0  ;;  %v6048_v39 = vpack.c.bf16 (!%p5282_p12), %v4541_v58, %v4540_v27  ;;  %v4533_v9 = vld [vmem:[%s9196_s12 + $0x58] sm:$0xff] (!%p5282_p12)  ;;  %v4535_v27 = vld [vmem:[%s9196_s12 + $0x68] sm:$0xff] (!%p5282_p12)  ;;  %v6028_v58 = vpack.c.bf16 (!%p5282_p12), %v4420_v59, %v4418_v33 }
0x11e1   : > { %v4355_v63 = vmul.f32 %v4348_v40, %v8669_v2  ;;  %v4350_v28 = vpop.f32.mrb[19].mxu0  ;;  %v4374_v2 = vld [vmem:[%s9195_s16 + $0x28] sm:$0xff] (!%p5282_p12)  ;;  %5981 = vmatprep.subr.bf16.mxu0 (!%p5282_p12), %v5980_v6  ;;  %v4525_v40 = vld [vmem:[%s9196_s12 + $0x18] sm:$0xff] (!%p5282_p12)  ;;  %v4401_v6 = vld [vmem:[%s9195_s16 + $0x100] sm:$0xff] (!%p5282_p12) }
0x11e2   : > { %v4356_v62 = vmul.f32 %v4350_v28, %v8667_v1  ;;  %v4371_v1 = vld [vmem:[%s9195_s16 + $0x10] sm:$0xff] (!%p5282_p12)  ;;  %v5984_v3 = vpack.c.bf16 (!%p5282_p12), %v4376_v0, %v4374_v2  ;;  %v4543_v28 = vld [vmem:[%s9196_s12 + $0xa8] sm:$0xff] (!%p5282_p12)  ;;  %v6050_v61 = vpack.c.bf16 (!%p5282_p12), %v4525_v40, %v4524_v54  ;;  %6049 = vmatprep.subr.bf16.mxu1 (!%p5282_p12), %v6048_v39  ;;  %v4526_v2 = vld [vmem:[%s9196_s12 + $0x20] sm:$0xff] (!%p5282_p12) }
0x11e3   : > { %4359 = vst [vmem:[#allocation2 + $0x10] sm:$0xff] %v4355_v63  ;;  %v5982_v14 = vpack.c.bf16 (!%p5282_p12), %v4371_v1, %v4369_v43  ;;  %v4542_v63 = vld [vmem:[%s9196_s12 + $0xa0] sm:$0xff] (!%p5282_p12)  ;;  %v6010_v43 = vpack.c.bf16 (!%p5282_p12), %v4399_v51, %v4397_v25  ;;  %v4527_v0 = vld [vmem:[%s9196_s12 + $0x28] sm:$0xff] (!%p5282_p12)  ;;  %v4424_v40 = vld [vmem:[%s9195_s16 + $0x1b8] sm:$0xff] (!%p5282_p12) }
0x11e4   : > { %4360 = vst [vmem:[#allocation2 + $0x18] sm:$0xff] %v4356_v62  ;;  %v4402_v62 = vld [vmem:[%s9195_s16 + $0x108] sm:$0xff] (!%p5282_p12)  ;;  %v6052_v1 = vpack.c.bf16 (!%p5282_p12), %v4543_v28, %v4542_v63  ;;  %6051 = vmatpush3.bf16.msra.mxu1 (!%p5282_p12), %v6050_v61  ;;  %v4550_v25 = vld [vmem:[%s9196_s12 + $0xe0] sm:$0xff] (!%p5282_p12)  ;;  %v6070_v63 = vpack.c.bf16 (!%p5282_p12), %v4535_v27, %v4534_v53  ;;  %v4423_v61 = vld [vmem:[%s9195_s16 + $0x1b0] sm:$0xff] (!%p5282_p12) }
0x11e5   : > { %5983 = vmatpush1.bf16.msra.mxu0 %v5982_v14  ;;  %v6012_v14 = vpack.c.bf16 %v4404_v13, %v4402_v62  ;;  %v4551_v51 = vld [vmem:[%s9196_s12 + $0xe8] sm:$0xff]  ;;  %v4417_v54 = vld [vmem:[%s9195_s16 + $0x180] sm:$0xff] }
0x11e6   : > { %5985 = vmatprep.subr.bf16.mxu0 %v5984_v3  ;;  %v4403_v3 = vld [vmem:[%s9195_s16 + $0x110] sm:$0xff]  ;;  %6053 = vmatprep.subr.bf16.mxu1 %v6052_v1  ;;  %v6068_v52 = vpack.c.bf16 %v4551_v51, %v4550_v25  ;;  %v4422_v39 = vld [vmem:[%s9195_s16 + $0x1a8] sm:$0xff]  ;;  %v4421_v13 = vld [vmem:[%s9195_s16 + $0x1a0] sm:$0xff] }
0x11e7   : > { %v4366_v5 = vld [vmem:[#allocation2 + $0x8] sm:$0xff]  ;;  %v6032_v62 = vpack.c.bf16 %v4424_v40, %v4422_v39  ;;  %v6034_v1 = vpack.c.bf16 %v4423_v61, %v4421_v13  ;;  %v4660_v25 = vld [vmem:[#allocation8 + $0x48] sm:$0xff]  ;;  %v4662_v51 = vld [vmem:[#allocation8 + $0x58] sm:$0xff] }
0x11e8   : > { %4509 = vmatprep.mubr.f32.mxu0 %v4366_v5  ;;  %v4532_v5 = vld [vmem:[%s9196_s12 + $0x50] sm:$0xff]  ;;  %v6084_v33 = vpack.c.bf16 %v4662_v51, %v4660_v25  ;;  %v4659_v59 = vld [vmem:[#allocation8 + $0x40] sm:$0xff]  ;;  %v4666_v53 = vld [vmem:[#allocation8 + $0x78] sm:$0xff] }
0x11e9   : > { %5987 = vmatpush1.bf16.msra.mxu0 %v5986_v12  ;;  %v6054_v12 = vpack.c.bf16 %v4527_v0, %v4526_v2  ;;  %v6066_v56 = vpack.c.bf16 %v4533_v9, %v4532_v5  ;;  %v4425_v0 = vld [vmem:[%s9195_s16 + $0x1c0] sm:$0xff]  ;;  %v4655_v9 = vld [vmem:[#allocation8 + $0x20] sm:$0xff] }
0x11ea   : > { %5989 = vmatprep.subr.bf16.mxu0 %v5988_v42  ;;  %v6014_v42 = vpack.c.bf16 %v4403_v3, %v4401_v6  ;;  %v4428_v6 = vld [vmem:[%s9195_s16 + $0x1d8] sm:$0xff]  ;;  %v4430_v3 = vld [vmem:[%s9195_s16 + $0x1e8] sm:$0xff]  ;;  %v4770_v40 = vld [vmem:[%s9198_s10 + $0x80] sm:$0xff] }
0x11eb   : > { %6055 = vmatpush3.bf16.msra.mxu1 %v6054_v12  ;;  %v4431_v12 = vld [vmem:[%s9195_s16 + $0x1f0] sm:$0xff]  ;;  %v4663_v27 = vld [vmem:[#allocation8 + $0x60] sm:$0xff]  ;;  %v4778_v25 = vld [vmem:[%s9198_s10 + $0xc0] sm:$0xff] }
0x11ec   : > { %6057 = vmatprep.subr.bf16.mxu1 %v6056_v37  ;;  %v4368_v37 = vld [vmem:[#allocation2 + $0x18] sm:$0xff]  ;;  %v4779_v51 = vld [vmem:[%s9198_s10 + $0xc8] sm:$0xff] }
0x11ed   : > { %5991 = vmatpush1.bf16.msra.mxu0 %v5990_v15  ;;  %v6016_v15 = vpack.c.bf16 %v4408_v10, %v4406_v11  ;;  %v6040_v11 = vpack.c.bf16 %v4432_v4, %v4430_v3  ;;  %v4429_v10 = vld [vmem:[%s9195_s16 + $0x1e0] sm:$0xff] }
0x11ee   : > { %5993 = vmatprep.subr.bf16.mxu0 %v5992_v57  ;;  %v4407_v57 = vld [vmem:[%s9195_s16 + $0x130] sm:$0xff] }
0x11f1   : > { %5995 = vmatpush1.bf16.msra.mxu0 %v5994_v26  ;;  %v6058_v26 = vpack.c.bf16 %v4529_v60, %v4528_v22  ;;  %v4367_v22 = vld [vmem:[#allocation2 + $0x10] sm:$0xff] }
0x11f2   : > { %5997 = vmatprep.subr.bf16.mxu0 %v5996_v29  ;;  %v6018_v29 = vpack.c.bf16 %v4407_v57, %v4405_v20  ;;  %v4365_v20 = vld [vmem:[#allocation2] sm:$0xff]  ;;  %v4552_v60 = vld [vmem:[%s9196_s12 + $0xf0] sm:$0xff] }
0x11f3   : > { %6059 = vmatpush3.bf16.msra.mxu1 %v6058_v26 }
0x11f4   : > { %6061 = vmatprep.subr.bf16.mxu1 %v6060_v31 }
0x11f5   : > { %5999 = vmatpush1.bf16.msra.mxu0 %v5998_v38  ;;  %v6020_v38 = vpack.c.bf16 %v4412_v24, %v4410_v21  ;;  %v6074_v21 = vpack.c.bf16 %v4537_v19, %v4536_v17  ;;  %v4433_v24 = vld [vmem:[%s9197_s22] sm:$0x3]  ;;  %v4755_v19 = vld [vmem:[%s9198_s10 + $0x8] sm:$0xff] }
0x11f6   : > { %6001 = vmatprep.subr.bf16.mxu0 %v6000_v7  ;;  %v4411_v7 = vld [vmem:[%s9195_s16 + $0x150] sm:$0xff]  ;;  %v4442_v26 = vrot.slane %v4433_v24, %v8113_v16  ;;  %v4654_v16 = vld [vmem:[#allocation8 + $0x18] sm:$0xff] }
0x11f7   : > { %v4754_v17 = vld [vmem:[%s9198_s10] sm:$0xff] }
0x11f9   : > { %6003 = vmatpush1.bf16.msra.mxu0 %v6002_v49  ;;  %v6062_v49 = vpack.c.bf16 %v4531_v35, %v4530_v34 }
0x11fa   : > { %6005 = vmatprep.subr.bf16.mxu0 %v6004_v45  ;;  %v6022_v45 = vpack.c.bf16 %v4411_v7, %v4409_v30 }
0x11fb   : > { %6063 = vmatpush3.bf16.msra.mxu1 %v6062_v49  ;;  %v4653_v49 = vld [vmem:[#allocation8 + $0x10] sm:$0xff] }
0x11fc   : > { %6065 = vmatprep.subr.bf16.mxu1 %v6064_v36  ;;  %v4658_v36 = vld [vmem:[#allocation8 + $0x38] sm:$0xff] }
0x11fd   : > { %6007 = vmatpush1.bf16.msra.mxu0 %v6006_v50  ;;  %v6026_v50 = vpack.c.bf16 %v4415_v23, %v4413_v48  ;;  %v4656_v48 = vld [vmem:[#allocation8 + $0x28] sm:$0xff] }
0x11fe   : > { %6009 = vmatprep.subr.bf16.mxu0 %v6008_v55  ;;  %v4419_v55 = vld [vmem:[%s9195_s16 + $0x190] sm:$0xff]  ;;  %v6080_v5 = vpack.c.bf16 %v4658_v36, %v4656_v48  ;;  %v4777_v36 = vld [vmem:[%s9198_s10 + $0xb8] sm:$0xff] }
0x11ff   : > { %6067 = vmatpush3.bf16.msra.mxu1 %v6066_v56  ;;  %v6030_v28 = vpack.c.bf16 %v4419_v55, %v4417_v54  ;;  %v4661_v56 = vld [vmem:[#allocation8 + $0x50] sm:$0xff]  ;;  %v6931_v55 = vmov 0.0   ;;  %v4776_v48 = vld [vmem:[%s9198_s10 + $0xb0] sm:$0xff] }
0x1200   : > { %6069 = vmatprep.subr.bf16.mxu1 %v6068_v52  ;;  %v4664_v52 = vld [vmem:[#allocation8 + $0x68] sm:$0xff]  ;;  %v4665_v54 = vld [vmem:[#allocation8 + $0x70] sm:$0xff] }
0x1201   : > { %6011 = vmatpush1.bf16.msra.mxu0 %v6010_v43  ;;  %v4426_v43 = vld [vmem:[%s9195_s16 + $0x1c8] sm:$0xff]  ;;  %v6090_v39 = vpack.c.bf16 %v4665_v54, %v4663_v27  ;;  %v4764_v54 = vld [vmem:[%s9198_s10 + $0x50] sm:$0xff] }
0x1202   : > { %6013 = vmatprep.subr.bf16.mxu0 %v6012_v14  ;;  %v6036_v2 = vpack.c.bf16 %v4428_v6, %v4426_v43  ;;  %v4427_v14 = vld [vmem:[%s9195_s16 + $0x1d0] sm:$0xff] }
0x1203   : > { %6071 = vmatpush3.bf16.msra.mxu1 %v6070_v63  ;;  %v6038_v8 = vpack.c.bf16 %v4427_v14, %v4425_v0  ;;  %v4771_v63 = vld [vmem:[%s9198_s10 + $0x88] sm:$0xff] }
0x1205   : > { %6015 = vmatpush1.bf16.msra.mxu0 %v6014_v42  ;;  %v6042_v42 = vpack.c.bf16 %v4431_v12, %v4429_v10 }
0x1206   : > { %6017 = vmatprep.subr.bf16.mxu0 %v6016_v15  ;;  %v4553_v15 = vld [vmem:[%s9196_s12 + $0xf8] sm:$0xff] }
0x1207   : > { %v6072_v57 = vpack.c.bf16 %v4553_v15, %v4552_v60 }
0x1209   : > { %6019 = vmatpush1.bf16.msra.mxu0 %v6018_v29  ;;  %6073 = vmatprep.subr.bf16.mxu1 %v6072_v57  ;;  %v4438_v29 = vrot.slane %v4433_v24, %v8110_v32  ;;  %v4652_v32 = vld [vmem:[#allocation8 + $0x8] sm:$0xff]  ;;  %v4773_v24 = vld [vmem:[%s9198_s10 + $0x98] sm:$0xff] }
0x120a   : > { %6021 = vmatprep.subr.bf16.mxu0 %v6020_v38  ;;  %6075 = vmatpush3.bf16.msra.mxu1 %v6074_v21  ;;  %v6076_v46 = vpack.c.bf16 %v4654_v16, %v4652_v32  ;;  %v4772_v21 = vld [vmem:[%s9198_s10 + $0x90] sm:$0xff]  ;;  %v4775_v32 = vld [vmem:[%s9198_s10 + $0xa8] sm:$0xff] }
0x120c   : > { %6077 = vmatprep.subr.bf16.mxu1 %v6076_v46 }
0x120d   : > { %6023 = vmatpush1.bf16.msra.mxu0 %v6022_v45  ;;  %v6078_v45 = vpack.c.bf16 %v4653_v49, %v4651_v47  ;;  %v4758_v47 = vld [vmem:[%s9198_s10 + $0x20] sm:$0xff]  ;;  %v4759_v49 = vld [vmem:[%s9198_s10 + $0x28] sm:$0xff] }
0x120e   : > { %6025 = vmatprep.subr.bf16.mxu0 %v6024_v18  ;;  %v4657_v18 = vld [vmem:[#allocation8 + $0x30] sm:$0xff] }
0x120f   : > { %v6082_v23 = vpack.c.bf16 %v4657_v18, %v4655_v9  ;;  %v6104_v9 = vpack.c.bf16 %v4777_v36, %v4776_v48  ;;  %v4760_v18 = vld [vmem:[%s9198_s10 + $0x30] sm:$0xff] }
0x1211   : > { %6027 = vmatpush1.bf16.msra.mxu0 %v6026_v50  ;;  %v6086_v50 = vpack.c.bf16 %v4661_v56, %v4659_v59  ;;  %v6108_v59 = vpack.c.bf16 %v4779_v51, %v4778_v25  ;;  %v4762_v56 = vld [vmem:[%s9198_s10 + $0x40] sm:$0xff] }
0x1212   : > { %6029 = vmatprep.subr.bf16.mxu0 %v6028_v58  ;;  %v6088_v58 = vpack.c.bf16 %v4666_v53, %v4664_v52  ;;  %v4780_v52 = vld [vmem:[%s9198_s10 + $0xd0] sm:$0xff]  ;;  %v4781_v53 = vld [vmem:[%s9198_s10 + $0xd8] sm:$0xff] }
0x1215   : > { %6031 = vmatpush1.bf16.msra.mxu0 %v6030_v28  ;;  %v6092_v28 = vpack.c.bf16 %v4771_v63, %v4770_v40  ;;  %v4783_v40 = vld [vmem:[%s9198_s10 + $0xe8] sm:$0xff] }
0x1216   : > { %6033 = vmatprep.subr.bf16.mxu0 %v6032_v62 }
0x1219   : > { %6035 = vmatpush1.bf16.msra.mxu0 %v6034_v1 }
0x121a   : > { %6037 = vmatprep.subr.bf16.mxu0 %v6036_v2 }
0x121d   : > { %6039 = vmatpush1.bf16.msra.mxu0 %v6038_v8 }
0x121e   : > { %6041 = vmatprep.subr.bf16.mxu0 %v6040_v11 }
0x1221   : > { %6043 = vmatpush1.bf16.msra.mxu0 %v6042_v42 }
0x1224   : > { %4510 = vmatmul.mubr.f32.vlgmr.msra.gmra.mrb[0].mxu0 %v4365_v20 }
0x1225   : > { %4515 = vmatprep.mubr.f32.mxu0 %v4368_v37 }
0x1228   : > { %4516 = vmatmul.mubr.f32.gmra.mrb[2].mxu0 %v4367_v22 }
0x12f7   : > { %v4511_v30 = vpop.f32.mrb[0].mxu0 }
0x12f8   : > { %v4513_v31 = vpop.f32.mrb[1].mxu0  ;;  %v8977_v35 = vadd.f32 %v4511_v30, %v4438_v29  ;;  %v4756_v30 = vld [vmem:[%s9198_s10 + $0x10] sm:$0xff] }
0x12f9   : > { %v8975_v34 = vadd.f32 %v4513_v31, %v4442_v26  ;;  %v4757_v31 = vld [vmem:[%s9198_s10 + $0x18] sm:$0xff] }
0x12fa   : > { %v6098_v16 = vpack.c.bf16 %v4757_v31, %v4756_v30 }
0x12fb   : > { %v4517_v38 = vpop.f32.mrb[2].mxu0  ;;  %4618 = vmatprep.mubr.f32.mxu1 %v8975_v34 }
0x12fc   : > { %v4519_v7 = vpop.f32.mrb[3].mxu0  ;;  %4619 = vmatmul.mubr.f32.vlgmr.msra.gmra.mrb[0].mxu1 %v8977_v35  ;;  %v8983_v44 = vadd.f32 %v4517_v38, %v4438_v29  ;;  %v6096_v29 = vpack.c.bf16 %v4773_v24, %v4772_v21 }
0x12fd   : > { %v8981_v41 = vadd.f32 %v4519_v7, %v4442_v26  ;;  %6079 = vmatpush1.bf16.msra.mxu1 %v6078_v45  ;;  %v6094_v26 = vpack.c.bf16 %v4755_v19, %v4754_v17  ;;  %v4774_v7 = vld [vmem:[%s9198_s10 + $0xa0] sm:$0xff] }
0x12fe   : > { %6081 = vmatprep.subr.bf16.mxu1 %v6080_v5  ;;  %v6100_v46 = vpack.c.bf16 %v4775_v32, %v4774_v7  ;;  %v6102_v5 = vpack.c.bf16 %v4759_v49, %v4758_v47 }
0x12ff   : > { %4623 = vmatprep.mubr.f32.mxu1 %v8981_v41 }
0x1300   : > { %4624 = vmatmul.mubr.f32.gmra.mrb[2].mxu1 %v8983_v44 }
0x1301   : > { %6083 = vmatpush1.bf16.msra.mxu1 %v6082_v23  ;;  %4737 = vmatprep.mubr.f32.mxu1 %v6931_v55  ;;  %v4761_v23 = vld [vmem:[%s9198_s10 + $0x38] sm:$0xff] }
0x1302   : > { %6085 = vmatprep.subr.bf16.mxu1 %v6084_v33  ;;  %v6106_v33 = vpack.c.bf16 %v4761_v23, %v4760_v18 }
0x1305   : > { %6087 = vmatpush1.bf16.msra.mxu1 %v6086_v50  ;;  %v4763_v50 = vld [vmem:[%s9198_s10 + $0x48] sm:$0xff] }
0x1306   : > { %6089 = vmatprep.subr.bf16.mxu1 %v6088_v58  ;;  %v6110_v27 = vpack.c.bf16 %v4763_v50, %v4762_v56  ;;  %v6112_v58 = vpack.c.bf16 %v4781_v53, %v4780_v52 }
0x1309   : > { %6091 = vmatpush1.bf16.msra.mxu1 %v6090_v39  ;;  %v4782_v39 = vld [vmem:[%s9198_s10 + $0xe0] sm:$0xff] }
0x130a   : > { %6093 = vmatprep.subr.bf16.mxu1 %v6092_v28  ;;  %v6116_v28 = vpack.c.bf16 %v4783_v40, %v4782_v39 }
0x13cf   : > { %v5552_v62 = vpop.f32.mrb[0].mxu1 }
0x13d0   : > { %v5553_v13 = vpop.f32.mrb[1].mxu1 }
0x13d1   : > { %v5554_v61 = vadd.f32 %v5553_v13, %v5552_v62  ;;  %v4766_v62 = vld [vmem:[%s9198_s10 + $0x60] sm:$0xff]  ;;  %v4767_v13 = vld [vmem:[%s9198_s10 + $0x68] sm:$0xff] }
0x13d3   : > { %v4629_v43 = vmul.f32 0.044715, %v5554_v61  ;;  %v5555_v6 = vpop.f32.mrb[2].mxu1 }
0x13d4   : > { %v5556_v1 = vpop.f32.mrb[3].mxu1 }
0x13d5   : > { %v4631_v2 = vmul.f32 %v5554_v61, %v4629_v43  ;;  %v5557_v0 = vadd.f32 %v5556_v1, %v5555_v6  ;;  %v4784_v43 = vld [vmem:[%s9198_s10 + $0xf0] sm:$0xff]  ;;  %v4785_v6 = vld [vmem:[%s9198_s10 + $0xf8] sm:$0xff] }
0x13d6   : > { %v6120_v1 = vpack.c.bf16 %v4785_v6, %v4784_v43 }
0x13d7   : > { %v4633_v14 = vmul.f32 %v5554_v61, %v4631_v2  ;;  %v4630_v3 = vmul.f32 0.044715, %v5557_v0  ;;  %v4768_v2 = vld [vmem:[%s9198_s10 + $0x70] sm:$0xff] }
0x13d9   : > { %v4635_v4 = vadd.f32 %v5554_v61, %v4633_v14  ;;  %v4632_v8 = vmul.f32 %v5557_v0, %v4630_v3  ;;  %v6118_v61 = vpack.c.bf16 %v4767_v13, %v4766_v62 }
0x13db   : > { %v5283_v11 = vmul.f32 -1.5957692, %v4635_v4  ;;  %v4634_v10 = vmul.f32 %v5557_v0, %v4632_v8 }
0x13dd   : > { %v4641_v12 = vmul.f32 1.442695, %v5283_v11  ;;  %v4636_v42 = vadd.f32 %v5557_v0, %v4634_v10  ;;  %v4769_v0 = vld [vmem:[%s9198_s10 + $0x78] sm:$0xff] }
0x13de   : > { %v6122_v14 = vpack.c.bf16 %v4769_v0, %v4768_v2 }
0x13df   : > { %6713 = vpow2.f32 %v4641_v12  ;;  %v5284_v20 = vmul.f32 -1.5957692, %v4636_v42 }
0x13e1   : > { %v4643_v37 = vmul.f32 1.442695, %v5284_v20 }
0x13e3   : > { %6715 = vpow2.f32 %v4643_v37 }
0x13e9   : > { %v6714_v22 = vpop.eup %6713 }
0x13ea   : > { %v4645_v60 = vadd.f32 1.0, %v6714_v22  ;;  %v5287_v22 = vld [vmem:[%s9199_s15] ss:$0 sm:$0xff] }
0x13ec   : > { %6717 = vrcp.f32 %v4645_v60 }
0x13ed   : > { %v6716_v15 = vpop.eup %6715 }
0x13ee   : > { %v4646_v57 = vadd.f32 1.0, %v6716_v15 }
0x13f0   : > { %6719 = vrcp.f32 %v4646_v57 }
0x13f6   : > { %v6718_v38 = vpop.eup %6717 }
0x13f7   : > { %5285 = vmatmul.mubr.msk.f32.vlgmr.msra.gmra.mrb[4].mxu1 %vm1571_vm13, %v6718_v38 }
0x13f8   : > { %4743 = vmatprep.mubr.f32.mxu1 %v6931_v55  ;;  %6095 = vmatpush3.bf16.msra.mxu1 %v6094_v26  ;;  %v4765_v55 = vld [vmem:[%s9198_s10 + $0x58] sm:$0xff] }
0x13f9   : > { %6097 = vmatprep.subr.bf16.mxu1 %v6096_v29  ;;  %v6114_v63 = vpack.c.bf16 %v4765_v55, %v4764_v54 }
0x13fa   : > { %v6720_v45 = vpop.eup %6719 }
0x13fb   : > { %5286 = vmatmul.mubr.msk.f32.gmra.mrb[6].mxu1 %vm1571_vm13, %v6720_v45 }
0x13fc   : > { %6099 = vmatpush3.bf16.msra.mxu1 %v6098_v16 }
0x13fd   : > { %6101 = vmatprep.subr.bf16.mxu1 %v6100_v46 }
0x1400   : > { %6103 = vmatpush3.bf16.msra.mxu1 %v6102_v5 }
0x1401   : > { %6105 = vmatprep.subr.bf16.mxu1 %v6104_v9 }
0x1404   : > { %6107 = vmatpush3.bf16.msra.mxu1 %v6106_v33 }
0x1405   : > { %6109 = vmatprep.subr.bf16.mxu1 %v6108_v59 }
0x1408   : > { %6111 = vmatpush3.bf16.msra.mxu1 %v6110_v27 }
0x1409   : > { %6113 = vmatprep.subr.bf16.mxu1 %v6112_v58 }
0x140c   : > { %6115 = vmatpush3.bf16.msra.mxu1 %v6114_v63 }
0x140d   : > { %6117 = vmatprep.subr.bf16.mxu1 %v6116_v28 }
0x1410   : > { %6119 = vmatpush3.bf16.msra.mxu1 %v6118_v61 }
0x1411   : > { %6121 = vmatprep.subr.bf16.mxu1 %v6120_v1 }
0x1414   : > { %6123 = vmatpush3.bf16.msra.mxu1 %v6122_v14 }
0x14ca   : > { %v4739_v3 = vpop.f32.mrb[4].mxu1 }
0x14cb   : > { %v4741_v4 = vpop.f32.mrb[5].mxu1  ;;  %v4750_v11 = vmul.f32 %v4739_v3, %v8977_v35 }
0x14cc   : > { %v4751_v8 = vmul.f32 %v4741_v4, %v8975_v34 }
0x14ce   : > { %v4745_v10 = vpop.f32.mrb[6].mxu1  ;;  %4857 = vmatprep.mubr.f32.mxu1 %v4751_v8 }
0x14cf   : > { %v4747_v12 = vpop.f32.mrb[7].mxu1  ;;  %4858 = vmatmul.mubr.f32.vlgmr.msra.gmra.mrb[8].mxu1 %v4750_v11  ;;  %v4752_v20 = vmul.f32 %v4745_v10, %v8983_v44 }
0x14d0   : > { %v4753_v42 = vmul.f32 %v4747_v12, %v8981_v41 }
0x14d2   : > { %4862 = vmatprep.mubr.f32.mxu1 %v4753_v42 }
0x14d3   : > { %4863 = vmatmul.mubr.f32.gmra.mrb[10].mxu1 %v4752_v20 }
0x15a2   : > { %v5590_v37 = vpop.f32.mrb[8].mxu1 }
0x15a3   : > { %v5591_v34 = vpop.f32.mrb[9].mxu1 }
0x15a4   : > { %v5592_v60 = vadd.f32 %v5591_v34, %v5590_v37 }
0x15a6   : > { %v4860_v35 = vadd.f32 %v5592_v60, %v5287_v22  ;;  %v5593_v15 = vpop.f32.mrb[10].mxu1 }
0x15a7   : > { %v5594_v57 = vpop.f32.mrb[11].mxu1 }
0x15a8   : > { %4868 = vst [vmem:[%s7292_s28] sm:$0xff] %v4860_v35  ;;  %v5595_v17 = vadd.f32 %v5594_v57, %v5593_v15 }
0x15aa   : > { %v4865_v19 = vadd.f32 %v5595_v17, %v5287_v22 }
0x15ac   : > { %4869 = vst [vmem:[%s7292_s28 + $0x8] sm:$0xff] %v4865_v19 }
0x15ad PF: > { %s34_s30 = sadd.s32 1, %s6915_s30   ;;  %s9200_s20 = sld [smem:[#allocation15_spill]] }
0x15ae   : > { %p31_p0 = scmp.ge.s32.totalorder %s34_s30, 6   ;;  %s9201_s3 = sld [smem:[#allocation16_spill]] }
0x15af   : > { %s9202_s24 = smov %s6891_s25  ;;  %s9203_s25 = smov %s6895_s26 }
0x15b0   : > { %s9204_s26 = smov %s7153_s9  ;;  %s9205_s27 = smov %s6907_s29 }
0x15b1   : > { %s9206_s28 = smov %s6911_s0  ;;  %33 = sbr.rel (!%p31_p0) target bundleno = 23 (0x17), region = 166 }
0x15b3   : > { %s9207_s29 = smov %s9200_s20 }
0x15b4   : > { %s9208_s0 = smov %s9201_s3 }
0x15b8   :  { %4891 = vsyncpa [#allocation5], 1 }
0x15b9   :  { %4893 = vsyncpa [#allocation5 + $0x1], 1 }
0x15ba   :  { %4894 = vsyncpa [#allocation7], 1 }
0x15bb   :  { %4896 = vsyncpa [#allocation7 + $0x1], 1 }
0x15bc   :  { %4897 = vsyncpa [#allocation10], 1 }

</bundles_post_ra>
